<compile_context>
chip_gen: v7x
topology: tpu7x:2x2x1
jax: 0.10.0
libtpu: 0.0.40
codegen_flags: <defaults>
</compile_context>

<pallas_src>
import jax
import jax.numpy as jnp
from jax.experimental import pallas as pl
from jax.experimental.pallas import tpu as pltpu

NOISE_DIM = 100   # fixed by the module (Linear(100, ...), Embedding(num_class, 100))
L = 1024          # fixed by the module (fc out = 1024 * in_channels)
K = 7             # conv kernel size
PAD = 3           # conv padding


def generator_kernel(zext_ref, wext_ref, convm_ref, bnp_ref, bng_ref, bnb_ref,
                     out_ref, xstack_ref):
    """Fused Generator forward in channel-packed layout (row = c*B + b).

    zext_ref  : (CB, C*(100+1))  VMEM bf16  [kron(I_C, z) | kron(I_C, 1_B)]
    wext_ref  : (C*(100+1), L)   VMEM bf16  [per-channel fc weight ; per-channel fc bias]
    convm_ref : (5, CB, K*CB)    VMEM bf16  hstack_k kron(W_corr[l,k], I_B)
    bnp_ref   : (CB, CB)         VMEM f32   kron(I_C, ones(B,B)) / (B*L)
    bng_ref   : (4, CB, 1)       VMEM f32   BN gamma, packed rows
    bnb_ref   : (4, CB, 1)       VMEM f32   BN beta, packed rows
    out_ref   : (CB, L)          VMEM f32   packed output
    xstack_ref: (K*CB, L)        VMEM bf16  stacked shifted taps (per layer)
    """
    CB, Lout = out_ref.shape
    n_layers = convm_ref.shape[0]
    n_bn = bng_ref.shape[0]

    # ---- fc + bias + packing: ONE bf16 MXU matmul -> packed (CB, L) f32 ----
    x = jnp.dot(zext_ref[...], wext_ref[...], preferred_element_type=jnp.float32)

    # ---- hoisted layer-invariant constants ---------------------------------
    P = bnp_ref[...]                                      # (CB, CB), includes 1/(B*L)
    lane = jax.lax.broadcasted_iota(jnp.int32, (CB, Lout), 1)
    # Boundary masks for the 6 nonzero tap shifts, built ONCE (layer-invariant).
    # NOTE: roll(shift = s % L) and its mask (lane >= s / lane < L + s) are a
    # matched pair — they must always move together.
    masks = {}
    for k in range(K):
        s = PAD - k
        if s > 0:
            masks[k] = (lane >= s).astype(jnp.float32)
        elif s < 0:
            masks[k] = (lane < Lout + s).astype(jnp.float32)

    def conv_layer(xv, layer):
        # out[o*B+b, t] = sum_{i,k} Wc[l,k,o,i] * xv[i*B+b, t+k-PAD]
        # All K taps fused into one matmul: stack the masked shifted tiles
        # along the contraction axis and multiply by the hstacked mix matrix.
        for k in range(K):
            s = PAD - k                                   # static python int
            if s == 0:
                xs = xv
            else:
                xs = pltpu.roll(xv, shift=s % Lout, axis=1) * masks[k]
            xstack_ref[pl.ds(k * CB, CB), :] = xs.astype(jnp.bfloat16)
        return jnp.dot(convm_ref[layer], xstack_ref[...],
                       preferred_element_type=jnp.float32)

    def bn_relu(xv, idx):
        # Training-mode BatchNorm1d.  Reduce over L first (XLU), then mix the
        # per-row sums across the batch with one tiny (CB,CB)@(CB,2) matmul.
        s1 = jnp.sum(xv, axis=-1, keepdims=True)          # (CB, 1)  f32
        s2 = jnp.sum(xv * xv, axis=-1, keepdims=True)     # (CB, 1)  f32
        stats = jnp.concatenate([s1, s2], axis=-1)        # (CB, 2)
        m = jnp.dot(P, stats, preferred_element_type=jnp.float32)   # [mean, E[x^2]]
        mean = m[:, 0:1]
        var = jnp.maximum(m[:, 1:2] - mean * mean, 0.0)   # clamp: no NaN in rsqrt
        scale = jax.lax.rsqrt(var + 1e-5) * bng_ref[idx]  # (CB, 1)
        shift = bnb_ref[idx] - mean * scale
        return jnp.maximum(xv * scale + shift, 0.0)

    for layer in range(n_bn):
        x = conv_layer(x, layer)
        x = bn_relu(x, layer)
    x = conv_layer(x, n_layers - 1)
    out_ref[...] = jnp.tanh(x)


def init_params(key, in_channels, num_class):
    """Deterministic synthetic parameters matching the module's shapes."""
    C = in_channels
    ks = jax.random.split(key, 16)
    bound = 1.0 / jnp.sqrt(float(NOISE_DIM))
    cbound = 1.0 / jnp.sqrt(float(C * K))
    params = {
        "in_channels": C,
        # nn.Embedding(num_class, 100)
        "emb": jax.random.normal(ks[0], (num_class, NOISE_DIM), jnp.float32),
        # nn.Linear(100, 1024*C): weight (out, in), bias (out,)
        "fc_w": jax.random.uniform(ks[1], (L * C, NOISE_DIM), jnp.float32, -bound, bound),
        "fc_b": jax.random.uniform(ks[2], (L * C,), jnp.float32, -bound, bound),
        # 5x nn.ConvTranspose1d(C, C, 7, 1, 3, bias=False): weight (Cin, Cout, K)
        "conv_w": [jax.random.uniform(ks[3 + i], (C, C, K), jnp.float32, -cbound, cbound)
                   for i in range(5)],
        # 4x nn.BatchNorm1d(C) affine params (perturbed from 1/0 to exercise them)
        "bn_g": [1.0 + 0.1 * jax.random.normal(ks[8 + i], (C,), jnp.float32) for i in range(4)],
        "bn_b": [0.1 * jax.random.normal(ks[12 + i], (C,), jnp.float32) for i in range(4)],
    }
    return params


def generator_forward(noise, labels, params):
    C = params["in_channels"]
    B = noise.shape[0]
    CB = C * B

    # ---- plain-JAX glue: embedding gather + parameter/layout packing only --
    emb = params["emb"][labels].astype(jnp.float32)                   # (B, 100)
    z = emb * noise.astype(jnp.float32)                               # (B, 100)

    # fc directly in packed layout:
    #   x[c*B+b, t] = sum_j fc_w[c*L+t, j] * z[b, j] + fc_b[c*L+t]
    # Zext = [kron(I_C, z) | kron(I_C, 1_B)],  Wext = [per-channel W ; per-channel b]
    eyeC = jnp.eye(C, dtype=jnp.float32)
    zext = jnp.concatenate(
        [jnp.kron(eyeC, z), jnp.kron(eyeC, jnp.ones((B, 1), jnp.float32))],
        axis=1).astype(jnp.bfloat16)                                  # (CB, C*101)
    w_chan = params["fc_w"].reshape(C, L, NOISE_DIM).transpose(0, 2, 1)
    wext = jnp.concatenate(
        [w_chan.reshape(C * NOISE_DIM, L), params["fc_b"].reshape(C, L)],
        axis=0).astype(jnp.bfloat16)                                  # (C*101, L)

    # ConvTranspose1d weight (Cin, Cout, K) -> correlation form:
    #   out[o,t] = sum_{i,k} Wc[k,o,i] * x[i, t + k - 3],  Wc[k,o,i] = W[i,o,K-1-k]
    # kron with I_B so a single matmul mixes channels of the packed tile, then
    # hstack the K taps so each layer is ONE (CB, K*CB)@(K*CB, L) matmul.
    Wc = jnp.stack([jnp.transpose(jnp.flip(w, axis=2), (2, 1, 0))
                    for w in params["conv_w"]]).astype(jnp.float32)   # (5, K, C, C)
    eyeB = jnp.eye(B, dtype=jnp.float32)
    conv_mats = jnp.einsum("lkoi,ab->lkoaib", Wc, eyeB).reshape(5, K, CB, CB)
    conv_stack = conv_mats.transpose(0, 2, 1, 3).reshape(5, CB, K * CB)
    conv_stack = conv_stack.astype(jnp.bfloat16)                      # (5, CB, K*CB)
    # TODO(synk): at large C*B cap the kron block at the MXU contraction width
    # (128 on v5e, 256 on v6e/v7x) and loop over batch super-blocks.

    # Per-channel batch-sum-and-broadcast matrix for BN stats (1/(B*L) folded in).
    bnP = jnp.kron(eyeC, jnp.ones((B, B), jnp.float32)) / float(B * L)  # (CB, CB)
    bng = jnp.stack([jnp.repeat(g.astype(jnp.float32), B)[:, None]
                     for g in params["bn_g"]])                        # (4, CB, 1)
    bnb = jnp.stack([jnp.repeat(b.astype(jnp.float32), B)[:, None]
                     for b in params["bn_b"]])                        # (4, CB, 1)

    vmem = pl.BlockSpec(memory_space=pltpu.MemorySpace.VMEM)
    out_packed = pl.pallas_call(
        generator_kernel,
        out_shape=jax.ShapeDtypeStruct((CB, L), jnp.float32),
        in_specs=[vmem] * 6,
        out_specs=vmem,
        scratch_shapes=[pltpu.VMEM((K * CB, L), jnp.bfloat16)],
    )(zext, wext, conv_stack, bnP, bng, bnb)

    # packed row c*B + b  ->  PyTorch NCL (B, C, L)
    return jnp.transpose(out_packed.reshape(C, B, L), (1, 0, 2))


def reference_forward(noise, labels, params):
    """Pure-JAX f32 reference mirroring the PyTorch module (training-mode BN)."""
    C = params["in_channels"]
    B = noise.shape[0]
    z = params["emb"][labels] * noise
    x = z @ params["fc_w"].T + params["fc_b"]
    x = x.reshape(B, C, L)
    for li in range(5):
        Wt = params["conv_w"][li]                                     # (Cin, Cout, K)
        y = jnp.zeros((B, C, L + 6), jnp.float32)
        for k in range(K):                                            # transposed-conv scatter
            y = y.at[:, :, k:k + L].add(jnp.einsum("bil,io->bol", x, Wt[:, :, k]))
        x = y[:, :, 3:3 + L]
        if li < 4:
            mean = x.mean(axis=(0, 2), keepdims=True)
            var = ((x - mean) ** 2).mean(axis=(0, 2), keepdims=True)
            x = (x - mean) * jax.lax.rsqrt(var + 1e-5)
            x = x * params["bn_g"][li][None, :, None] + params["bn_b"][li][None, :, None]
            x = jnp.maximum(x, 0.0)
        else:
            x = jnp.tanh(x)
    return x


if __name__ == "__main__":
    in_channels, num_class, B = 4, 10, 2

    key = jax.random.PRNGKey(0)
    pkey, nkey, lkey = jax.random.split(key, 3)
    params = init_params(pkey, in_channels, num_class)
    noise = jax.random.normal(nkey, (B, NOISE_DIM), jnp.float32)
    labels = jax.random.randint(lkey, (B,), 0, num_class)

    out = generator_forward(noise, labels, params)
    out = jax.block_until_ready(out)
    assert out.shape == (B, in_channels, L)

    ref = jax.block_until_ready(reference_forward(noise, labels, params))
    max_err = float(jnp.max(jnp.abs(out - ref)))
    assert max_err < 5e-2, f"kernel/reference mismatch: {max_err}"

    print("KERNEL_OK")
</pallas_src>

<mosaic_0001>
module attributes {stable_mosaic.version = 11 : i64} {
  func.func @generator_kernel(%arg0: memref<8x404xbf16, #tpu.memory_space<vmem>>, %arg1: memref<404x1024xbf16, #tpu.memory_space<vmem>>, %arg2: memref<5x8x56xbf16, #tpu.memory_space<vmem>>, %arg3: memref<8x8xf32, #tpu.memory_space<vmem>>, %arg4: memref<4x8x1xf32, #tpu.memory_space<vmem>>, %arg5: memref<4x8x1xf32, #tpu.memory_space<vmem>>, %arg6: memref<8x1024xf32, #tpu.memory_space<vmem>>, %arg7: memref<56x1024xbf16, #tpu.memory_space<vmem>>) attributes {dimension_semantics = [], scalar_prefetch = 0 : i64, scratch_operands = 1 : i64, tpu.core_type = #tpu.core_type<tc>} {
    %c0 = arith.constant 0 : index
    %c0_0 = arith.constant 0 : index
    %0 = vector.load %arg0[%c0, %c0_0] : memref<8x404xbf16, #tpu.memory_space<vmem>>, vector<8x404xbf16>
    %c0_1 = arith.constant 0 : index
    %c0_2 = arith.constant 0 : index
    %1 = vector.load %arg1[%c0_1, %c0_2] : memref<404x1024xbf16, #tpu.memory_space<vmem>>, vector<404x1024xbf16>
    %cst = arith.constant dense<0.000000e+00> : vector<8x1024xf32>
    %2 = tpu.matmul %0, %1, %cst {dimension_numbers = #tpu.dot_dimension_numbers<[1], [0], [0], [1], [0, 0, 1, 1], [], []>} : vector<8x404xbf16>, vector<404x1024xbf16>, vector<8x1024xf32> -> vector<8x1024xf32>
    %c0_3 = arith.constant 0 : index
    %c0_4 = arith.constant 0 : index
    %3 = vector.load %arg3[%c0_3, %c0_4] : memref<8x8xf32, #tpu.memory_space<vmem>>, vector<8x8xf32>
    %4 = tpu.iota {dimensions = array<i32: 1>} : vector<8x1024xi32>
    %c3_i32 = arith.constant 3 : i32
    %5 = vector.broadcast %c3_i32 : i32 to vector<8x1024xi32>
    %6 = arith.cmpi sge, %4, %5 : vector<8x1024xi32>
    %7 = arith.extui %6 : vector<8x1024xi1> to vector<8x1024xi32>
    %8 = arith.sitofp %7 : vector<8x1024xi32> to vector<8x1024xf32>
    %c2_i32 = arith.constant 2 : i32
    %9 = vector.broadcast %c2_i32 : i32 to vector<8x1024xi32>
    %10 = arith.cmpi sge, %4, %9 : vector<8x1024xi32>
    %11 = arith.extui %10 : vector<8x1024xi1> to vector<8x1024xi32>
    %12 = arith.sitofp %11 : vector<8x1024xi32> to vector<8x1024xf32>
    %c1_i32 = arith.constant 1 : i32
    %13 = vector.broadcast %c1_i32 : i32 to vector<8x1024xi32>
    %14 = arith.cmpi sge, %4, %13 : vector<8x1024xi32>
    %15 = arith.extui %14 : vector<8x1024xi1> to vector<8x1024xi32>
    %16 = arith.sitofp %15 : vector<8x1024xi32> to vector<8x1024xf32>
    %c1023_i32 = arith.constant 1023 : i32
    %17 = vector.broadcast %c1023_i32 : i32 to vector<8x1024xi32>
    %18 = arith.cmpi slt, %4, %17 : vector<8x1024xi32>
    %19 = arith.extui %18 : vector<8x1024xi1> to vector<8x1024xi32>
    %20 = arith.sitofp %19 : vector<8x1024xi32> to vector<8x1024xf32>
    %c1022_i32 = arith.constant 1022 : i32
    %21 = vector.broadcast %c1022_i32 : i32 to vector<8x1024xi32>
    %22 = arith.cmpi slt, %4, %21 : vector<8x1024xi32>
    %23 = arith.extui %22 : vector<8x1024xi1> to vector<8x1024xi32>
    %24 = arith.sitofp %23 : vector<8x1024xi32> to vector<8x1024xf32>
    %c1021_i32 = arith.constant 1021 : i32
    %25 = vector.broadcast %c1021_i32 : i32 to vector<8x1024xi32>
    %26 = arith.cmpi slt, %4, %25 : vector<8x1024xi32>
    %27 = arith.extui %26 : vector<8x1024xi1> to vector<8x1024xi32>
    %28 = arith.sitofp %27 : vector<8x1024xi32> to vector<8x1024xf32>
    %c3_i32_5 = arith.constant 3 : i32
    %29 = tpu.dynamic_rotate %2 by %c3_i32_5 dim 1 : vector<8x1024xf32>, i32 -> vector<8x1024xf32>
    %30 = arith.mulf %29, %8 : vector<8x1024xf32>
    %31 = arith.truncf %30 : vector<8x1024xf32> to vector<8x1024xbf16>
    %c0_6 = arith.constant 0 : index
    %c0_7 = arith.constant 0 : index
    %32 = vector.load %arg7[%c0_6, %c0_7] : memref<56x1024xbf16, #tpu.memory_space<vmem>>, vector<8x1024xbf16>
    tpu.vector_store %arg7[%c0_6, %c0_7], %31 {strides = array<i32>} : memref<56x1024xbf16, #tpu.memory_space<vmem>>, vector<8x1024xbf16>,
    %c2_i32_8 = arith.constant 2 : i32
    %33 = tpu.dynamic_rotate %2 by %c2_i32_8 dim 1 : vector<8x1024xf32>, i32 -> vector<8x1024xf32>
    %34 = arith.mulf %33, %12 : vector<8x1024xf32>
    %35 = arith.truncf %34 : vector<8x1024xf32> to vector<8x1024xbf16>
    %c8 = arith.constant 8 : index
    %c0_9 = arith.constant 0 : index
    %36 = vector.load %arg7[%c8, %c0_9] : memref<56x1024xbf16, #tpu.memory_space<vmem>>, vector<8x1024xbf16>
    tpu.vector_store %arg7[%c8, %c0_9], %35 {strides = array<i32>} : memref<56x1024xbf16, #tpu.memory_space<vmem>>, vector<8x1024xbf16>,
    %c1_i32_10 = arith.constant 1 : i32
    %37 = tpu.dynamic_rotate %2 by %c1_i32_10 dim 1 : vector<8x1024xf32>, i32 -> vector<8x1024xf32>
    %38 = arith.mulf %37, %16 : vector<8x1024xf32>
    %39 = arith.truncf %38 : vector<8x1024xf32> to vector<8x1024xbf16>
    %c16 = arith.constant 16 : index
    %c0_11 = arith.constant 0 : index
    %40 = vector.load %arg7[%c16, %c0_11] : memref<56x1024xbf16, #tpu.memory_space<vmem>>, vector<8x1024xbf16>
    tpu.vector_store %arg7[%c16, %c0_11], %39 {strides = array<i32>} : memref<56x1024xbf16, #tpu.memory_space<vmem>>, vector<8x1024xbf16>,
    %41 = arith.truncf %2 : vector<8x1024xf32> to vector<8x1024xbf16>
    %c24 = arith.constant 24 : index
    %c0_12 = arith.constant 0 : index
    %42 = vector.load %arg7[%c24, %c0_12] : memref<56x1024xbf16, #tpu.memory_space<vmem>>, vector<8x1024xbf16>
    tpu.vector_store %arg7[%c24, %c0_12], %41 {strides = array<i32>} : memref<56x1024xbf16, #tpu.memory_space<vmem>>, vector<8x1024xbf16>,
    %c1023_i32_13 = arith.constant 1023 : i32
    %43 = tpu.dynamic_rotate %2 by %c1023_i32_13 dim 1 : vector<8x1024xf32>, i32 -> vector<8x1024xf32>
    %44 = arith.mulf %43, %20 : vector<8x1024xf32>
    %45 = arith.truncf %44 : vector<8x1024xf32> to vector<8x1024xbf16>
    %c32 = arith.constant 32 : index
    %c0_14 = arith.constant 0 : index
    %46 = vector.load %arg7[%c32, %c0_14] : memref<56x1024xbf16, #tpu.memory_space<vmem>>, vector<8x1024xbf16>
    tpu.vector_store %arg7[%c32, %c0_14], %45 {strides = array<i32>} : memref<56x1024xbf16, #tpu.memory_space<vmem>>, vector<8x1024xbf16>,
    %c1022_i32_15 = arith.constant 1022 : i32
    %47 = tpu.dynamic_rotate %2 by %c1022_i32_15 dim 1 : vector<8x1024xf32>, i32 -> vector<8x1024xf32>
    %48 = arith.mulf %47, %24 : vector<8x1024xf32>
    %49 = arith.truncf %48 : vector<8x1024xf32> to vector<8x1024xbf16>
    %c40 = arith.constant 40 : index
    %c0_16 = arith.constant 0 : index
    %50 = vector.load %arg7[%c40, %c0_16] : memref<56x1024xbf16, #tpu.memory_space<vmem>>, vector<8x1024xbf16>
    tpu.vector_store %arg7[%c40, %c0_16], %49 {strides = array<i32>} : memref<56x1024xbf16, #tpu.memory_space<vmem>>, vector<8x1024xbf16>,
    %c1021_i32_17 = arith.constant 1021 : i32
    %51 = tpu.dynamic_rotate %2 by %c1021_i32_17 dim 1 : vector<8x1024xf32>, i32 -> vector<8x1024xf32>
    %52 = arith.mulf %51, %28 : vector<8x1024xf32>
    %53 = arith.truncf %52 : vector<8x1024xf32> to vector<8x1024xbf16>
    %c48 = arith.constant 48 : index
    %c0_18 = arith.constant 0 : index
    %54 = vector.load %arg7[%c48, %c0_18] : memref<56x1024xbf16, #tpu.memory_space<vmem>>, vector<8x1024xbf16>
    tpu.vector_store %arg7[%c48, %c0_18], %53 {strides = array<i32>} : memref<56x1024xbf16, #tpu.memory_space<vmem>>, vector<8x1024xbf16>,
    %c0_19 = arith.constant 0 : index
    %c0_20 = arith.constant 0 : index
    %c0_21 = arith.constant 0 : index
    %55 = vector.load %arg2[%c0_19, %c0_20, %c0_21] : memref<5x8x56xbf16, #tpu.memory_space<vmem>>, vector<1x8x56xbf16>
    %56 = vector.shape_cast %55 : vector<1x8x56xbf16> to vector<8x56xbf16>
    %c0_22 = arith.constant 0 : index
    %c0_23 = arith.constant 0 : index
    %57 = vector.load %arg7[%c0_22, %c0_23] : memref<56x1024xbf16, #tpu.memory_space<vmem>>, vector<56x1024xbf16>
    %cst_24 = arith.constant dense<0.000000e+00> : vector<8x1024xf32>
    %58 = tpu.matmul %56, %57, %cst_24 {dimension_numbers = #tpu.dot_dimension_numbers<[1], [0], [0], [1], [0, 0, 1, 1], [], []>} : vector<8x56xbf16>, vector<56x1024xbf16>, vector<8x1024xf32> -> vector<8x1024xf32>
    %cst_25 = arith.constant dense<0.000000e+00> : vector<8xf32>
    %59 = vector.multi_reduction <add>, %58, %cst_25 [1] : vector<8x1024xf32> to vector<8xf32>
    %60 = vector.shape_cast %59 : vector<8xf32> to vector<8x1xf32>
    %61 = arith.mulf %58, %58 : vector<8x1024xf32>
    %cst_26 = arith.constant dense<0.000000e+00> : vector<8xf32>
    %62 = vector.multi_reduction <add>, %61, %cst_26 [1] : vector<8x1024xf32> to vector<8xf32>
    %63 = vector.shape_cast %62 : vector<8xf32> to vector<8x1xf32>
    %64 = tpu.concatenate %60, %63 in 1 : vector<8x1xf32>, vector<8x1xf32> -> vector<8x2xf32>
    %cst_27 = arith.constant dense<0.000000e+00> : vector<8x2xf32>
    %65 = tpu.matmul %3, %64, %cst_27 {dimension_numbers = #tpu.dot_dimension_numbers<[1], [0], [0], [1], [0, 0, 1, 1], [], []>} : vector<8x8xf32>, vector<8x2xf32>, vector<8x2xf32> -> vector<8x2xf32>
    %66 = vector.extract_strided_slice %65 {offsets = [0, 0], sizes = [8, 1], strides = [1, 1]} : vector<8x2xf32> to vector<8x1xf32>
    %67 = vector.extract_strided_slice %65 {offsets = [0, 1], sizes = [8, 1], strides = [1, 1]} : vector<8x2xf32> to vector<8x1xf32>
    %68 = arith.mulf %66, %66 : vector<8x1xf32>
    %69 = arith.subf %67, %68 : vector<8x1xf32>
    %cst_28 = arith.constant 0.000000e+00 : f32
    %70 = vector.broadcast %cst_28 : f32 to vector<8x1xf32>
    %71 = arith.maximumf %69, %70 : vector<8x1xf32>
    %cst_29 = arith.constant 9.99999974E-6 : f32
    %72 = vector.broadcast %cst_29 : f32 to vector<8x1xf32>
    %73 = arith.addf %71, %72 : vector<8x1xf32>
    %74 = math.rsqrt %73 : vector<8x1xf32>
    %c0_30 = arith.constant 0 : index
    %c0_31 = arith.constant 0 : index
    %c0_32 = arith.constant 0 : index
    %75 = vector.load %arg4[%c0_30, %c0_31, %c0_32] : memref<4x8x1xf32, #tpu.memory_space<vmem>>, vector<1x8x1xf32>
    %76 = vector.shape_cast %75 : vector<1x8x1xf32> to vector<8x1xf32>
    %77 = arith.mulf %74, %76 : vector<8x1xf32>
    %c0_33 = arith.constant 0 : index
    %c0_34 = arith.constant 0 : index
    %c0_35 = arith.constant 0 : index
    %78 = vector.load %arg5[%c0_33, %c0_34, %c0_35] : memref<4x8x1xf32, #tpu.memory_space<vmem>>, vector<1x8x1xf32>
    %79 = vector.shape_cast %78 : vector<1x8x1xf32> to vector<8x1xf32>
    %80 = arith.mulf %66, %77 : vector<8x1xf32>
    %81 = arith.subf %79, %80 : vector<8x1xf32>
    %82 = vector.broadcast %77 : vector<8x1xf32> to vector<8x1024xf32>
    %83 = arith.mulf %58, %82 : vector<8x1024xf32>
    %84 = vector.broadcast %81 : vector<8x1xf32> to vector<8x1024xf32>
    %85 = arith.addf %83, %84 : vector<8x1024xf32>
    %cst_36 = arith.constant 0.000000e+00 : f32
    %86 = vector.broadcast %cst_36 : f32 to vector<8x1024xf32>
    %87 = arith.maximumf %85, %86 : vector<8x1024xf32>
    %c3_i32_37 = arith.constant 3 : i32
    %88 = tpu.dynamic_rotate %87 by %c3_i32_37 dim 1 : vector<8x1024xf32>, i32 -> vector<8x1024xf32>
    %89 = arith.mulf %88, %8 : vector<8x1024xf32>
    %90 = arith.truncf %89 : vector<8x1024xf32> to vector<8x1024xbf16>
    %c0_38 = arith.constant 0 : index
    %c0_39 = arith.constant 0 : index
    %91 = vector.load %arg7[%c0_38, %c0_39] : memref<56x1024xbf16, #tpu.memory_space<vmem>>, vector<8x1024xbf16>
    tpu.vector_store %arg7[%c0_38, %c0_39], %90 {strides = array<i32>} : memref<56x1024xbf16, #tpu.memory_space<vmem>>, vector<8x1024xbf16>,
    %c2_i32_40 = arith.constant 2 : i32
    %92 = tpu.dynamic_rotate %87 by %c2_i32_40 dim 1 : vector<8x1024xf32>, i32 -> vector<8x1024xf32>
    %93 = arith.mulf %92, %12 : vector<8x1024xf32>
    %94 = arith.truncf %93 : vector<8x1024xf32> to vector<8x1024xbf16>
    %c8_41 = arith.constant 8 : index
    %c0_42 = arith.constant 0 : index
    %95 = vector.load %arg7[%c8_41, %c0_42] : memref<56x1024xbf16, #tpu.memory_space<vmem>>, vector<8x1024xbf16>
    tpu.vector_store %arg7[%c8_41, %c0_42], %94 {strides = array<i32>} : memref<56x1024xbf16, #tpu.memory_space<vmem>>, vector<8x1024xbf16>,
    %c1_i32_43 = arith.constant 1 : i32
    %96 = tpu.dynamic_rotate %87 by %c1_i32_43 dim 1 : vector<8x1024xf32>, i32 -> vector<8x1024xf32>
    %97 = arith.mulf %96, %16 : vector<8x1024xf32>
    %98 = arith.truncf %97 : vector<8x1024xf32> to vector<8x1024xbf16>
    %c16_44 = arith.constant 16 : index
    %c0_45 = arith.constant 0 : index
    %99 = vector.load %arg7[%c16_44, %c0_45] : memref<56x1024xbf16, #tpu.memory_space<vmem>>, vector<8x1024xbf16>
    tpu.vector_store %arg7[%c16_44, %c0_45], %98 {strides = array<i32>} : memref<56x1024xbf16, #tpu.memory_space<vmem>>, vector<8x1024xbf16>,
    %100 = arith.truncf %87 : vector<8x1024xf32> to vector<8x1024xbf16>
    %c24_46 = arith.constant 24 : index
    %c0_47 = arith.constant 0 : index
    %101 = vector.load %arg7[%c24_46, %c0_47] : memref<56x1024xbf16, #tpu.memory_space<vmem>>, vector<8x1024xbf16>
    tpu.vector_store %arg7[%c24_46, %c0_47], %100 {strides = array<i32>} : memref<56x1024xbf16, #tpu.memory_space<vmem>>, vector<8x1024xbf16>,
    %c1023_i32_48 = arith.constant 1023 : i32
    %102 = tpu.dynamic_rotate %87 by %c1023_i32_48 dim 1 : vector<8x1024xf32>, i32 -> vector<8x1024xf32>
    %103 = arith.mulf %102, %20 : vector<8x1024xf32>
    %104 = arith.truncf %103 : vector<8x1024xf32> to vector<8x1024xbf16>
    %c32_49 = arith.constant 32 : index
    %c0_50 = arith.constant 0 : index
    %105 = vector.load %arg7[%c32_49, %c0_50] : memref<56x1024xbf16, #tpu.memory_space<vmem>>, vector<8x1024xbf16>
    tpu.vector_store %arg7[%c32_49, %c0_50], %104 {strides = array<i32>} : memref<56x1024xbf16, #tpu.memory_space<vmem>>, vector<8x1024xbf16>,
    %c1022_i32_51 = arith.constant 1022 : i32
    %106 = tpu.dynamic_rotate %87 by %c1022_i32_51 dim 1 : vector<8x1024xf32>, i32 -> vector<8x1024xf32>
    %107 = arith.mulf %106, %24 : vector<8x1024xf32>
    %108 = arith.truncf %107 : vector<8x1024xf32> to vector<8x1024xbf16>
    %c40_52 = arith.constant 40 : index
    %c0_53 = arith.constant 0 : index
    %109 = vector.load %arg7[%c40_52, %c0_53] : memref<56x1024xbf16, #tpu.memory_space<vmem>>, vector<8x1024xbf16>
    tpu.vector_store %arg7[%c40_52, %c0_53], %108 {strides = array<i32>} : memref<56x1024xbf16, #tpu.memory_space<vmem>>, vector<8x1024xbf16>,
    %c1021_i32_54 = arith.constant 1021 : i32
    %110 = tpu.dynamic_rotate %87 by %c1021_i32_54 dim 1 : vector<8x1024xf32>, i32 -> vector<8x1024xf32>
    %111 = arith.mulf %110, %28 : vector<8x1024xf32>
    %112 = arith.truncf %111 : vector<8x1024xf32> to vector<8x1024xbf16>
    %c48_55 = arith.constant 48 : index
    %c0_56 = arith.constant 0 : index
    %113 = vector.load %arg7[%c48_55, %c0_56] : memref<56x1024xbf16, #tpu.memory_space<vmem>>, vector<8x1024xbf16>
    tpu.vector_store %arg7[%c48_55, %c0_56], %112 {strides = array<i32>} : memref<56x1024xbf16, #tpu.memory_space<vmem>>, vector<8x1024xbf16>,
    %c1 = arith.constant 1 : index
    %c0_57 = arith.constant 0 : index
    %c0_58 = arith.constant 0 : index
    %114 = vector.load %arg2[%c1, %c0_57, %c0_58] : memref<5x8x56xbf16, #tpu.memory_space<vmem>>, vector<1x8x56xbf16>
    %115 = vector.shape_cast %114 : vector<1x8x56xbf16> to vector<8x56xbf16>
    %c0_59 = arith.constant 0 : index
    %c0_60 = arith.constant 0 : index
    %116 = vector.load %arg7[%c0_59, %c0_60] : memref<56x1024xbf16, #tpu.memory_space<vmem>>, vector<56x1024xbf16>
    %cst_61 = arith.constant dense<0.000000e+00> : vector<8x1024xf32>
    %117 = tpu.matmul %115, %116, %cst_61 {dimension_numbers = #tpu.dot_dimension_numbers<[1], [0], [0], [1], [0, 0, 1, 1], [], []>} : vector<8x56xbf16>, vector<56x1024xbf16>, vector<8x1024xf32> -> vector<8x1024xf32>
    %cst_62 = arith.constant dense<0.000000e+00> : vector<8xf32>
    %118 = vector.multi_reduction <add>, %117, %cst_62 [1] : vector<8x1024xf32> to vector<8xf32>
    %119 = vector.shape_cast %118 : vector<8xf32> to vector<8x1xf32>
    %120 = arith.mulf %117, %117 : vector<8x1024xf32>
    %cst_63 = arith.constant dense<0.000000e+00> : vector<8xf32>
    %121 = vector.multi_reduction <add>, %120, %cst_63 [1] : vector<8x1024xf32> to vector<8xf32>
    %122 = vector.shape_cast %121 : vector<8xf32> to vector<8x1xf32>
    %123 = tpu.concatenate %119, %122 in 1 : vector<8x1xf32>, vector<8x1xf32> -> vector<8x2xf32>
    %cst_64 = arith.constant dense<0.000000e+00> : vector<8x2xf32>
    %124 = tpu.matmul %3, %123, %cst_64 {dimension_numbers = #tpu.dot_dimension_numbers<[1], [0], [0], [1], [0, 0, 1, 1], [], []>} : vector<8x8xf32>, vector<8x2xf32>, vector<8x2xf32> -> vector<8x2xf32>
    %125 = vector.extract_strided_slice %124 {offsets = [0, 0], sizes = [8, 1], strides = [1, 1]} : vector<8x2xf32> to vector<8x1xf32>
    %126 = vector.extract_strided_slice %124 {offsets = [0, 1], sizes = [8, 1], strides = [1, 1]} : vector<8x2xf32> to vector<8x1xf32>
    %127 = arith.mulf %125, %125 : vector<8x1xf32>
    %128 = arith.subf %126, %127 : vector<8x1xf32>
    %cst_65 = arith.constant 0.000000e+00 : f32
    %129 = vector.broadcast %cst_65 : f32 to vector<8x1xf32>
    %130 = arith.maximumf %128, %129 : vector<8x1xf32>
    %cst_66 = arith.constant 9.99999974E-6 : f32
    %131 = vector.broadcast %cst_66 : f32 to vector<8x1xf32>
    %132 = arith.addf %130, %131 : vector<8x1xf32>
    %133 = math.rsqrt %132 : vector<8x1xf32>
    %c1_67 = arith.constant 1 : index
    %c0_68 = arith.constant 0 : index
    %c0_69 = arith.constant 0 : index
    %134 = vector.load %arg4[%c1_67, %c0_68, %c0_69] : memref<4x8x1xf32, #tpu.memory_space<vmem>>, vector<1x8x1xf32>
    %135 = vector.shape_cast %134 : vector<1x8x1xf32> to vector<8x1xf32>
    %136 = arith.mulf %133, %135 : vector<8x1xf32>
    %c1_70 = arith.constant 1 : index
    %c0_71 = arith.constant 0 : index
    %c0_72 = arith.constant 0 : index
    %137 = vector.load %arg5[%c1_70, %c0_71, %c0_72] : memref<4x8x1xf32, #tpu.memory_space<vmem>>, vector<1x8x1xf32>
    %138 = vector.shape_cast %137 : vector<1x8x1xf32> to vector<8x1xf32>
    %139 = arith.mulf %125, %136 : vector<8x1xf32>
    %140 = arith.subf %138, %139 : vector<8x1xf32>
    %141 = vector.broadcast %136 : vector<8x1xf32> to vector<8x1024xf32>
    %142 = arith.mulf %117, %141 : vector<8x1024xf32>
    %143 = vector.broadcast %140 : vector<8x1xf32> to vector<8x1024xf32>
    %144 = arith.addf %142, %143 : vector<8x1024xf32>
    %cst_73 = arith.constant 0.000000e+00 : f32
    %145 = vector.broadcast %cst_73 : f32 to vector<8x1024xf32>
    %146 = arith.maximumf %144, %145 : vector<8x1024xf32>
    %c3_i32_74 = arith.constant 3 : i32
    %147 = tpu.dynamic_rotate %146 by %c3_i32_74 dim 1 : vector<8x1024xf32>, i32 -> vector<8x1024xf32>
    %148 = arith.mulf %147, %8 : vector<8x1024xf32>
    %149 = arith.truncf %148 : vector<8x1024xf32> to vector<8x1024xbf16>
    %c0_75 = arith.constant 0 : index
    %c0_76 = arith.constant 0 : index
    %150 = vector.load %arg7[%c0_75, %c0_76] : memref<56x1024xbf16, #tpu.memory_space<vmem>>, vector<8x1024xbf16>
    tpu.vector_store %arg7[%c0_75, %c0_76], %149 {strides = array<i32>} : memref<56x1024xbf16, #tpu.memory_space<vmem>>, vector<8x1024xbf16>,
    %c2_i32_77 = arith.constant 2 : i32
    %151 = tpu.dynamic_rotate %146 by %c2_i32_77 dim 1 : vector<8x1024xf32>, i32 -> vector<8x1024xf32>
    %152 = arith.mulf %151, %12 : vector<8x1024xf32>
    %153 = arith.truncf %152 : vector<8x1024xf32> to vector<8x1024xbf16>
    %c8_78 = arith.constant 8 : index
    %c0_79 = arith.constant 0 : index
    %154 = vector.load %arg7[%c8_78, %c0_79] : memref<56x1024xbf16, #tpu.memory_space<vmem>>, vector<8x1024xbf16>
    tpu.vector_store %arg7[%c8_78, %c0_79], %153 {strides = array<i32>} : memref<56x1024xbf16, #tpu.memory_space<vmem>>, vector<8x1024xbf16>,
    %c1_i32_80 = arith.constant 1 : i32
    %155 = tpu.dynamic_rotate %146 by %c1_i32_80 dim 1 : vector<8x1024xf32>, i32 -> vector<8x1024xf32>
    %156 = arith.mulf %155, %16 : vector<8x1024xf32>
    %157 = arith.truncf %156 : vector<8x1024xf32> to vector<8x1024xbf16>
    %c16_81 = arith.constant 16 : index
    %c0_82 = arith.constant 0 : index
    %158 = vector.load %arg7[%c16_81, %c0_82] : memref<56x1024xbf16, #tpu.memory_space<vmem>>, vector<8x1024xbf16>
    tpu.vector_store %arg7[%c16_81, %c0_82], %157 {strides = array<i32>} : memref<56x1024xbf16, #tpu.memory_space<vmem>>, vector<8x1024xbf16>,
    %159 = arith.truncf %146 : vector<8x1024xf32> to vector<8x1024xbf16>
    %c24_83 = arith.constant 24 : index
    %c0_84 = arith.constant 0 : index
    %160 = vector.load %arg7[%c24_83, %c0_84] : memref<56x1024xbf16, #tpu.memory_space<vmem>>, vector<8x1024xbf16>
    tpu.vector_store %arg7[%c24_83, %c0_84], %159 {strides = array<i32>} : memref<56x1024xbf16, #tpu.memory_space<vmem>>, vector<8x1024xbf16>,
    %c1023_i32_85 = arith.constant 1023 : i32
    %161 = tpu.dynamic_rotate %146 by %c1023_i32_85 dim 1 : vector<8x1024xf32>, i32 -> vector<8x1024xf32>
    %162 = arith.mulf %161, %20 : vector<8x1024xf32>
    %163 = arith.truncf %162 : vector<8x1024xf32> to vector<8x1024xbf16>
    %c32_86 = arith.constant 32 : index
    %c0_87 = arith.constant 0 : index
    %164 = vector.load %arg7[%c32_86, %c0_87] : memref<56x1024xbf16, #tpu.memory_space<vmem>>, vector<8x1024xbf16>
    tpu.vector_store %arg7[%c32_86, %c0_87], %163 {strides = array<i32>} : memref<56x1024xbf16, #tpu.memory_space<vmem>>, vector<8x1024xbf16>,
    %c1022_i32_88 = arith.constant 1022 : i32
    %165 = tpu.dynamic_rotate %146 by %c1022_i32_88 dim 1 : vector<8x1024xf32>, i32 -> vector<8x1024xf32>
    %166 = arith.mulf %165, %24 : vector<8x1024xf32>
    %167 = arith.truncf %166 : vector<8x1024xf32> to vector<8x1024xbf16>
    %c40_89 = arith.constant 40 : index
    %c0_90 = arith.constant 0 : index
    %168 = vector.load %arg7[%c40_89, %c0_90] : memref<56x1024xbf16, #tpu.memory_space<vmem>>, vector<8x1024xbf16>
    tpu.vector_store %arg7[%c40_89, %c0_90], %167 {strides = array<i32>} : memref<56x1024xbf16, #tpu.memory_space<vmem>>, vector<8x1024xbf16>,
    %c1021_i32_91 = arith.constant 1021 : i32
    %169 = tpu.dynamic_rotate %146 by %c1021_i32_91 dim 1 : vector<8x1024xf32>, i32 -> vector<8x1024xf32>
    %170 = arith.mulf %169, %28 : vector<8x1024xf32>
    %171 = arith.truncf %170 : vector<8x1024xf32> to vector<8x1024xbf16>
    %c48_92 = arith.constant 48 : index
    %c0_93 = arith.constant 0 : index
    %172 = vector.load %arg7[%c48_92, %c0_93] : memref<56x1024xbf16, #tpu.memory_space<vmem>>, vector<8x1024xbf16>
    tpu.vector_store %arg7[%c48_92, %c0_93], %171 {strides = array<i32>} : memref<56x1024xbf16, #tpu.memory_space<vmem>>, vector<8x1024xbf16>,
    %c2 = arith.constant 2 : index
    %c0_94 = arith.constant 0 : index
    %c0_95 = arith.constant 0 : index
    %173 = vector.load %arg2[%c2, %c0_94, %c0_95] : memref<5x8x56xbf16, #tpu.memory_space<vmem>>, vector<1x8x56xbf16>
    %174 = vector.shape_cast %173 : vector<1x8x56xbf16> to vector<8x56xbf16>
    %c0_96 = arith.constant 0 : index
    %c0_97 = arith.constant 0 : index
    %175 = vector.load %arg7[%c0_96, %c0_97] : memref<56x1024xbf16, #tpu.memory_space<vmem>>, vector<56x1024xbf16>
    %cst_98 = arith.constant dense<0.000000e+00> : vector<8x1024xf32>
    %176 = tpu.matmul %174, %175, %cst_98 {dimension_numbers = #tpu.dot_dimension_numbers<[1], [0], [0], [1], [0, 0, 1, 1], [], []>} : vector<8x56xbf16>, vector<56x1024xbf16>, vector<8x1024xf32> -> vector<8x1024xf32>
    %cst_99 = arith.constant dense<0.000000e+00> : vector<8xf32>
    %177 = vector.multi_reduction <add>, %176, %cst_99 [1] : vector<8x1024xf32> to vector<8xf32>
    %178 = vector.shape_cast %177 : vector<8xf32> to vector<8x1xf32>
    %179 = arith.mulf %176, %176 : vector<8x1024xf32>
    %cst_100 = arith.constant dense<0.000000e+00> : vector<8xf32>
    %180 = vector.multi_reduction <add>, %179, %cst_100 [1] : vector<8x1024xf32> to vector<8xf32>
    %181 = vector.shape_cast %180 : vector<8xf32> to vector<8x1xf32>
    %182 = tpu.concatenate %178, %181 in 1 : vector<8x1xf32>, vector<8x1xf32> -> vector<8x2xf32>
    %cst_101 = arith.constant dense<0.000000e+00> : vector<8x2xf32>
    %183 = tpu.matmul %3, %182, %cst_101 {dimension_numbers = #tpu.dot_dimension_numbers<[1], [0], [0], [1], [0, 0, 1, 1], [], []>} : vector<8x8xf32>, vector<8x2xf32>, vector<8x2xf32> -> vector<8x2xf32>
    %184 = vector.extract_strided_slice %183 {offsets = [0, 0], sizes = [8, 1], strides = [1, 1]} : vector<8x2xf32> to vector<8x1xf32>
    %185 = vector.extract_strided_slice %183 {offsets = [0, 1], sizes = [8, 1], strides = [1, 1]} : vector<8x2xf32> to vector<8x1xf32>
    %186 = arith.mulf %184, %184 : vector<8x1xf32>
    %187 = arith.subf %185, %186 : vector<8x1xf32>
    %cst_102 = arith.constant 0.000000e+00 : f32
    %188 = vector.broadcast %cst_102 : f32 to vector<8x1xf32>
    %189 = arith.maximumf %187, %188 : vector<8x1xf32>
    %cst_103 = arith.constant 9.99999974E-6 : f32
    %190 = vector.broadcast %cst_103 : f32 to vector<8x1xf32>
    %191 = arith.addf %189, %190 : vector<8x1xf32>
    %192 = math.rsqrt %191 : vector<8x1xf32>
    %c2_104 = arith.constant 2 : index
    %c0_105 = arith.constant 0 : index
    %c0_106 = arith.constant 0 : index
    %193 = vector.load %arg4[%c2_104, %c0_105, %c0_106] : memref<4x8x1xf32, #tpu.memory_space<vmem>>, vector<1x8x1xf32>
    %194 = vector.shape_cast %193 : vector<1x8x1xf32> to vector<8x1xf32>
    %195 = arith.mulf %192, %194 : vector<8x1xf32>
    %c2_107 = arith.constant 2 : index
    %c0_108 = arith.constant 0 : index
    %c0_109 = arith.constant 0 : index
    %196 = vector.load %arg5[%c2_107, %c0_108, %c0_109] : memref<4x8x1xf32, #tpu.memory_space<vmem>>, vector<1x8x1xf32>
    %197 = vector.shape_cast %196 : vector<1x8x1xf32> to vector<8x1xf32>
    %198 = arith.mulf %184, %195 : vector<8x1xf32>
    %199 = arith.subf %197, %198 : vector<8x1xf32>
    %200 = vector.broadcast %195 : vector<8x1xf32> to vector<8x1024xf32>
    %201 = arith.mulf %176, %200 : vector<8x1024xf32>
    %202 = vector.broadcast %199 : vector<8x1xf32> to vector<8x1024xf32>
    %203 = arith.addf %201, %202 : vector<8x1024xf32>
    %cst_110 = arith.constant 0.000000e+00 : f32
    %204 = vector.broadcast %cst_110 : f32 to vector<8x1024xf32>
    %205 = arith.maximumf %203, %204 : vector<8x1024xf32>
    %c3_i32_111 = arith.constant 3 : i32
    %206 = tpu.dynamic_rotate %205 by %c3_i32_111 dim 1 : vector<8x1024xf32>, i32 -> vector<8x1024xf32>
    %207 = arith.mulf %206, %8 : vector<8x1024xf32>
    %208 = arith.truncf %207 : vector<8x1024xf32> to vector<8x1024xbf16>
    %c0_112 = arith.constant 0 : index
    %c0_113 = arith.constant 0 : index
    %209 = vector.load %arg7[%c0_112, %c0_113] : memref<56x1024xbf16, #tpu.memory_space<vmem>>, vector<8x1024xbf16>
    tpu.vector_store %arg7[%c0_112, %c0_113], %208 {strides = array<i32>} : memref<56x1024xbf16, #tpu.memory_space<vmem>>, vector<8x1024xbf16>,
    %c2_i32_114 = arith.constant 2 : i32
    %210 = tpu.dynamic_rotate %205 by %c2_i32_114 dim 1 : vector<8x1024xf32>, i32 -> vector<8x1024xf32>
    %211 = arith.mulf %210, %12 : vector<8x1024xf32>
    %212 = arith.truncf %211 : vector<8x1024xf32> to vector<8x1024xbf16>
    %c8_115 = arith.constant 8 : index
    %c0_116 = arith.constant 0 : index
    %213 = vector.load %arg7[%c8_115, %c0_116] : memref<56x1024xbf16, #tpu.memory_space<vmem>>, vector<8x1024xbf16>
    tpu.vector_store %arg7[%c8_115, %c0_116], %212 {strides = array<i32>} : memref<56x1024xbf16, #tpu.memory_space<vmem>>, vector<8x1024xbf16>,
    %c1_i32_117 = arith.constant 1 : i32
    %214 = tpu.dynamic_rotate %205 by %c1_i32_117 dim 1 : vector<8x1024xf32>, i32 -> vector<8x1024xf32>
    %215 = arith.mulf %214, %16 : vector<8x1024xf32>
    %216 = arith.truncf %215 : vector<8x1024xf32> to vector<8x1024xbf16>
    %c16_118 = arith.constant 16 : index
    %c0_119 = arith.constant 0 : index
    %217 = vector.load %arg7[%c16_118, %c0_119] : memref<56x1024xbf16, #tpu.memory_space<vmem>>, vector<8x1024xbf16>
    tpu.vector_store %arg7[%c16_118, %c0_119], %216 {strides = array<i32>} : memref<56x1024xbf16, #tpu.memory_space<vmem>>, vector<8x1024xbf16>,
    %218 = arith.truncf %205 : vector<8x1024xf32> to vector<8x1024xbf16>
    %c24_120 = arith.constant 24 : index
    %c0_121 = arith.constant 0 : index
    %219 = vector.load %arg7[%c24_120, %c0_121] : memref<56x1024xbf16, #tpu.memory_space<vmem>>, vector<8x1024xbf16>
    tpu.vector_store %arg7[%c24_120, %c0_121], %218 {strides = array<i32>} : memref<56x1024xbf16, #tpu.memory_space<vmem>>, vector<8x1024xbf16>,
    %c1023_i32_122 = arith.constant 1023 : i32
    %220 = tpu.dynamic_rotate %205 by %c1023_i32_122 dim 1 : vector<8x1024xf32>, i32 -> vector<8x1024xf32>
    %221 = arith.mulf %220, %20 : vector<8x1024xf32>
    %222 = arith.truncf %221 : vector<8x1024xf32> to vector<8x1024xbf16>
    %c32_123 = arith.constant 32 : index
    %c0_124 = arith.constant 0 : index
    %223 = vector.load %arg7[%c32_123, %c0_124] : memref<56x1024xbf16, #tpu.memory_space<vmem>>, vector<8x1024xbf16>
    tpu.vector_store %arg7[%c32_123, %c0_124], %222 {strides = array<i32>} : memref<56x1024xbf16, #tpu.memory_space<vmem>>, vector<8x1024xbf16>,
    %c1022_i32_125 = arith.constant 1022 : i32
    %224 = tpu.dynamic_rotate %205 by %c1022_i32_125 dim 1 : vector<8x1024xf32>, i32 -> vector<8x1024xf32>
    %225 = arith.mulf %224, %24 : vector<8x1024xf32>
    %226 = arith.truncf %225 : vector<8x1024xf32> to vector<8x1024xbf16>
    %c40_126 = arith.constant 40 : index
    %c0_127 = arith.constant 0 : index
    %227 = vector.load %arg7[%c40_126, %c0_127] : memref<56x1024xbf16, #tpu.memory_space<vmem>>, vector<8x1024xbf16>
    tpu.vector_store %arg7[%c40_126, %c0_127], %226 {strides = array<i32>} : memref<56x1024xbf16, #tpu.memory_space<vmem>>, vector<8x1024xbf16>,
    %c1021_i32_128 = arith.constant 1021 : i32
    %228 = tpu.dynamic_rotate %205 by %c1021_i32_128 dim 1 : vector<8x1024xf32>, i32 -> vector<8x1024xf32>
    %229 = arith.mulf %228, %28 : vector<8x1024xf32>
    %230 = arith.truncf %229 : vector<8x1024xf32> to vector<8x1024xbf16>
    %c48_129 = arith.constant 48 : index
    %c0_130 = arith.constant 0 : index
    %231 = vector.load %arg7[%c48_129, %c0_130] : memref<56x1024xbf16, #tpu.memory_space<vmem>>, vector<8x1024xbf16>
    tpu.vector_store %arg7[%c48_129, %c0_130], %230 {strides = array<i32>} : memref<56x1024xbf16, #tpu.memory_space<vmem>>, vector<8x1024xbf16>,
    %c3 = arith.constant 3 : index
    %c0_131 = arith.constant 0 : index
    %c0_132 = arith.constant 0 : index
    %232 = vector.load %arg2[%c3, %c0_131, %c0_132] : memref<5x8x56xbf16, #tpu.memory_space<vmem>>, vector<1x8x56xbf16>
    %233 = vector.shape_cast %232 : vector<1x8x56xbf16> to vector<8x56xbf16>
    %c0_133 = arith.constant 0 : index
    %c0_134 = arith.constant 0 : index
    %234 = vector.load %arg7[%c0_133, %c0_134] : memref<56x1024xbf16, #tpu.memory_space<vmem>>, vector<56x1024xbf16>
    %cst_135 = arith.constant dense<0.000000e+00> : vector<8x1024xf32>
    %235 = tpu.matmul %233, %234, %cst_135 {dimension_numbers = #tpu.dot_dimension_numbers<[1], [0], [0], [1], [0, 0, 1, 1], [], []>} : vector<8x56xbf16>, vector<56x1024xbf16>, vector<8x1024xf32> -> vector<8x1024xf32>
    %cst_136 = arith.constant dense<0.000000e+00> : vector<8xf32>
    %236 = vector.multi_reduction <add>, %235, %cst_136 [1] : vector<8x1024xf32> to vector<8xf32>
    %237 = vector.shape_cast %236 : vector<8xf32> to vector<8x1xf32>
    %238 = arith.mulf %235, %235 : vector<8x1024xf32>
    %cst_137 = arith.constant dense<0.000000e+00> : vector<8xf32>
    %239 = vector.multi_reduction <add>, %238, %cst_137 [1] : vector<8x1024xf32> to vector<8xf32>
    %240 = vector.shape_cast %239 : vector<8xf32> to vector<8x1xf32>
    %241 = tpu.concatenate %237, %240 in 1 : vector<8x1xf32>, vector<8x1xf32> -> vector<8x2xf32>
    %cst_138 = arith.constant dense<0.000000e+00> : vector<8x2xf32>
    %242 = tpu.matmul %3, %241, %cst_138 {dimension_numbers = #tpu.dot_dimension_numbers<[1], [0], [0], [1], [0, 0, 1, 1], [], []>} : vector<8x8xf32>, vector<8x2xf32>, vector<8x2xf32> -> vector<8x2xf32>
    %243 = vector.extract_strided_slice %242 {offsets = [0, 0], sizes = [8, 1], strides = [1, 1]} : vector<8x2xf32> to vector<8x1xf32>
    %244 = vector.extract_strided_slice %242 {offsets = [0, 1], sizes = [8, 1], strides = [1, 1]} : vector<8x2xf32> to vector<8x1xf32>
    %245 = arith.mulf %243, %243 : vector<8x1xf32>
    %246 = arith.subf %244, %245 : vector<8x1xf32>
    %cst_139 = arith.constant 0.000000e+00 : f32
    %247 = vector.broadcast %cst_139 : f32 to vector<8x1xf32>
    %248 = arith.maximumf %246, %247 : vector<8x1xf32>
    %cst_140 = arith.constant 9.99999974E-6 : f32
    %249 = vector.broadcast %cst_140 : f32 to vector<8x1xf32>
    %250 = arith.addf %248, %249 : vector<8x1xf32>
    %251 = math.rsqrt %250 : vector<8x1xf32>
    %c3_141 = arith.constant 3 : index
    %c0_142 = arith.constant 0 : index
    %c0_143 = arith.constant 0 : index
    %252 = vector.load %arg4[%c3_141, %c0_142, %c0_143] : memref<4x8x1xf32, #tpu.memory_space<vmem>>, vector<1x8x1xf32>
    %253 = vector.shape_cast %252 : vector<1x8x1xf32> to vector<8x1xf32>
    %254 = arith.mulf %251, %253 : vector<8x1xf32>
    %c3_144 = arith.constant 3 : index
    %c0_145 = arith.constant 0 : index
    %c0_146 = arith.constant 0 : index
    %255 = vector.load %arg5[%c3_144, %c0_145, %c0_146] : memref<4x8x1xf32, #tpu.memory_space<vmem>>, vector<1x8x1xf32>
    %256 = vector.shape_cast %255 : vector<1x8x1xf32> to vector<8x1xf32>
    %257 = arith.mulf %243, %254 : vector<8x1xf32>
    %258 = arith.subf %256, %257 : vector<8x1xf32>
    %259 = vector.broadcast %254 : vector<8x1xf32> to vector<8x1024xf32>
    %260 = arith.mulf %235, %259 : vector<8x1024xf32>
    %261 = vector.broadcast %258 : vector<8x1xf32> to vector<8x1024xf32>
    %262 = arith.addf %260, %261 : vector<8x1024xf32>
    %cst_147 = arith.constant 0.000000e+00 : f32
    %263 = vector.broadcast %cst_147 : f32 to vector<8x1024xf32>
    %264 = arith.maximumf %262, %263 : vector<8x1024xf32>
    %c3_i32_148 = arith.constant 3 : i32
    %265 = tpu.dynamic_rotate %264 by %c3_i32_148 dim 1 : vector<8x1024xf32>, i32 -> vector<8x1024xf32>
    %266 = arith.mulf %265, %8 : vector<8x1024xf32>
    %267 = arith.truncf %266 : vector<8x1024xf32> to vector<8x1024xbf16>
    %c0_149 = arith.constant 0 : index
    %c0_150 = arith.constant 0 : index
    %268 = vector.load %arg7[%c0_149, %c0_150] : memref<56x1024xbf16, #tpu.memory_space<vmem>>, vector<8x1024xbf16>
    tpu.vector_store %arg7[%c0_149, %c0_150], %267 {strides = array<i32>} : memref<56x1024xbf16, #tpu.memory_space<vmem>>, vector<8x1024xbf16>,
    %c2_i32_151 = arith.constant 2 : i32
    %269 = tpu.dynamic_rotate %264 by %c2_i32_151 dim 1 : vector<8x1024xf32>, i32 -> vector<8x1024xf32>
    %270 = arith.mulf %269, %12 : vector<8x1024xf32>
    %271 = arith.truncf %270 : vector<8x1024xf32> to vector<8x1024xbf16>
    %c8_152 = arith.constant 8 : index
    %c0_153 = arith.constant 0 : index
    %272 = vector.load %arg7[%c8_152, %c0_153] : memref<56x1024xbf16, #tpu.memory_space<vmem>>, vector<8x1024xbf16>
    tpu.vector_store %arg7[%c8_152, %c0_153], %271 {strides = array<i32>} : memref<56x1024xbf16, #tpu.memory_space<vmem>>, vector<8x1024xbf16>,
    %c1_i32_154 = arith.constant 1 : i32
    %273 = tpu.dynamic_rotate %264 by %c1_i32_154 dim 1 : vector<8x1024xf32>, i32 -> vector<8x1024xf32>
    %274 = arith.mulf %273, %16 : vector<8x1024xf32>
    %275 = arith.truncf %274 : vector<8x1024xf32> to vector<8x1024xbf16>
    %c16_155 = arith.constant 16 : index
    %c0_156 = arith.constant 0 : index
    %276 = vector.load %arg7[%c16_155, %c0_156] : memref<56x1024xbf16, #tpu.memory_space<vmem>>, vector<8x1024xbf16>
    tpu.vector_store %arg7[%c16_155, %c0_156], %275 {strides = array<i32>} : memref<56x1024xbf16, #tpu.memory_space<vmem>>, vector<8x1024xbf16>,
    %277 = arith.truncf %264 : vector<8x1024xf32> to vector<8x1024xbf16>
    %c24_157 = arith.constant 24 : index
    %c0_158 = arith.constant 0 : index
    %278 = vector.load %arg7[%c24_157, %c0_158] : memref<56x1024xbf16, #tpu.memory_space<vmem>>, vector<8x1024xbf16>
    tpu.vector_store %arg7[%c24_157, %c0_158], %277 {strides = array<i32>} : memref<56x1024xbf16, #tpu.memory_space<vmem>>, vector<8x1024xbf16>,
    %c1023_i32_159 = arith.constant 1023 : i32
    %279 = tpu.dynamic_rotate %264 by %c1023_i32_159 dim 1 : vector<8x1024xf32>, i32 -> vector<8x1024xf32>
    %280 = arith.mulf %279, %20 : vector<8x1024xf32>
    %281 = arith.truncf %280 : vector<8x1024xf32> to vector<8x1024xbf16>
    %c32_160 = arith.constant 32 : index
    %c0_161 = arith.constant 0 : index
    %282 = vector.load %arg7[%c32_160, %c0_161] : memref<56x1024xbf16, #tpu.memory_space<vmem>>, vector<8x1024xbf16>
    tpu.vector_store %arg7[%c32_160, %c0_161], %281 {strides = array<i32>} : memref<56x1024xbf16, #tpu.memory_space<vmem>>, vector<8x1024xbf16>,
    %c1022_i32_162 = arith.constant 1022 : i32
    %283 = tpu.dynamic_rotate %264 by %c1022_i32_162 dim 1 : vector<8x1024xf32>, i32 -> vector<8x1024xf32>
    %284 = arith.mulf %283, %24 : vector<8x1024xf32>
    %285 = arith.truncf %284 : vector<8x1024xf32> to vector<8x1024xbf16>
    %c40_163 = arith.constant 40 : index
    %c0_164 = arith.constant 0 : index
    %286 = vector.load %arg7[%c40_163, %c0_164] : memref<56x1024xbf16, #tpu.memory_space<vmem>>, vector<8x1024xbf16>
    tpu.vector_store %arg7[%c40_163, %c0_164], %285 {strides = array<i32>} : memref<56x1024xbf16, #tpu.memory_space<vmem>>, vector<8x1024xbf16>,
    %c1021_i32_165 = arith.constant 1021 : i32
    %287 = tpu.dynamic_rotate %264 by %c1021_i32_165 dim 1 : vector<8x1024xf32>, i32 -> vector<8x1024xf32>
    %288 = arith.mulf %287, %28 : vector<8x1024xf32>
    %289 = arith.truncf %288 : vector<8x1024xf32> to vector<8x1024xbf16>
    %c48_166 = arith.constant 48 : index
    %c0_167 = arith.constant 0 : index
    %290 = vector.load %arg7[%c48_166, %c0_167] : memref<56x1024xbf16, #tpu.memory_space<vmem>>, vector<8x1024xbf16>
    tpu.vector_store %arg7[%c48_166, %c0_167], %289 {strides = array<i32>} : memref<56x1024xbf16, #tpu.memory_space<vmem>>, vector<8x1024xbf16>,
    %c4 = arith.constant 4 : index
    %c0_168 = arith.constant 0 : index
    %c0_169 = arith.constant 0 : index
    %291 = vector.load %arg2[%c4, %c0_168, %c0_169] : memref<5x8x56xbf16, #tpu.memory_space<vmem>>, vector<1x8x56xbf16>
    %292 = vector.shape_cast %291 : vector<1x8x56xbf16> to vector<8x56xbf16>
    %c0_170 = arith.constant 0 : index
    %c0_171 = arith.constant 0 : index
    %293 = vector.load %arg7[%c0_170, %c0_171] : memref<56x1024xbf16, #tpu.memory_space<vmem>>, vector<56x1024xbf16>
    %cst_172 = arith.constant dense<0.000000e+00> : vector<8x1024xf32>
    %294 = tpu.matmul %292, %293, %cst_172 {dimension_numbers = #tpu.dot_dimension_numbers<[1], [0], [0], [1], [0, 0, 1, 1], [], []>} : vector<8x56xbf16>, vector<56x1024xbf16>, vector<8x1024xf32> -> vector<8x1024xf32>
    %295 = math.tanh %294 : vector<8x1024xf32>
    %c0_173 = arith.constant 0 : index
    %c0_174 = arith.constant 0 : index
    %296 = vector.load %arg6[%c0_173, %c0_174] : memref<8x1024xf32, #tpu.memory_space<vmem>>, vector<8x1024xf32>
    tpu.vector_store %arg6[%c0_173, %c0_174], %295 {strides = array<i32>} : memref<8x1024xf32, #tpu.memory_space<vmem>>, vector<8x1024xf32>,
    return
  }
}

</mosaic_0001>

<bundles_post_ra>
// kernel: tpu_custom_call.1
= control target key start
LH: loop header
LB: loop body
LE: loop exit
PB: predicated region body
PF: predicated region fallthrough
CT: control target
= control target key end

     0   :  { %11 = vsyncpa [#allocation4], 0  ;;  %s9791_s0 = inlined_call_operand.vmem [shape: bf16[8,404], index: 0, kind: input, shape index: {}]   ;;  %s9792_s1 = inlined_call_operand.hbm [shape: bf16[404,1024], index: 1, kind: input, shape index: {}]   ;;  %s9793_s2 = inlined_call_operand.vmem [shape: bf16[5,8,56], index: 2, kind: input, shape index: {}]   ;;  %s9794_s3 = inlined_call_operand.vmem [shape: f32[8,8], index: 3, kind: input, shape index: {}]   ;;  %s9795_s4 = inlined_call_operand.vmem [shape: f32[4,8,1], index: 4, kind: input, shape index: {}]   ;;  %s9796_s5 = inlined_call_operand.vmem [shape: f32[4,8,1], index: 5, kind: input, shape index: {}]   ;;  %s9797_s6 = inlined_call_operand.hbm [shape: f32[8,1024], index: 6, kind: output, shape index: {}]  }
   0x1   :  { %12 = vsyncpa [#allocation5], 0  ;;  %s7944_s21 = smov [#allocation3]   ;;  %s7896_s25 = scalar_lea.hbm %s9792_s1, 26112 }
   0x2   :  { %s20_s22 = sshll.u32 %s7944_s21, 4  ;;  %p7897_p0 = scmp.ne.s32.totalorder %s9792_s1, %s7896_s25  ;;  %s21_s22 = int_to_ptr.vmem [resolvable:$true] %s20_s22 }
   0x3   :  { %p7900_p1 = scmp.lt.u32.totalorder %s7896_s25, %s9792_s1 }
   0x5   :  { %p7902_p2 = pnand %p7900_p1, %p7897_p0 }
   0x7   :  { %7905 = shalt.err (!%p7902_p2)
}
   0x8   :  { %s7906_s30 = scalar_lea.vmem %s21_s22, 26112  ;;  %p7911_p4 = scmp.lt.s32.totalorder %s21_s22, %s21_s22 }
   0x9   :  { %p7907_p3 = scmp.ne.s32.totalorder %s21_s22, %s7906_s30  ;;  %p7912_p5 = scmp.lt.s32.totalorder %s7906_s30, %s7906_s30 }
   0xb   :  { %p7913_p6 = por %p7912_p5, %p7911_p4 }
   0xd   :  { %p7914_p7 = pnand %p7913_p6, %p7907_p3 }
   0xf   :  { %7917 = shalt.err (!%p7914_p7)
}
  0x10   :  { %s7945_s7 = smov 512   ;;  %s7946_s8 = smov 32  }
  0x11   :  { %26 = dma.hbm_to_vmem [thread:$0]  %s9792_s1, 26112, %s21_s22, [#allocation4], %s7945_s7, %s7945_s7, %s7946_s8  }
  0x12   :  { %7940 = dma.done.wait [#allocation4], 26112  }
  0x13   :  { %7941 = vsyncadd [#allocation4], 4294941184  ;;  %v41_v0 = vld [vmem:[#allocation3] sm:$0xff]  ;;  %v42_v2 = vld [vmem:[#allocation3 + $0x8] sm:$0xff]  ;;  %vm1278_vm0 = vcmask 162816   ;;  %vm1282_vm1 = vcmask 1041408  }
  0x14   :  { %v45_v1 = vld [vmem:[#allocation3 + $0x20] sm:$0xff]  ;;  %v46_v4 = vld [vmem:[#allocation3 + $0x28] sm:$0xff]  ;;  %s7948_s14 = smov 3   ;;  %s7949_s15 = smov 1   ;;  %vm2412_vm11 = vcmask 1043456   ;;  %vm2408_vm13 = vcmask 457728  }
  0x15   :  { %v6476_v3 = vcombine.high %v41_v0, %v45_v1  ;;  %v6475_v5 = vcombine.low %v41_v0, %v45_v1  ;;  %v49_v6 = vld [vmem:[#allocation3 + $0x40] sm:$0xff]  ;;  %v6478_v8 = vcombine.high %v42_v2, %v46_v4  ;;  %v6477_v9 = vcombine.low %v42_v2, %v46_v4  ;;  %v50_v11 = vld [vmem:[#allocation3 + $0x48] sm:$0xff]  ;;  %s7950_s16 = smov 126   ;;  %s7951_s17 = smov 127  }
  0x16   :  { %v53_v7 = vld [vmem:[#allocation3 + $0x60] sm:$0xff]  ;;  %v54_v12 = vld [vmem:[#allocation3 + $0x68] sm:$0xff]  ;;  %s7952_s18 = smov 125  }
  0x17   :  { %v6484_v10 = vcombine.high %v49_v6, %v53_v7  ;;  %v57_v13 = vld [vmem:[#allocation3 + $0x80] sm:$0xff]  ;;  %1307 = vmatprep.subr.bf16.mxu0 %v6476_v3  ;;  %v6486_v14 = vcombine.high %v50_v11, %v54_v12  ;;  %v58_v16 = vld [vmem:[#allocation3 + $0x88] sm:$0xff]  ;;  %1389 = vmatprep.subr.bf16.mxu1 %v6478_v8  ;;  %v6483_v18 = vcombine.low %v49_v6, %v53_v7 }
  0x18   :  { %v61_v15 = vld [vmem:[#allocation3 + $0xa0] sm:$0xff]  ;;  %v62_v17 = vld [vmem:[#allocation3 + $0xa8] sm:$0xff]  ;;  %1308 = vmatpush1.bf16.msra.mxu0 %v6475_v5  ;;  %1390 = vmatpush1.bf16.msra.mxu1 %v6477_v9  ;;  %v6485_v19 = vcombine.low %v50_v11, %v54_v12 }
  0x19   :  { %1309 = vmatprep.subr.bf16.mxu0 %v6484_v10  ;;  %v6492_v20 = vcombine.high %v57_v13, %v61_v15  ;;  %1391 = vmatprep.subr.bf16.mxu1 %v6486_v14  ;;  %v6494_v21 = vcombine.high %v58_v16, %v62_v17  ;;  %v65_v22 = vld [vmem:[#allocation3 + $0xc0] sm:$0xff]  ;;  %v66_v24 = vld [vmem:[#allocation3 + $0xc8] sm:$0xff]  ;;  %v6491_v26 = vcombine.low %v57_v13, %v61_v15 }
  0x1a   :  { %v69_v23 = vld [vmem:[#allocation3 + $0xe0] sm:$0xff]  ;;  %v70_v25 = vld [vmem:[#allocation3 + $0xe8] sm:$0xff]  ;;  %v6493_v27 = vcombine.low %v58_v16, %v62_v17 }
  0x1b   :  { %v6500_v28 = vcombine.high %v65_v22, %v69_v23  ;;  %v6502_v29 = vcombine.high %v66_v24, %v70_v25  ;;  %v73_v30 = vld [vmem:[#allocation3 + $0x100] sm:$0xff]  ;;  %v74_v32 = vld [vmem:[#allocation3 + $0x108] sm:$0xff]  ;;  %v6499_v34 = vcombine.low %v65_v22, %v69_v23  ;;  %v6501_v35 = vcombine.low %v66_v24, %v70_v25 }
  0x1c   :  { %1310 = vmatpush1.bf16.msra.mxu0 %v6483_v18  ;;  %1392 = vmatpush1.bf16.msra.mxu1 %v6485_v19  ;;  %v77_v31 = vld [vmem:[#allocation3 + $0x120] sm:$0xff]  ;;  %v78_v33 = vld [vmem:[#allocation3 + $0x128] sm:$0xff] }
  0x1d   :  { %1311 = vmatprep.subr.bf16.mxu0 %v6492_v20  ;;  %1393 = vmatprep.subr.bf16.mxu1 %v6494_v21  ;;  %v6508_v36 = vcombine.high %v73_v30, %v77_v31  ;;  %v6510_v37 = vcombine.high %v74_v32, %v78_v33  ;;  %v81_v38 = vld [vmem:[#allocation3 + $0x140] sm:$0xff]  ;;  %v82_v40 = vld [vmem:[#allocation3 + $0x148] sm:$0xff]  ;;  %v6507_v42 = vcombine.low %v73_v30, %v77_v31 }
  0x1e   :  { %v85_v39 = vld [vmem:[#allocation3 + $0x160] sm:$0xff]  ;;  %v86_v41 = vld [vmem:[#allocation3 + $0x168] sm:$0xff]  ;;  %v6509_v43 = vcombine.low %v74_v32, %v78_v33 }
  0x1f   :  { %v6516_v44 = vcombine.high %v81_v38, %v85_v39  ;;  %v6518_v45 = vcombine.high %v82_v40, %v86_v41  ;;  %v89_v46 = vld [vmem:[#allocation3 + $0x180] sm:$0xff]  ;;  %v90_v48 = vld [vmem:[#allocation3 + $0x188] sm:$0xff]  ;;  %v6515_v50 = vcombine.low %v81_v38, %v85_v39  ;;  %v6517_v51 = vcombine.low %v82_v40, %v86_v41 }
  0x20   :  { %1312 = vmatpush1.bf16.msra.mxu0 %v6491_v26  ;;  %1394 = vmatpush1.bf16.msra.mxu1 %v6493_v27  ;;  %v93_v47 = vld [vmem:[#allocation3 + $0x1a0] sm:$0xff]  ;;  %v94_v49 = vld [vmem:[#allocation3 + $0x1a8] sm:$0xff] }
  0x21   :  { %1313 = vmatprep.subr.bf16.mxu0 %v6500_v28  ;;  %1395 = vmatprep.subr.bf16.mxu1 %v6502_v29  ;;  %v6524_v52 = vcombine.high %v89_v46, %v93_v47  ;;  %v8008_v53 = vld [vmem:[%s9791_s0] sm:$0xff]  ;;  %v6526_v54 = vcombine.high %v90_v48, %v94_v49  ;;  %v98_v58 = vld [vmem:[#allocation3 + $0x1c8] sm:$0xff]  ;;  %v6523_v60 = vcombine.low %v89_v46, %v93_v47 }
  0x22   :  { %v97_v55 = vld [vmem:[#allocation3 + $0x1c0] sm:$0xff]  ;;  %v8012_v57 = vcombine.high %v8008_v53, %v8008_v53  ;;  %v102_v59 = vld [vmem:[#allocation3 + $0x1e8] sm:$0xff]  ;;  %v6525_v61 = vcombine.low %v90_v48, %v94_v49 }
  0x23   :  { %v101_v56 = vld [vmem:[#allocation3 + $0x1e0] sm:$0xff]  ;;  %v6534_v63 = vcombine.high %v98_v58, %v102_v59  ;;  %v106_v2 = vld [vmem:[#allocation3 + $0x208] sm:$0xff]  ;;  %v6533_v5 = vcombine.low %v98_v58, %v102_v59 }
  0x24   :  { %1314 = vmatpush1.bf16.msra.mxu0 %v6499_v34  ;;  %1396 = vmatpush1.bf16.msra.mxu1 %v6501_v35  ;;  %v6532_v62 = vcombine.high %v97_v55, %v101_v56  ;;  %v105_v0 = vld [vmem:[#allocation3 + $0x200] sm:$0xff]  ;;  %v110_v3 = vld [vmem:[#allocation3 + $0x228] sm:$0xff]  ;;  %v6531_v4 = vcombine.low %v97_v55, %v101_v56 }
  0x25   :  { %1315 = vmatprep.subr.bf16.mxu0 %v6508_v36  ;;  %1397 = vmatprep.subr.bf16.mxu1 %v6510_v37  ;;  %v109_v1 = vld [vmem:[#allocation3 + $0x220] sm:$0xff]  ;;  %v6542_v7 = vcombine.high %v106_v2, %v110_v3  ;;  %v114_v10 = vld [vmem:[#allocation3 + $0x248] sm:$0xff]  ;;  %v6541_v13 = vcombine.low %v106_v2, %v110_v3 }
  0x26   :  { %1339 = vmatprep.mubr.bf16.mxu0 %v8012_v57  ;;  %1421 = vmatprep.mubr.bf16.mxu1 %v8012_v57  ;;  %v6540_v6 = vcombine.high %v105_v0, %v109_v1  ;;  %v113_v8 = vld [vmem:[#allocation3 + $0x240] sm:$0xff]  ;;  %v118_v11 = vld [vmem:[#allocation3 + $0x268] sm:$0xff]  ;;  %v6539_v12 = vcombine.low %v105_v0, %v109_v1 }
  0x27   :  { %v117_v9 = vld [vmem:[#allocation3 + $0x260] sm:$0xff]  ;;  %v6550_v15 = vcombine.high %v114_v10, %v118_v11  ;;  %v122_v18 = vld [vmem:[#allocation3 + $0x288] sm:$0xff]  ;;  %v6549_v21 = vcombine.low %v114_v10, %v118_v11 }
  0x28   :  { %1316 = vmatpush1.bf16.msra.mxu0 %v6507_v42  ;;  %1398 = vmatpush1.bf16.msra.mxu1 %v6509_v43  ;;  %v6548_v14 = vcombine.high %v113_v8, %v117_v9  ;;  %v121_v16 = vld [vmem:[#allocation3 + $0x280] sm:$0xff]  ;;  %v126_v19 = vld [vmem:[#allocation3 + $0x2a8] sm:$0xff]  ;;  %v6547_v20 = vcombine.low %v113_v8, %v117_v9 }
  0x29   :  { %1317 = vmatprep.subr.bf16.mxu0 %v6516_v44  ;;  %1399 = vmatprep.subr.bf16.mxu1 %v6518_v45  ;;  %v125_v17 = vld [vmem:[#allocation3 + $0x2a0] sm:$0xff]  ;;  %v6558_v23 = vcombine.high %v122_v18, %v126_v19  ;;  %v130_v26 = vld [vmem:[#allocation3 + $0x2c8] sm:$0xff]  ;;  %v6557_v29 = vcombine.low %v122_v18, %v126_v19 }
  0x2a   :  { %v6556_v22 = vcombine.high %v121_v16, %v125_v17  ;;  %v129_v24 = vld [vmem:[#allocation3 + $0x2c0] sm:$0xff]  ;;  %v134_v27 = vld [vmem:[#allocation3 + $0x2e8] sm:$0xff]  ;;  %v6555_v28 = vcombine.low %v121_v16, %v125_v17 }
  0x2b   :  { %v133_v25 = vld [vmem:[#allocation3 + $0x2e0] sm:$0xff]  ;;  %v6566_v31 = vcombine.high %v130_v26, %v134_v27  ;;  %v138_v34 = vld [vmem:[#allocation3 + $0x308] sm:$0xff]  ;;  %v6565_v37 = vcombine.low %v130_v26, %v134_v27 }
  0x2c   :  { %1318 = vmatpush1.bf16.msra.mxu0 %v6515_v50  ;;  %1400 = vmatpush1.bf16.msra.mxu1 %v6517_v51  ;;  %v6564_v30 = vcombine.high %v129_v24, %v133_v25  ;;  %v137_v32 = vld [vmem:[#allocation3 + $0x300] sm:$0xff]  ;;  %v142_v35 = vld [vmem:[#allocation3 + $0x328] sm:$0xff]  ;;  %v6563_v36 = vcombine.low %v129_v24, %v133_v25 }
  0x2d   :  { %1319 = vmatprep.subr.bf16.mxu0 %v6524_v52  ;;  %1401 = vmatprep.subr.bf16.mxu1 %v6526_v54  ;;  %v141_v33 = vld [vmem:[#allocation3 + $0x320] sm:$0xff]  ;;  %v6574_v39 = vcombine.high %v138_v34, %v142_v35  ;;  %v146_v42 = vld [vmem:[#allocation3 + $0x348] sm:$0xff]  ;;  %v6573_v45 = vcombine.low %v138_v34, %v142_v35 }
  0x2e   :  { %v6572_v38 = vcombine.high %v137_v32, %v141_v33  ;;  %v145_v40 = vld [vmem:[#allocation3 + $0x340] sm:$0xff]  ;;  %v150_v43 = vld [vmem:[#allocation3 + $0x368] sm:$0xff]  ;;  %v6571_v44 = vcombine.low %v137_v32, %v141_v33 }
  0x2f   :  { %v149_v41 = vld [vmem:[#allocation3 + $0x360] sm:$0xff]  ;;  %v6582_v47 = vcombine.high %v146_v42, %v150_v43  ;;  %v154_v50 = vld [vmem:[#allocation3 + $0x388] sm:$0xff]  ;;  %v6581_v54 = vcombine.low %v146_v42, %v150_v43 }
  0x30   :  { %1320 = vmatpush1.bf16.msra.mxu0 %v6523_v60  ;;  %1402 = vmatpush1.bf16.msra.mxu1 %v6525_v61  ;;  %v6580_v46 = vcombine.high %v145_v40, %v149_v41  ;;  %v153_v48 = vld [vmem:[#allocation3 + $0x380] sm:$0xff]  ;;  %v158_v51 = vld [vmem:[#allocation3 + $0x3a8] sm:$0xff]  ;;  %v6579_v52 = vcombine.low %v145_v40, %v149_v41 }
  0x31   :  { %1321 = vmatprep.subr.bf16.mxu0 %v6532_v62  ;;  %1403 = vmatprep.subr.bf16.mxu1 %v6534_v63  ;;  %v157_v49 = vld [vmem:[#allocation3 + $0x3a0] sm:$0xff]  ;;  %v6590_v56 = vcombine.high %v154_v50, %v158_v51  ;;  %v162_v60 = vld [vmem:[#allocation3 + $0x3c8] sm:$0xff]  ;;  %v6589_v63 = vcombine.low %v154_v50, %v158_v51 }
  0x32   :  { %v6588_v55 = vcombine.high %v153_v48, %v157_v49  ;;  %v161_v58 = vld [vmem:[#allocation3 + $0x3c0] sm:$0xff]  ;;  %v166_v61 = vld [vmem:[#allocation3 + $0x3e8] sm:$0xff]  ;;  %v6587_v62 = vcombine.low %v153_v48, %v157_v49 }
  0x33   :  { %v165_v59 = vld [vmem:[#allocation3 + $0x3e0] sm:$0xff]  ;;  %v6598_v1 = vcombine.high %v162_v60, %v166_v61 }
  0x34   :  { %1322 = vmatpush1.bf16.msra.mxu0 %v6531_v4  ;;  %1404 = vmatpush1.bf16.msra.mxu1 %v6533_v5  ;;  %v6596_v0 = vcombine.high %v161_v58, %v165_v59  ;;  %v169_v2 = vld [vmem:[#allocation3 + $0x400] sm:$0xff]  ;;  %v170_v4 = vld [vmem:[#allocation3 + $0x408] sm:$0xff] }
  0x35   :  { %1323 = vmatprep.subr.bf16.mxu0 %v6540_v6  ;;  %1405 = vmatprep.subr.bf16.mxu1 %v6542_v7  ;;  %v173_v3 = vld [vmem:[#allocation3 + $0x420] sm:$0xff]  ;;  %v174_v5 = vld [vmem:[#allocation3 + $0x428] sm:$0xff]  ;;  %v6595_v6 = vcombine.low %v161_v58, %v165_v59  ;;  %v6597_v7 = vcombine.low %v162_v60, %v166_v61 }
  0x36   :  { %v6604_v8 = vcombine.high %v169_v2, %v173_v3  ;;  %v6606_v9 = vcombine.high %v170_v4, %v174_v5  ;;  %v177_v10 = vld [vmem:[#allocation3 + $0x440] sm:$0xff]  ;;  %v6603_v16 = vcombine.low %v169_v2, %v173_v3  ;;  %v6605_v17 = vcombine.low %v170_v4, %v174_v5 }
  0x37   :  { %v181_v11 = vld [vmem:[#allocation3 + $0x460] sm:$0xff] }
  0x38   :  { %1324 = vmatpush1.bf16.msra.mxu0 %v6539_v12  ;;  %1406 = vmatpush1.bf16.msra.mxu1 %v6541_v13  ;;  %v8018_v12 = vcombine.low %v8008_v53, %v8008_v53  ;;  %v178_v13 = vld [vmem:[#allocation3 + $0x448] sm:$0xff]  ;;  %v6612_v18 = vcombine.high %v177_v10, %v181_v11  ;;  %v6611_v24 = vcombine.low %v177_v10, %v181_v11 }
  0x39   :  { %1325 = vmatprep.subr.bf16.mxu0 %v6548_v14  ;;  %1407 = vmatprep.subr.bf16.mxu1 %v6550_v15  ;;  %v182_v14 = vld [vmem:[#allocation3 + $0x468] sm:$0xff] }
  0x3a   :  { %v8023_v15 = vld [vmem:[%s9791_s0 + $0x8] sm:$0xff]  ;;  %v6614_v19 = vcombine.high %v178_v13, %v182_v14  ;;  %v6613_v25 = vcombine.low %v178_v13, %v182_v14  ;;  %s7947_s0 = smov 2  }
  0x3b   :  { %v8027_v53 = vcombine.high %v8023_v15, %v8023_v15 }
  0x3c   :  { %1326 = vmatpush1.bf16.msra.mxu0 %v6547_v20  ;;  %1408 = vmatpush1.bf16.msra.mxu1 %v6549_v21  ;;  %v185_v20 = vld [vmem:[#allocation3 + $0x480] sm:$0xff] }
  0x3d   :  { %1327 = vmatprep.subr.bf16.mxu0 %v6556_v22  ;;  %1409 = vmatprep.subr.bf16.mxu1 %v6558_v23  ;;  %v189_v21 = vld [vmem:[#allocation3 + $0x4a0] sm:$0xff]  ;;  %v186_v22 = vld [vmem:[#allocation3 + $0x488] sm:$0xff] }
  0x3e   :  { %v190_v23 = vld [vmem:[#allocation3 + $0x4a8] sm:$0xff]  ;;  %v6620_v26 = vcombine.high %v185_v20, %v189_v21  ;;  %v6619_v32 = vcombine.low %v185_v20, %v189_v21 }
  0x3f   :  { %v6622_v27 = vcombine.high %v186_v22, %v190_v23  ;;  %v6621_v33 = vcombine.low %v186_v22, %v190_v23 }
  0x40   :  { %1328 = vmatpush1.bf16.msra.mxu0 %v6555_v28  ;;  %1410 = vmatpush1.bf16.msra.mxu1 %v6557_v29  ;;  %v193_v28 = vld [vmem:[#allocation3 + $0x4c0] sm:$0xff] }
  0x41   :  { %1329 = vmatprep.subr.bf16.mxu0 %v6564_v30  ;;  %1411 = vmatprep.subr.bf16.mxu1 %v6566_v31  ;;  %v197_v29 = vld [vmem:[#allocation3 + $0x4e0] sm:$0xff]  ;;  %v194_v30 = vld [vmem:[#allocation3 + $0x4c8] sm:$0xff] }
  0x42   :  { %v198_v31 = vld [vmem:[#allocation3 + $0x4e8] sm:$0xff]  ;;  %v6628_v34 = vcombine.high %v193_v28, %v197_v29  ;;  %v6627_v40 = vcombine.low %v193_v28, %v197_v29 }
  0x43   :  { %v6630_v35 = vcombine.high %v194_v30, %v198_v31  ;;  %v6629_v41 = vcombine.low %v194_v30, %v198_v31 }
  0x44   :  { %1330 = vmatpush1.bf16.msra.mxu0 %v6563_v36  ;;  %1412 = vmatpush1.bf16.msra.mxu1 %v6565_v37  ;;  %v201_v36 = vld [vmem:[#allocation3 + $0x500] sm:$0xff] }
  0x45   :  { %1331 = vmatprep.subr.bf16.mxu0 %v6572_v38  ;;  %1413 = vmatprep.subr.bf16.mxu1 %v6574_v39  ;;  %v205_v37 = vld [vmem:[#allocation3 + $0x520] sm:$0xff]  ;;  %v202_v38 = vld [vmem:[#allocation3 + $0x508] sm:$0xff] }
  0x46   :  { %v206_v39 = vld [vmem:[#allocation3 + $0x528] sm:$0xff]  ;;  %v6636_v42 = vcombine.high %v201_v36, %v205_v37  ;;  %v6635_v48 = vcombine.low %v201_v36, %v205_v37  ;;  %v56_v36 = vld [vmem:[#allocation3 + $0x78] sm:$0xff] }
  0x47   :  { %v6638_v43 = vcombine.high %v202_v38, %v206_v39  ;;  %v6637_v49 = vcombine.low %v202_v38, %v206_v39 }
  0x48   :  { %1332 = vmatpush1.bf16.msra.mxu0 %v6571_v44  ;;  %1414 = vmatpush1.bf16.msra.mxu1 %v6573_v45  ;;  %v209_v44 = vld [vmem:[#allocation3 + $0x540] sm:$0xff] }
  0x49   :  { %1333 = vmatprep.subr.bf16.mxu0 %v6580_v46  ;;  %1415 = vmatprep.subr.bf16.mxu1 %v6582_v47  ;;  %v213_v45 = vld [vmem:[#allocation3 + $0x560] sm:$0xff]  ;;  %v210_v46 = vld [vmem:[#allocation3 + $0x548] sm:$0xff] }
  0x4a   :  { %v214_v47 = vld [vmem:[#allocation3 + $0x568] sm:$0xff]  ;;  %v6644_v50 = vcombine.high %v209_v44, %v213_v45  ;;  %v6643_v58 = vcombine.low %v209_v44, %v213_v45  ;;  %v64_v44 = vld [vmem:[#allocation3 + $0xb8] sm:$0xff] }
  0x4b   :  { %v6646_v51 = vcombine.high %v210_v46, %v214_v47  ;;  %v6645_v59 = vcombine.low %v210_v46, %v214_v47 }
  0x4c   :  { %1334 = vmatpush1.bf16.msra.mxu0 %v6579_v52  ;;  %1416 = vmatpush1.bf16.msra.mxu1 %v6581_v54  ;;  %v217_v52 = vld [vmem:[#allocation3 + $0x580] sm:$0xff] }
  0x4d   :  { %1335 = vmatprep.subr.bf16.mxu0 %v6588_v55  ;;  %1417 = vmatprep.subr.bf16.mxu1 %v6590_v56  ;;  %v221_v54 = vld [vmem:[#allocation3 + $0x5a0] sm:$0xff]  ;;  %v218_v55 = vld [vmem:[#allocation3 + $0x588] sm:$0xff] }
  0x4e   :  { %v222_v56 = vld [vmem:[#allocation3 + $0x5a8] sm:$0xff]  ;;  %v6652_v60 = vcombine.high %v217_v52, %v221_v54  ;;  %v6651_v2 = vcombine.low %v217_v52, %v221_v54 }
  0x4f   :  { %v6654_v61 = vcombine.high %v218_v55, %v222_v56  ;;  %v6653_v3 = vcombine.low %v218_v55, %v222_v56 }
  0x50   :  { %1336 = vmatpush1.bf16.msra.mxu0 %v6587_v62  ;;  %1418 = vmatpush1.bf16.msra.mxu1 %v6589_v63  ;;  %v225_v62 = vld [vmem:[#allocation3 + $0x5c0] sm:$0xff] }
  0x51   :  { %1337 = vmatprep.subr.bf16.mxu0 %v6596_v0  ;;  %1419 = vmatprep.subr.bf16.mxu1 %v6598_v1  ;;  %v229_v63 = vld [vmem:[#allocation3 + $0x5e0] sm:$0xff]  ;;  %v226_v0 = vld [vmem:[#allocation3 + $0x5c8] sm:$0xff] }
  0x52   :  { %v230_v1 = vld [vmem:[#allocation3 + $0x5e8] sm:$0xff]  ;;  %v6660_v4 = vcombine.high %v225_v62, %v229_v63  ;;  %v6659_v10 = vcombine.low %v225_v62, %v229_v63 }
  0x53   :  { %v6662_v5 = vcombine.high %v226_v0, %v230_v1  ;;  %v6661_v11 = vcombine.low %v226_v0, %v230_v1  ;;  %v83_v1 = vld [vmem:[#allocation3 + $0x150] sm:$0xff] }
  0x54   :  { %1338 = vmatpush1.bf16.msra.mxu0 %v6595_v6  ;;  %1420 = vmatpush1.bf16.msra.mxu1 %v6597_v7  ;;  %v233_v6 = vld [vmem:[#allocation3 + $0x600] sm:$0xff] }
  0x55   :  { %1348 = vmatprep.subr.bf16.mxu0 %v6604_v8  ;;  %1430 = vmatprep.subr.bf16.mxu1 %v6606_v9  ;;  %v237_v7 = vld [vmem:[#allocation3 + $0x620] sm:$0xff]  ;;  %v234_v8 = vld [vmem:[#allocation3 + $0x608] sm:$0xff] }
  0x56   :  { %v238_v9 = vld [vmem:[#allocation3 + $0x628] sm:$0xff]  ;;  %v6668_v13 = vcombine.high %v233_v6, %v237_v7 }
  0x57   :  { %1340 = vmatmul.mubr.bf16.vlgmr.msra.gmra.mrb[0].mxu0 %v8018_v12  ;;  %1422 = vmatmul.mubr.bf16.vlgmr.msra.gmra.mrb[0].mxu1 %v8018_v12  ;;  %v6670_v14 = vcombine.high %v234_v8, %v238_v9 }
  0x58   :  { %1349 = vmatpush1.bf16.msra.mxu0 %v6603_v16  ;;  %1431 = vmatpush1.bf16.msra.mxu1 %v6605_v17  ;;  %v241_v16 = vld [vmem:[#allocation3 + $0x640] sm:$0x33]  ;;  %v242_v17 = vld [vmem:[#allocation3 + $0x648] sm:$0x33] }
  0x59   :  { %1350 = vmatprep.subr.bf16.mxu0 %v6612_v18  ;;  %1432 = vmatprep.subr.bf16.mxu1 %v6614_v19  ;;  %v6667_v18 = vcombine.low %v233_v6, %v237_v7  ;;  %v6669_v19 = vcombine.low %v234_v8, %v238_v9  ;;  %v6676_v20 = vcombine.high %v241_v16, %v241_v16  ;;  %v91_v9 = vld [vmem:[#allocation3 + $0x190] sm:$0xff] }
  0x5a   :  { %6684 = vmatprep.mubr.msk.bf16.mxu0 %vm1278_vm0, %v8027_v53  ;;  %6686 = vmatprep.mubr.msk.bf16.mxu1 %vm1278_vm0, %v8027_v53  ;;  %v6675_v21 = vcombine.low %v241_v16, %v241_v16  ;;  %v6678_v22 = vcombine.high %v242_v17, %v242_v17  ;;  %v6677_v23 = vcombine.low %v242_v17, %v242_v17 }
  0x5c   :  { %1351 = vmatpush1.bf16.msra.mxu0 %v6611_v24  ;;  %1433 = vmatpush1.bf16.msra.mxu1 %v6613_v25  ;;  %v43_v24 = vld [vmem:[#allocation3 + $0x10] sm:$0xff]  ;;  %v1284_v28 = vsel %vm1282_vm1, %v6675_v21, 0  ;;  %v1290_v30 = vsel %vm1282_vm1, %v6677_v23, 0  ;;  %v100_v21 = vld [vmem:[#allocation3 + $0x1d8] sm:$0xff] }
  0x5d   :  { %1352 = vmatprep.subr.bf16.mxu0 %v6620_v26  ;;  %1434 = vmatprep.subr.bf16.mxu1 %v6622_v27  ;;  %v47_v25 = vld [vmem:[#allocation3 + $0x30] sm:$0xff]  ;;  %v44_v26 = vld [vmem:[#allocation3 + $0x18] sm:$0xff] }
  0x5e   :  { %v48_v27 = vld [vmem:[#allocation3 + $0x38] sm:$0xff]  ;;  %v6480_v29 = vcombine.high %v43_v24, %v47_v25  ;;  %v6479_v37 = vcombine.low %v43_v24, %v47_v25 }
  0x5f   :  { %v6482_v31 = vcombine.high %v44_v26, %v48_v27  ;;  %v6481_v38 = vcombine.low %v44_v26, %v48_v27  ;;  %v107_v27 = vld [vmem:[#allocation3 + $0x210] sm:$0xff] }
  0x60   :  { %1353 = vmatpush1.bf16.msra.mxu0 %v6619_v32  ;;  %1435 = vmatpush1.bf16.msra.mxu1 %v6621_v33  ;;  %v51_v32 = vld [vmem:[#allocation3 + $0x50] sm:$0xff] }
  0x61   :  { %1354 = vmatprep.subr.bf16.mxu0 %v6628_v34  ;;  %1436 = vmatprep.subr.bf16.mxu1 %v6630_v35  ;;  %v55_v33 = vld [vmem:[#allocation3 + $0x70] sm:$0xff]  ;;  %v8041_v34 = vcombine.low %v8023_v15, %v8023_v15  ;;  %v52_v35 = vld [vmem:[#allocation3 + $0x58] sm:$0xff] }
  0x62   :  { %v6488_v39 = vcombine.high %v51_v32, %v55_v33  ;;  %v6487_v15 = vcombine.low %v51_v32, %v55_v33  ;;  %v6489_v45 = vcombine.low %v52_v35, %v56_v36 }
  0x64   :  { %1355 = vmatpush1.bf16.msra.mxu0 %v6627_v40  ;;  %1437 = vmatpush1.bf16.msra.mxu1 %v6629_v41  ;;  %v6490_v40 = vcombine.high %v52_v35, %v56_v36  ;;  %v59_v41 = vld [vmem:[#allocation3 + $0x90] sm:$0xff] }
  0x65   :  { %1356 = vmatprep.subr.bf16.mxu0 %v6636_v42  ;;  %1438 = vmatprep.subr.bf16.mxu1 %v6638_v43  ;;  %v63_v42 = vld [vmem:[#allocation3 + $0xb0] sm:$0xff]  ;;  %v60_v43 = vld [vmem:[#allocation3 + $0x98] sm:$0xff] }
  0x66   :  { %v6496_v46 = vcombine.high %v59_v41, %v63_v42  ;;  %v6498_v47 = vcombine.high %v60_v43, %v64_v44  ;;  %v6495_v52 = vcombine.low %v59_v41, %v63_v42  ;;  %v6497_v54 = vcombine.low %v60_v43, %v64_v44  ;;  %v115_v36 = vld [vmem:[#allocation3 + $0x250] sm:$0xff] }
  0x67   :  { %v123_v44 = vld [vmem:[#allocation3 + $0x290] sm:$0xff] }
  0x68   :  { %1357 = vmatpush1.bf16.msra.mxu0 %v6635_v48  ;;  %1439 = vmatpush1.bf16.msra.mxu1 %v6637_v49  ;;  %v67_v48 = vld [vmem:[#allocation3 + $0xd0] sm:$0xff] }
  0x69   :  { %1358 = vmatprep.subr.bf16.mxu0 %v6644_v50  ;;  %1440 = vmatprep.subr.bf16.mxu1 %v6646_v51  ;;  %v71_v49 = vld [vmem:[#allocation3 + $0xf0] sm:$0xff]  ;;  %v68_v50 = vld [vmem:[#allocation3 + $0xd8] sm:$0xff] }
  0x6a   :  { %v72_v51 = vld [vmem:[#allocation3 + $0xf8] sm:$0xff]  ;;  %v6504_v55 = vcombine.high %v67_v48, %v71_v49  ;;  %v6503_v62 = vcombine.low %v67_v48, %v71_v49 }
  0x6b   :  { %v6506_v56 = vcombine.high %v68_v50, %v72_v51  ;;  %v6505_v63 = vcombine.low %v68_v50, %v72_v51  ;;  %v131_v51 = vld [vmem:[#allocation3 + $0x2d0] sm:$0xff] }
  0x6c   :  { %1359 = vmatpush1.bf16.msra.mxu0 %v6643_v58  ;;  %1441 = vmatpush1.bf16.msra.mxu1 %v6645_v59  ;;  %v75_v58 = vld [vmem:[#allocation3 + $0x110] sm:$0xff] }
  0x6d   :  { %1360 = vmatprep.subr.bf16.mxu0 %v6652_v60  ;;  %1442 = vmatprep.subr.bf16.mxu1 %v6654_v61  ;;  %v79_v59 = vld [vmem:[#allocation3 + $0x130] sm:$0xff]  ;;  %v76_v60 = vld [vmem:[#allocation3 + $0x118] sm:$0xff] }
  0x6e   :  { %v80_v61 = vld [vmem:[#allocation3 + $0x138] sm:$0xff]  ;;  %v6512_v0 = vcombine.high %v75_v58, %v79_v59 }
  0x6f   :  { %v6513_v6 = vcombine.low %v76_v60, %v80_v61 }
  0x70   :  { %1361 = vmatpush1.bf16.msra.mxu0 %v6651_v2  ;;  %1443 = vmatpush1.bf16.msra.mxu1 %v6653_v3  ;;  %v87_v2 = vld [vmem:[#allocation3 + $0x170] sm:$0xff]  ;;  %v84_v3 = vld [vmem:[#allocation3 + $0x158] sm:$0xff] }
  0x71   :  { %1362 = vmatprep.subr.bf16.mxu0 %v6660_v4  ;;  %1444 = vmatprep.subr.bf16.mxu1 %v6662_v5  ;;  %v88_v4 = vld [vmem:[#allocation3 + $0x178] sm:$0xff]  ;;  %v6511_v5 = vcombine.low %v75_v58, %v79_v59  ;;  %v6520_v7 = vcombine.high %v83_v1, %v87_v2 }
  0x72   :  { %v6522_v8 = vcombine.high %v84_v3, %v88_v4  ;;  %v6521_v16 = vcombine.low %v84_v3, %v88_v4  ;;  %v147_v4 = vld [vmem:[#allocation3 + $0x350] sm:$0xff] }
  0x74   :  { %1363 = vmatpush1.bf16.msra.mxu0 %v6659_v10  ;;  %1445 = vmatpush1.bf16.msra.mxu1 %v6661_v11  ;;  %v95_v10 = vld [vmem:[#allocation3 + $0x1b0] sm:$0xff]  ;;  %v92_v11 = vld [vmem:[#allocation3 + $0x198] sm:$0xff] }
  0x75   :  { %1364 = vmatprep.subr.bf16.mxu0 %v6668_v13  ;;  %1446 = vmatprep.subr.bf16.mxu1 %v6670_v14  ;;  %v96_v13 = vld [vmem:[#allocation3 + $0x1b8] sm:$0xff]  ;;  %v6519_v14 = vcombine.low %v83_v1, %v87_v2  ;;  %v6528_v17 = vcombine.high %v91_v9, %v95_v10  ;;  %v6527_v23 = vcombine.low %v91_v9, %v95_v10 }
  0x76   :  { %v6529_v24 = vcombine.low %v92_v11, %v96_v13 }
  0x78   :  { %1365 = vmatpush1.bf16.msra.mxu0 %v6667_v18  ;;  %1447 = vmatpush1.bf16.msra.mxu1 %v6669_v19  ;;  %v6530_v18 = vcombine.high %v92_v11, %v96_v13  ;;  %v99_v19 = vld [vmem:[#allocation3 + $0x1d0] sm:$0xff] }
  0x79   :  { %6683 = vmatprep.subr.msk.bf16.mxu0 %vm1282_vm1, %v6676_v20  ;;  %6685 = vmatprep.subr.msk.bf16.mxu1 %vm1282_vm1, %v6678_v22  ;;  %v103_v20 = vld [vmem:[#allocation3 + $0x1f0] sm:$0xff]  ;;  %v104_v22 = vld [vmem:[#allocation3 + $0x1f8] sm:$0xff] }
  0x7a   :  { %v6536_v25 = vcombine.high %v99_v19, %v103_v20  ;;  %v6538_v26 = vcombine.high %v100_v21, %v104_v22  ;;  %v6537_v32 = vcombine.low %v100_v21, %v104_v22  ;;  %v155_v13 = vld [vmem:[#allocation3 + $0x390] sm:$0xff] }
  0x7b   :  { %v163_v22 = vld [vmem:[#allocation3 + $0x3d0] sm:$0xff] }
  0x7c   :  { %1367 = vmatpush1.bf16.msra.mxu0 %v1284_v28  ;;  %1449 = vmatpush1.bf16.msra.mxu1 %v1290_v30  ;;  %v111_v28 = vld [vmem:[#allocation3 + $0x230] sm:$0xff]  ;;  %v112_v30 = vld [vmem:[#allocation3 + $0x238] sm:$0xff] }
  0x7d   :  { %1471 = vmatprep.subr.bf16.mxu0 %v6480_v29  ;;  %1553 = vmatprep.subr.bf16.mxu1 %v6482_v31  ;;  %v108_v29 = vld [vmem:[#allocation3 + $0x218] sm:$0xff]  ;;  %v6535_v31 = vcombine.low %v99_v19, %v103_v20  ;;  %v6544_v33 = vcombine.high %v107_v27, %v111_v28 }
  0x7e   :  { %v6546_v35 = vcombine.high %v108_v29, %v112_v30  ;;  %v6545_v41 = vcombine.low %v108_v29, %v112_v30  ;;  %v171_v30 = vld [vmem:[#allocation3 + $0x410] sm:$0xff] }
  0x7f   :  { %1381 = vmatmul.mubr.bf16.vlgmr.msra.gmra.mrb[0].mxu0 %v8041_v34  ;;  %1463 = vmatmul.mubr.bf16.vlgmr.msra.gmra.mrb[0].mxu1 %v8041_v34 }
  0x80   :  { %1472 = vmatpush1.bf16.msra.mxu0 %v6479_v37  ;;  %1554 = vmatpush1.bf16.msra.mxu1 %v6481_v38  ;;  %v119_v37 = vld [vmem:[#allocation3 + $0x270] sm:$0xff]  ;;  %v116_v38 = vld [vmem:[#allocation3 + $0x258] sm:$0xff] }
  0x81   :  { %1473 = vmatprep.subr.bf16.mxu0 %v6488_v39  ;;  %1555 = vmatprep.subr.bf16.mxu1 %v6490_v40  ;;  %v120_v39 = vld [vmem:[#allocation3 + $0x278] sm:$0xff]  ;;  %v6543_v40 = vcombine.low %v107_v27, %v111_v28  ;;  %v6552_v42 = vcombine.high %v115_v36, %v119_v37 }
  0x82   :  { %1503 = vmatprep.mubr.bf16.mxu0 %v8012_v57  ;;  %1585 = vmatprep.mubr.bf16.mxu1 %v8012_v57  ;;  %v6514_v57 = vcombine.high %v76_v60, %v80_v61  ;;  %v6554_v43 = vcombine.high %v116_v38, %v120_v39  ;;  %v6553_v48 = vcombine.low %v116_v38, %v120_v39  ;;  %v139_v61 = vld [vmem:[#allocation3 + $0x310] sm:$0xff] }
  0x83   :  { %v179_v39 = vld [vmem:[#allocation3 + $0x450] sm:$0xff] }
  0x84   :  { %1474 = vmatpush1.bf16.msra.mxu0 %v6487_v15  ;;  %1556 = vmatpush1.bf16.msra.mxu1 %v6489_v45  ;;  %v127_v15 = vld [vmem:[#allocation3 + $0x2b0] sm:$0xff]  ;;  %v124_v45 = vld [vmem:[#allocation3 + $0x298] sm:$0xff] }
  0x85   :  { %1475 = vmatprep.subr.bf16.mxu0 %v6496_v46  ;;  %1557 = vmatprep.subr.bf16.mxu1 %v6498_v47  ;;  %v128_v46 = vld [vmem:[#allocation3 + $0x2b8] sm:$0xff]  ;;  %v6551_v47 = vcombine.low %v115_v36, %v119_v37  ;;  %v6560_v49 = vcombine.high %v123_v44, %v127_v15 }
  0x86   :  { %v6562_v50 = vcombine.high %v124_v45, %v128_v46  ;;  %v6561_v58 = vcombine.low %v124_v45, %v128_v46  ;;  %v187_v46 = vld [vmem:[#allocation3 + $0x490] sm:$0xff] }
  0x88   :  { %1476 = vmatpush1.bf16.msra.mxu0 %v6495_v52  ;;  %1558 = vmatpush1.bf16.msra.mxu1 %v6497_v54  ;;  %v135_v52 = vld [vmem:[#allocation3 + $0x2f0] sm:$0xff]  ;;  %v132_v54 = vld [vmem:[#allocation3 + $0x2d8] sm:$0xff] }
  0x89   :  { %1477 = vmatprep.subr.bf16.mxu0 %v6504_v55  ;;  %1559 = vmatprep.subr.bf16.mxu1 %v6506_v56  ;;  %v136_v55 = vld [vmem:[#allocation3 + $0x2f8] sm:$0xff]  ;;  %v6559_v56 = vcombine.low %v123_v44, %v127_v15  ;;  %v6568_v59 = vcombine.high %v131_v51, %v135_v52 }
  0x8a   :  { %v6570_v60 = vcombine.high %v132_v54, %v136_v55  ;;  %v6569_v1 = vcombine.low %v132_v54, %v136_v55  ;;  %v195_v55 = vld [vmem:[#allocation3 + $0x4d0] sm:$0xff] }
  0x8c   :  { %1478 = vmatpush1.bf16.msra.mxu0 %v6503_v62  ;;  %1560 = vmatpush1.bf16.msra.mxu1 %v6505_v63  ;;  %v143_v62 = vld [vmem:[#allocation3 + $0x330] sm:$0xff]  ;;  %v140_v63 = vld [vmem:[#allocation3 + $0x318] sm:$0xff] }
  0x8d   :  { %1479 = vmatprep.subr.bf16.mxu0 %v6512_v0  ;;  %1561 = vmatprep.subr.bf16.mxu1 %v6514_v57  ;;  %v144_v0 = vld [vmem:[#allocation3 + $0x338] sm:$0xff]  ;;  %v6567_v57 = vcombine.low %v131_v51, %v135_v52  ;;  %v6576_v2 = vcombine.high %v139_v61, %v143_v62 }
  0x8e   :  { %v6578_v3 = vcombine.high %v140_v63, %v144_v0  ;;  %v6577_v9 = vcombine.low %v140_v63, %v144_v0  ;;  %v203_v63 = vld [vmem:[#allocation3 + $0x510] sm:$0xff] }
  0x8f   :  { %v207_v0 = vld [vmem:[#allocation3 + $0x530] sm:$0xff] }
  0x90   :  { %1480 = vmatpush1.bf16.msra.mxu0 %v6511_v5  ;;  %1562 = vmatpush1.bf16.msra.mxu1 %v6513_v6  ;;  %v151_v5 = vld [vmem:[#allocation3 + $0x370] sm:$0xff]  ;;  %v148_v6 = vld [vmem:[#allocation3 + $0x358] sm:$0xff] }
  0x91   :  { %1481 = vmatprep.subr.bf16.mxu0 %v6520_v7  ;;  %1563 = vmatprep.subr.bf16.mxu1 %v6522_v8  ;;  %v152_v7 = vld [vmem:[#allocation3 + $0x378] sm:$0xff]  ;;  %v6575_v8 = vcombine.low %v139_v61, %v143_v62  ;;  %v6584_v10 = vcombine.high %v147_v4, %v151_v5 }
  0x92   :  { %v6586_v11 = vcombine.high %v148_v6, %v152_v7  ;;  %v6585_v19 = vcombine.low %v148_v6, %v152_v7  ;;  %v215_v6 = vld [vmem:[#allocation3 + $0x570] sm:$0xff]  ;;  %v212_v7 = vld [vmem:[#allocation3 + $0x558] sm:$0xff] }
  0x94   :  { %1482 = vmatpush1.bf16.msra.mxu0 %v6519_v14  ;;  %1564 = vmatpush1.bf16.msra.mxu1 %v6521_v16  ;;  %v159_v14 = vld [vmem:[#allocation3 + $0x3b0] sm:$0xff]  ;;  %v156_v16 = vld [vmem:[#allocation3 + $0x398] sm:$0xff] }
  0x95   :  { %1483 = vmatprep.subr.bf16.mxu0 %v6528_v17  ;;  %1565 = vmatprep.subr.bf16.mxu1 %v6530_v18  ;;  %v160_v17 = vld [vmem:[#allocation3 + $0x3b8] sm:$0xff]  ;;  %v6583_v18 = vcombine.low %v147_v4, %v151_v5  ;;  %v6592_v20 = vcombine.high %v155_v13, %v159_v14  ;;  %v6640_v4 = vcombine.high %v203_v63, %v207_v0  ;;  %v211_v5 = vld [vmem:[#allocation3 + $0x550] sm:$0xff] }
  0x96   :  { %v6594_v21 = vcombine.high %v156_v16, %v160_v17  ;;  %v6593_v27 = vcombine.low %v156_v16, %v160_v17  ;;  %v223_v16 = vld [vmem:[#allocation3 + $0x5b0] sm:$0xff]  ;;  %v220_v17 = vld [vmem:[#allocation3 + $0x598] sm:$0xff] }
  0x98   :  { %1484 = vmatpush1.bf16.msra.mxu0 %v6527_v23  ;;  %1566 = vmatpush1.bf16.msra.mxu1 %v6529_v24  ;;  %v167_v23 = vld [vmem:[#allocation3 + $0x3f0] sm:$0xff]  ;;  %v164_v24 = vld [vmem:[#allocation3 + $0x3d8] sm:$0xff] }
  0x99   :  { %1485 = vmatprep.subr.bf16.mxu0 %v6536_v25  ;;  %1567 = vmatprep.subr.bf16.mxu1 %v6538_v26  ;;  %v168_v25 = vld [vmem:[#allocation3 + $0x3f8] sm:$0xff]  ;;  %v6591_v26 = vcombine.low %v155_v13, %v159_v14  ;;  %v6600_v28 = vcombine.high %v163_v22, %v167_v23  ;;  %v219_v14 = vld [vmem:[#allocation3 + $0x590] sm:$0xff] }
  0x9a   :  { %v6602_v29 = vcombine.high %v164_v24, %v168_v25  ;;  %v6601_v36 = vcombine.low %v164_v24, %v168_v25  ;;  %v231_v24 = vld [vmem:[#allocation3 + $0x5f0] sm:$0xff]  ;;  %v228_v25 = vld [vmem:[#allocation3 + $0x5d8] sm:$0xff] }
  0x9c   :  { %1486 = vmatpush1.bf16.msra.mxu0 %v6535_v31  ;;  %1568 = vmatpush1.bf16.msra.mxu1 %v6537_v32  ;;  %v175_v31 = vld [vmem:[#allocation3 + $0x430] sm:$0xff]  ;;  %v172_v32 = vld [vmem:[#allocation3 + $0x418] sm:$0xff] }
  0x9d   :  { %1487 = vmatprep.subr.bf16.mxu0 %v6544_v33  ;;  %1569 = vmatprep.subr.bf16.mxu1 %v6546_v35  ;;  %v176_v33 = vld [vmem:[#allocation3 + $0x438] sm:$0xff]  ;;  %v6599_v35 = vcombine.low %v163_v22, %v167_v23  ;;  %v6608_v37 = vcombine.high %v171_v30, %v175_v31  ;;  %v227_v23 = vld [vmem:[#allocation3 + $0x5d0] sm:$0xff] }
  0x9e   :  { %v6610_v38 = vcombine.high %v172_v32, %v176_v33  ;;  %v6609_v44 = vcombine.low %v172_v32, %v176_v33  ;;  %v239_v32 = vld [vmem:[#allocation3 + $0x630] sm:$0xff]  ;;  %v236_v33 = vld [vmem:[#allocation3 + $0x618] sm:$0xff] }
  0xa0   :  { %1488 = vmatpush1.bf16.msra.mxu0 %v6543_v40  ;;  %1570 = vmatpush1.bf16.msra.mxu1 %v6545_v41  ;;  %v183_v40 = vld [vmem:[#allocation3 + $0x470] sm:$0xff]  ;;  %v180_v41 = vld [vmem:[#allocation3 + $0x458] sm:$0xff] }
  0xa1   :  { %1489 = vmatprep.subr.bf16.mxu0 %v6552_v42  ;;  %1571 = vmatprep.subr.bf16.mxu1 %v6554_v43  ;;  %v184_v42 = vld [vmem:[#allocation3 + $0x478] sm:$0xff]  ;;  %v6607_v43 = vcombine.low %v171_v30, %v175_v31  ;;  %v6616_v15 = vcombine.high %v179_v39, %v183_v40  ;;  %v235_v31 = vld [vmem:[#allocation3 + $0x610] sm:$0xff] }
  0xa2   :  { %v6618_v45 = vcombine.high %v180_v41, %v184_v42  ;;  %v6617_v51 = vcombine.low %v180_v41, %v184_v42  ;;  %v244_v41 = vld [vmem:[#allocation3 + $0x658] sm:$0x33]  ;;  %v6671_v42 = vcombine.low %v235_v31, %v239_v32 }
  0xa4   :  { %1490 = vmatpush1.bf16.msra.mxu0 %v6551_v47  ;;  %1572 = vmatpush1.bf16.msra.mxu1 %v6553_v48  ;;  %v191_v47 = vld [vmem:[#allocation3 + $0x4b0] sm:$0xff]  ;;  %v188_v48 = vld [vmem:[#allocation3 + $0x498] sm:$0xff] }
  0xa5   :  { %1491 = vmatprep.subr.bf16.mxu0 %v6560_v49  ;;  %1573 = vmatprep.subr.bf16.mxu1 %v6562_v50  ;;  %v192_v49 = vld [vmem:[#allocation3 + $0x4b8] sm:$0xff]  ;;  %v6615_v50 = vcombine.low %v179_v39, %v183_v40  ;;  %v6624_v52 = vcombine.high %v187_v46, %v191_v47  ;;  %v243_v40 = vld [vmem:[#allocation3 + $0x650] sm:$0x33] }
  0xa6   :  { %v6626_v54 = vcombine.high %v188_v48, %v192_v49 }
  0xa8   :  { %1492 = vmatpush1.bf16.msra.mxu0 %v6559_v56  ;;  %1574 = vmatpush1.bf16.msra.mxu1 %v6561_v58  ;;  %v199_v56 = vld [vmem:[#allocation3 + $0x4f0] sm:$0xff]  ;;  %v196_v58 = vld [vmem:[#allocation3 + $0x4d8] sm:$0xff] }
  0xa9   :  { %1493 = vmatprep.subr.bf16.mxu0 %v6568_v59  ;;  %1575 = vmatprep.subr.bf16.mxu1 %v6570_v60  ;;  %v200_v59 = vld [vmem:[#allocation3 + $0x4f8] sm:$0xff]  ;;  %v6623_v60 = vcombine.low %v187_v46, %v191_v47  ;;  %v6632_v61 = vcombine.high %v195_v55, %v199_v56  ;;  %v6681_v46 = vcombine.low %v244_v41, %v244_v41 }
  0xaa   :  { %v6634_v62 = vcombine.high %v196_v58, %v200_v59 }
  0xac   :  { %1494 = vmatpush1.bf16.msra.mxu0 %v6567_v57  ;;  %1576 = vmatpush1.bf16.msra.mxu1 %v6569_v1  ;;  %v204_v57 = vld [vmem:[#allocation3 + $0x518] sm:$0xff] }
  0xad   :  { %1495 = vmatprep.subr.bf16.mxu0 %v6576_v2  ;;  %1577 = vmatprep.subr.bf16.mxu1 %v6578_v3  ;;  %v208_v1 = vld [vmem:[#allocation3 + $0x538] sm:$0xff]  ;;  %v6631_v2 = vcombine.low %v195_v55, %v199_v56  ;;  %v6633_v3 = vcombine.low %v196_v58, %v200_v59 }
  0xb0   :  { %1496 = vmatpush1.bf16.msra.mxu0 %v6575_v8  ;;  %1578 = vmatpush1.bf16.msra.mxu1 %v6577_v9  ;;  %v216_v8 = vld [vmem:[#allocation3 + $0x578] sm:$0xff]  ;;  %v6639_v9 = vcombine.low %v203_v63, %v207_v0 }
  0xb1   :  { %1497 = vmatprep.subr.bf16.mxu0 %v6584_v10  ;;  %1579 = vmatprep.subr.bf16.mxu1 %v6586_v11  ;;  %v6641_v10 = vcombine.low %v204_v57, %v208_v1  ;;  %v6648_v11 = vcombine.high %v211_v5, %v215_v6  ;;  %v6650_v13 = vcombine.high %v212_v7, %v216_v8 }
  0xb4   :  { %1498 = vmatpush1.bf16.msra.mxu0 %v6583_v18  ;;  %1580 = vmatpush1.bf16.msra.mxu1 %v6585_v19  ;;  %v224_v18 = vld [vmem:[#allocation3 + $0x5b8] sm:$0xff]  ;;  %v6647_v19 = vcombine.low %v211_v5, %v215_v6 }
  0xb5   :  { %1499 = vmatprep.subr.bf16.mxu0 %v6592_v20  ;;  %1581 = vmatprep.subr.bf16.mxu1 %v6594_v21  ;;  %v6649_v20 = vcombine.low %v212_v7, %v216_v8  ;;  %v6656_v21 = vcombine.high %v219_v14, %v223_v16  ;;  %v6658_v22 = vcombine.high %v220_v17, %v224_v18 }
  0xb8   :  { %1500 = vmatpush1.bf16.msra.mxu0 %v6591_v26  ;;  %1582 = vmatpush1.bf16.msra.mxu1 %v6593_v27  ;;  %v232_v26 = vld [vmem:[#allocation3 + $0x5f8] sm:$0xff]  ;;  %v6655_v27 = vcombine.low %v219_v14, %v223_v16 }
  0xb9   :  { %1501 = vmatprep.subr.bf16.mxu0 %v6600_v28  ;;  %1583 = vmatprep.subr.bf16.mxu1 %v6602_v29  ;;  %v6657_v28 = vcombine.low %v220_v17, %v224_v18  ;;  %v6664_v29 = vcombine.high %v227_v23, %v231_v24  ;;  %v6666_v30 = vcombine.high %v228_v25, %v232_v26 }
  0xbc   :  { %1502 = vmatpush1.bf16.msra.mxu0 %v6599_v35  ;;  %1584 = vmatpush1.bf16.msra.mxu1 %v6601_v36  ;;  %v240_v35 = vld [vmem:[#allocation3 + $0x638] sm:$0xff]  ;;  %v6663_v36 = vcombine.low %v227_v23, %v231_v24 }
  0xbd   :  { %1512 = vmatprep.subr.bf16.mxu0 %v6608_v37  ;;  %1594 = vmatprep.subr.bf16.mxu1 %v6610_v38  ;;  %v6665_v37 = vcombine.low %v228_v25, %v232_v26  ;;  %v6672_v38 = vcombine.high %v235_v31, %v239_v32  ;;  %v6674_v39 = vcombine.high %v236_v33, %v240_v35 }
  0xbf   :  { %1504 = vmatmul.mubr.bf16.vlgmr.msra.gmra.mrb[4].mxu0 %v8018_v12  ;;  %1586 = vmatmul.mubr.bf16.vlgmr.msra.gmra.mrb[4].mxu1 %v8018_v12  ;;  %v6625_v12 = vcombine.low %v188_v48, %v192_v49  ;;  %v1302_v48 = vsel %vm1282_vm1, %v6681_v46, 0 }
  0xc0   :  { %1513 = vmatpush1.bf16.msra.mxu0 %v6607_v43  ;;  %1595 = vmatpush1.bf16.msra.mxu1 %v6609_v44  ;;  %v6673_v43 = vcombine.low %v236_v33, %v240_v35  ;;  %v6680_v44 = vcombine.high %v243_v40, %v243_v40 }
  0xc1   :  { %1514 = vmatprep.subr.bf16.mxu0 %v6616_v15  ;;  %1596 = vmatprep.subr.bf16.mxu1 %v6618_v45  ;;  %v6679_v15 = vcombine.low %v243_v40, %v243_v40  ;;  %v6682_v45 = vcombine.high %v244_v41, %v244_v41 }
  0xc2   :  { %6688 = vmatprep.mubr.msk.bf16.mxu0 %vm1278_vm0, %v8027_v53  ;;  %6690 = vmatprep.mubr.msk.bf16.mxu1 %vm1278_vm0, %v8027_v53  ;;  %v6642_v53 = vcombine.high %v204_v57, %v208_v1  ;;  %vm7955_vm0 = vmmov 0  }
  0xc3   :  { %v1296_v47 = vsel %vm1282_vm1, %v6679_v15, 0 }
  0xc4   :  { %1515 = vmatpush1.bf16.msra.mxu0 %v6615_v50  ;;  %1597 = vmatpush1.bf16.msra.mxu1 %v6617_v51 }
  0xc5   :  { %1516 = vmatprep.subr.bf16.mxu0 %v6624_v52  ;;  %1598 = vmatprep.subr.bf16.mxu1 %v6626_v54 }
  0xc8   :  { %1517 = vmatpush1.bf16.msra.mxu0 %v6623_v60  ;;  %1599 = vmatpush1.bf16.msra.mxu1 %v6625_v12 }
  0xc9   :  { %1518 = vmatprep.subr.bf16.mxu0 %v6632_v61  ;;  %1600 = vmatprep.subr.bf16.mxu1 %v6634_v62 }
  0xcc   :  { %1519 = vmatpush1.bf16.msra.mxu0 %v6631_v2  ;;  %1601 = vmatpush1.bf16.msra.mxu1 %v6633_v3 }
  0xcd   :  { %1520 = vmatprep.subr.bf16.mxu0 %v6640_v4  ;;  %1602 = vmatprep.subr.bf16.mxu1 %v6642_v53  ;;  %v1636_v53 = vlaneseq }
  0xcf   :  { %v8107_v6 = vand.u32 127, %v1636_v53 }
  0xd0   :  { %1521 = vmatpush1.bf16.msra.mxu0 %v6639_v9  ;;  %1603 = vmatpush1.bf16.msra.mxu1 %v6641_v10 }
  0xd1   :  { %1522 = vmatprep.subr.bf16.mxu0 %v6648_v11  ;;  %1604 = vmatprep.subr.bf16.mxu1 %v6650_v13  ;;  %vm1874_vm2 = vcmp.lt.s32.totalorder %v8107_v6, 2  ;;  %vm1805_vm3 = vcmp.lt.s32.totalorder %v8107_v6, 3  ;;  %vm1943_vm4 = vcmp.lt.s32.totalorder %v8107_v6, 1  ;;  %vm1645_vm5 = vcmp.ge.s32.totalorder %v8107_v6, 3 }
  0xd2   :  { %vm1669_vm6 = vcmp.ge.s32.totalorder %v8107_v6, 2  ;;  %vm1693_vm7 = vcmp.ge.s32.totalorder %v8107_v6, 1  ;;  %vm2048_vm8 = vcmp.lt.s32.totalorder %v8107_v6, 127  ;;  %vm2117_vm9 = vcmp.lt.s32.totalorder %v8107_v6, 126 }
  0xd3   :  { %vm2186_vm10 = vcmp.lt.s32.totalorder %v8107_v6, 125 }
  0xd4   :  { %1523 = vmatpush1.bf16.msra.mxu0 %v6647_v19  ;;  %1605 = vmatpush1.bf16.msra.mxu1 %v6649_v20 }
  0xd5   :  { %1524 = vmatprep.subr.bf16.mxu0 %v6656_v21  ;;  %1606 = vmatprep.subr.bf16.mxu1 %v6658_v22  ;;  %v7953_v21 = vmov 0  }
  0xd6   :  { %7500 = vset.pattern.permute.xlu0 %v7953_v21 }
  0xd8   :  { %1525 = vmatpush1.bf16.msra.mxu0 %v6655_v27  ;;  %1607 = vmatpush1.bf16.msra.mxu1 %v6657_v28 }
  0xd9   :  { %1526 = vmatprep.subr.bf16.mxu0 %v6664_v29  ;;  %1608 = vmatprep.subr.bf16.mxu1 %v6666_v30 }
  0xdc   :  { %1527 = vmatpush1.bf16.msra.mxu0 %v6663_v36  ;;  %1609 = vmatpush1.bf16.msra.mxu1 %v6665_v37 }
  0xdd   :  { %1528 = vmatprep.subr.bf16.mxu0 %v6672_v38  ;;  %1610 = vmatprep.subr.bf16.mxu1 %v6674_v39 }
  0xe0   :  { %1529 = vmatpush1.bf16.msra.mxu0 %v6671_v42  ;;  %1611 = vmatpush1.bf16.msra.mxu1 %v6673_v43 }
  0xe1   :  { %6687 = vmatprep.subr.msk.bf16.mxu0 %vm1282_vm1, %v6680_v44  ;;  %6689 = vmatprep.subr.msk.bf16.mxu1 %vm1282_vm1, %v6682_v45  ;;  %v7954_v44 = vmov 0.0   ;;  %vm2627_vm1 = vcmask 7168  }
  0xe2   :  { %v8185_v15 = vsel %vm1645_vm5, 1.0, %v7954_v44  ;;  %v8192_v46 = vsel %vm1669_vm6, 1.0, %v7954_v44  ;;  %vm2629_vm5 = vcmask 64512  }
  0xe4   :  { %1531 = vmatpush1.bf16.msra.mxu0 %v1296_v47  ;;  %1613 = vmatpush1.bf16.msra.mxu1 %v1302_v48 }
  0xe7   :  { %1545 = vmatmul.mubr.bf16.vlgmr.msra.gmra.mrb[4].mxu0 %v8041_v34  ;;  %1627 = vmatmul.mubr.bf16.vlgmr.msra.gmra.mrb[4].mxu1 %v8041_v34 }
  0xe8   :  { %2469 = vmatprep.mubr.bf16.mxu0 %v7953_v21  ;;  %2510 = vmatprep.mubr.bf16.mxu1 %v7953_v21 }
 0x152   :  { %v8059_v49 = vpop.f32.mrb[0].mxu0  ;;  %v8061_v50 = vpop.f32.mrb[0].mxu1 }
 0x153   :  { %1858 = vrot.lane.b32.xlu1 %v8059_v49, %s7947_s0  ;;  %1789 = vrot.lane.b32.xlu0 %v8059_v49, %s7948_s14  ;;  %v8067_v51 = vpop.f32.mrb[1].mxu0  ;;  %v8069_v52 = vpop.f32.mrb[1].mxu1 }
 0x154   :  { %v1386_v54 = vpop.f32.mrb[2].mxu0  ;;  %v7414_v34 = vpack.i.bf16 %v8061_v50, %v8067_v51  ;;  %v1468_v55 = vpop.f32.mrb[2].mxu1 }
 0x155   :  { %v1387_v56 = vpop.f32.mrb[3].mxu0  ;;  %v1469_v58 = vpop.f32.mrb[3].mxu1 }
 0x157   :  { %1927 = vrot.lane.b32.xlu0 %v8059_v49, %s7949_s15  ;;  %7415 = vrot.lane.b32.xlu1 %v7414_v34, %s7947_s0 }
 0x15b   :  { %7430 = vrot.lane.b32.xlu1 %v7414_v34, %s7950_s16  ;;  %7410 = vrot.lane.b32.xlu0 %v7414_v34, %s7948_s14 }
 0x15f   :  { %7420 = vrot.lane.b32.xlu0 %v7414_v34, %s7949_s15 }
 0x163   :  { %7425 = vrot.lane.b32.xlu0 %v7414_v34, %s7951_s17 }
 0x1ba   :  { %v8080_v59 = vpop.f32.mrb[4].mxu0  ;;  %v8082_v60 = vpop.f32.mrb[4].mxu1 }
 0x1bb   :  { %v8084_v12 = vpop.f32.mrb[5].mxu0  ;;  %v7439_v61 = vpack.i.bf16 %v8080_v59, %v8069_v52  ;;  %v8088_v62 = vpop.f32.mrb[5].mxu1 }
 0x1bc   :  { %v1550_v63 = vpop.f32.mrb[6].mxu0  ;;  %v7469_v0 = vpack.i.bf16 %v8082_v60, %v8084_v12  ;;  %v1632_v57 = vpop.f32.mrb[6].mxu1 }
 0x1bd   :  { %7440 = vrot.lane.b32.xlu1 %v7439_v61, %s7947_s0  ;;  %7435 = vrot.lane.b32.xlu0 %v7439_v61, %s7948_s14  ;;  %v1551_v1 = vpop.f32.mrb[7].mxu0  ;;  %v1633_v2 = vpop.f32.mrb[7].mxu1  ;;  %v8214_v63 = vsel %vm1693_vm7, 1.0, %v7954_v44 }
 0x1c1   :  { %7445 = vrot.lane.b32.xlu1 %v7439_v61, %s7949_s15  ;;  %1803 = vrot.lane.b32.xlu0 %v8088_v62, %s7948_s14 }
 0x1c5   :  { %v8097_v3 = vpop.permute.xlu1 %1858  ;;  %v8099_v4 = vpop.permute.xlu0 %1789  ;;  %2101 = vrot.lane.b32.xlu1 %v8059_v49, %s7950_s16  ;;  %2032 = vrot.lane.b32.xlu0 %v8059_v49, %s7951_s17 }
 0x1c9   :  { %v8105_v5 = vpop.permute.xlu0 %1927  ;;  %v7416_v7 = vpop.permute.xlu1 %7415  ;;  %1872 = vrot.lane.b32.xlu1 %v8088_v62, %s7947_s0  ;;  %7450 = vrot.lane.b32.xlu0 %v7439_v61, %s7951_s17 }
 0x1ca   :  { %v7418_v8 = vunpack.i.h.bf16 %v7416_v7  ;;  %v7417_v9 = vunpack.i.l.bf16 %v7416_v7 }
 0x1cc   :  { %v1880_v14 = vsel %vm1874_vm2, %v7417_v9, %v7418_v8  ;;  %v1881_v18 = vsel %vm1874_vm2, %v8097_v3, %v7417_v9 }
 0x1cd   :  { %v7411_v10 = vpop.permute.xlu0 %7410  ;;  %1941 = vrot.lane.b32.xlu1 %v8088_v62, %s7949_s15  ;;  %2170 = vrot.lane.b32.xlu0 %v8059_v49, %s7952_s18  ;;  %v8146_v23 = vpop.permute.xlu1 %7430 }
 0x1ce   :  { %v7413_v11 = vunpack.i.h.bf16 %v7411_v10  ;;  %v7412_v13 = vunpack.i.l.bf16 %v7411_v10  ;;  %v7433_v58 = vunpack.i.h.bf16 %v8146_v23 }
 0x1d0   :  { %v1811_v16 = vsel %vm1805_vm3, %v7412_v13, %v7413_v11  ;;  %v1812_v17 = vsel %vm1805_vm3, %v8099_v4, %v7412_v13 }
 0x1d1   :  { %7455 = vrot.lane.b32.xlu1 %v7439_v61, %s7950_s16  ;;  %7465 = vrot.lane.b32.xlu0 %v7439_v61, %s7952_s18  ;;  %v7192_v19 = vpack.c.bf16 %v1881_v18, %v1812_v17  ;;  %v7193_v20 = vpack.c.bf16 %v1880_v14, %v1811_v16  ;;  %v7421_v22 = vpop.permute.xlu0 %7420  ;;  %v7432_v61 = vunpack.i.l.bf16 %v8146_v23 }
 0x1d2   :  { %v7423_v29 = vunpack.i.h.bf16 %v7421_v22  ;;  %v7422_v30 = vunpack.i.l.bf16 %v7421_v22 }
 0x1d3   :  { %2437 = vmatprep.subr.bf16.mxu0 %v7192_v19  ;;  %v2123_v9 = vsel %vm2117_vm9, %v7432_v61, %v7433_v58 }
 0x1d4   :  { %v1949_v38 = vsel %vm1943_vm4, %v7422_v30, %v7423_v29  ;;  %v1950_v56 = vsel %vm1943_vm4, %v8105_v5, %v7422_v30 }
 0x1d5   :  { %7460 = vrot.lane.b32.xlu1 %v7414_v34, %s7952_s18  ;;  %7470 = vrot.lane.b32.xlu0 %v7469_v0, %s7948_s14  ;;  %v8148_v24 = vpop.permute.xlu0 %7425  ;;  %v7201_v43 = vpack.c.bf16 %v8061_v50, %v1949_v38 }
 0x1d6   :  { %v7428_v50 = vunpack.i.h.bf16 %v8148_v24 }
 0x1d9   :  { %7475 = vrot.lane.b32.xlu1 %v7469_v0, %s7947_s0  ;;  %7485 = vrot.lane.b32.xlu0 %v7469_v0, %s7951_s17 }
 0x1dd   :  { %7480 = vrot.lane.b32.xlu1 %v7469_v0, %s7949_s15  ;;  %2046 = vrot.lane.b32.xlu0 %v8088_v62, %s7951_s17 }
 0x1e1   :  { %7490 = vrot.lane.b32.xlu1 %v7469_v0, %s7950_s16  ;;  %7495 = vrot.lane.b32.xlu0 %v7469_v0, %s7952_s18 }
 0x1e5   :  { %2115 = vrot.lane.b32.xlu1 %v8088_v62, %s7950_s16 }
 0x1e9   :  { %2184 = vrot.lane.b32.xlu1 %v8088_v62, %s7952_s18 }
 0x22f   :  { %v8150_v25 = vpop.permute.xlu1 %7440  ;;  %v8152_v26 = vpop.permute.xlu0 %7435 }
 0x230   :  { %v7442_v27 = vunpack.i.l.bf16 %v8150_v25  ;;  %v7437_v28 = vunpack.i.l.bf16 %v8152_v26  ;;  %v7443_v38 = vunpack.i.h.bf16 %v8150_v25 }
 0x232   :  { %v1810_v31 = vsel %vm1805_vm3, %v7413_v11, %v7437_v28  ;;  %v1879_v32 = vsel %vm1874_vm2, %v7418_v8, %v7442_v27 }
 0x233   :  { %v8165_v33 = vpop.permute.xlu1 %7445  ;;  %v8167_v35 = vpop.permute.xlu0 %1803  ;;  %v7194_v36 = vpack.c.bf16 %v1879_v32, %v1810_v31 }
 0x234   :  { %v7447_v37 = vunpack.i.l.bf16 %v8165_v33  ;;  %v1813_v45 = vsel %vm1805_vm3, %v8167_v35, %v8099_v4 }
 0x235   :  { %2478 = vmatprep.subr.bf16.mxu1 %v7194_v36  ;;  %v1814_v34 = vmul.f32 %v8185_v15, %v1813_v45  ;;  %v7448_v45 = vunpack.i.h.bf16 %v8165_v33 }
 0x236   :  { %2479 = vmatpush1.bf16.msra.mxu1 %v7193_v20  ;;  %v1948_v39 = vsel %vm1943_vm4, %v7423_v29, %v7447_v37 }
 0x237   :  { %v8177_v40 = vpop.permute.xlu1 %2101  ;;  %v8179_v41 = vpop.permute.xlu0 %2032  ;;  %v7202_v42 = vpack.c.bf16 %v8069_v52, %v1948_v39  ;;  %v7427_v52 = vunpack.i.l.bf16 %v8148_v24  ;;  %v7438_v39 = vunpack.i.h.bf16 %v8152_v26 }
 0x239   :  { %2480 = vmatprep.subr.bf16.mxu1 %v7202_v42  ;;  %v2054_v4 = vsel %vm2048_vm8, %v7427_v52, %v7428_v50 }
 0x23a   :  { %2481 = vmatpush1.bf16.msra.mxu1 %v7201_v43  ;;  %v7208_v14 = vpack.c.bf16 %v2123_v9, %v2054_v4 }
 0x23b   :  { %v8194_v47 = vpop.permute.xlu1 %1872  ;;  %v8196_v48 = vpop.permute.xlu0 %7450 }
 0x23c   :  { %v1882_v54 = vsel %vm1874_vm2, %v8194_v47, %v8097_v3  ;;  %v7200_v3 = vpack.c.bf16 %v8067_v51, %v1950_v56  ;;  %v7452_v53 = vunpack.i.l.bf16 %v8196_v48  ;;  %v7453_v8 = vunpack.i.h.bf16 %v8196_v48 }
 0x23d   :  { %v1883_v55 = vmul.f32 %v8192_v46, %v1882_v54  ;;  %v2124_v51 = vsel %vm2117_vm9, %v8177_v40, %v7432_v61 }
 0x23e   :  { %v2053_v20 = vsel %vm2048_vm8, %v7428_v50, %v7452_v53  ;;  %v2052_v22 = vsel %vm2048_vm8, %v7452_v53, %v7453_v8  ;;  %v1878_v53 = vsel %vm1874_vm2, %v7442_v27, %v7443_v38  ;;  %v8302_v27 = vld [vmem:[%s9793_s2] sm:$0xf] }
 0x23f   :  { %v7191_v0 = vpack.c.bf16 %v1883_v55, %v1814_v34  ;;  %v8217_v57 = vpop.permute.xlu1 %1941  ;;  %v8219_v1 = vpop.permute.xlu0 %2170 }
 0x240   :  { %v1951_v2 = vsel %vm1943_vm4, %v8217_v57, %v8105_v5  ;;  %v2055_v5 = vsel %vm2048_vm8, %v8179_v41, %v7427_v52  ;;  %v8269_v52 = vadd.s32 896, %v8107_v6 }
 0x241   :  { %v1952_v7 = vmul.f32 %v8214_v63, %v1951_v2  ;;  %2438 = vmatpush1.bf16.msra.mxu0 %v7191_v0  ;;  %v7207_v29 = vpack.c.bf16 %v2124_v51, %v2055_v5  ;;  %v1947_v5 = vsel %vm1943_vm4, %v7447_v37, %v7448_v45 }
 0x242   :  { %2439 = vmatprep.subr.bf16.mxu0 %v7200_v3  ;;  %vm1724_vm12 = vcmp.lt.s32.totalorder %v8269_v52, 1023  ;;  %vm1748_vm14 = vcmp.lt.s32.totalorder %v8269_v52, 1022  ;;  %vm1772_vm15 = vcmp.lt.s32.totalorder %v8269_v52, 1021 }
 0x243   :  { %v7199_v10 = vpack.c.bf16 %v8059_v49, %v1952_v7  ;;  %v8241_v11 = vpop.permute.xlu1 %7455  ;;  %v8243_v13 = vpop.permute.xlu0 %7465  ;;  %v1809_v7 = vsel %vm1805_vm3, %v7437_v28, %v7438_v39 }
 0x244   :  { %v7458_v16 = vunpack.i.h.bf16 %v8241_v11  ;;  %v7457_v17 = vunpack.i.l.bf16 %v8241_v11  ;;  %v7468_v18 = vunpack.i.h.bf16 %v8243_v13  ;;  %v7467_v19 = vunpack.i.l.bf16 %v8243_v13 }
 0x245   :  { %2440 = vmatpush1.bf16.msra.mxu0 %v7199_v10 }
 0x246   :  { %v2122_v49 = vsel %vm2117_vm9, %v7433_v58, %v7457_v17  ;;  %2441 = vmatprep.subr.bf16.mxu0 %v7208_v14  ;;  %v2121_v23 = vsel %vm2117_vm9, %v7457_v17, %v7458_v16  ;;  %v2190_v24 = vsel %vm2186_vm10, %v7467_v19, %v7468_v18 }
 0x247   :  { %v7461_v30 = vpop.permute.xlu1 %7460  ;;  %v7471_v31 = vpop.permute.xlu0 %7470  ;;  %v7210_v32 = vpack.c.bf16 %v2121_v23, %v2052_v22  ;;  %v7209_v36 = vpack.c.bf16 %v2122_v49, %v2053_v20  ;;  %v7218_v50 = vpack.c.bf16 %v2190_v24, %v2190_v24  ;;  %v7195_v49 = vpack.c.bf16 %v1878_v53, %v1809_v7 }
 0x248   :  { %v7463_v42 = vunpack.i.h.bf16 %v7461_v30  ;;  %v7462_v43 = vunpack.i.l.bf16 %v7461_v30  ;;  %v7472_v54 = vunpack.i.l.bf16 %v7471_v31  ;;  %v7473_v58 = vunpack.i.h.bf16 %v7471_v31 }
 0x249   :  { %2442 = vmatpush1.bf16.msra.mxu0 %v7207_v29  ;;  %2482 = vmatprep.subr.bf16.mxu1 %v7210_v32  ;;  %v8376_v53 = vsel %vm1772_vm15, 1.0, %v7954_v44 }
 0x24a   :  { %2483 = vmatpush1.bf16.msra.mxu1 %v7209_v36  ;;  %v2192_v34 = vsel %vm2186_vm10, %v7462_v43, %v7463_v42  ;;  %v2193_v55 = vsel %vm2186_vm10, %v8219_v1, %v7462_v43  ;;  %v2191_v56 = vsel %vm2186_vm10, %v7463_v42, %v7467_v19  ;;  %v1808_v28 = vsel %vm1805_vm3, %v7438_v39, %v7472_v54 }
 0x24b   :  { %6759 = vmatprep.subr.msk.bf16.mxu1 %vm2412_vm11, %v7218_v50  ;;  %v7476_v61 = vpop.permute.xlu1 %7475  ;;  %v8279_v0 = vpop.permute.xlu0 %7485  ;;  %v7216_v2 = vpack.c.bf16 %v2192_v34, %v2192_v34  ;;  %v7215_v3 = vpack.c.bf16 %v2193_v55, %v2193_v55  ;;  %v7217_v4 = vpack.c.bf16 %v2191_v56, %v2191_v56  ;;  %v1807_v37 = vsel %vm1805_vm3, %v7472_v54, %v7473_v58 }
 0x24c   :  { %v7478_v9 = vunpack.i.h.bf16 %v7476_v61  ;;  %v7477_v51 = vunpack.i.l.bf16 %v7476_v61  ;;  %v1806_v24 = vsel %vm1805_vm3, %v7473_v58, %v8167_v35  ;;  %v7488_v30 = vunpack.i.h.bf16 %v8279_v0 }
 0x24d   :  { %6757 = vmatprep.subr.msk.bf16.mxu0 %vm2412_vm11, %v7216_v2  ;;  %v2414_v10 = vsel %vm2412_vm11, %v7215_v3, 0  ;;  %v2420_v25 = vsel %vm2412_vm11, %v7217_v4, 0  ;;  %v7487_v31 = vunpack.i.l.bf16 %v8279_v0  ;;  %v7203_v36 = vpack.c.bf16 %v8080_v59, %v1947_v5 }
 0x24e   :  { %v1876_v26 = vsel %vm1874_vm2, %v7477_v51, %v7478_v9  ;;  %2444 = vmatpush1.bf16.msra.mxu0 %v2414_v10  ;;  %2485 = vmatpush1.bf16.msra.mxu1 %v2420_v25  ;;  %v1877_v33 = vsel %vm1874_vm2, %v7443_v38, %v7477_v51  ;;  %v1875_v20 = vsel %vm1874_vm2, %v7478_v9, %v8194_v47  ;;  %v8334_v59 = vsel %vm1724_vm12, 1.0, %v7954_v44 }
 0x24f   :  { %v7481_v14 = vpop.permute.xlu1 %7480  ;;  %v2047_v17 = vpop.permute.xlu0 %2046  ;;  %v7196_v19 = vpack.c.bf16 %v1877_v33, %v1808_v28  ;;  %v7197_v29 = vpack.c.bf16 %v1876_v26, %v1807_v37  ;;  %v7198_v32 = vpack.c.bf16 %v1875_v20, %v1806_v24  ;;  %v2051_v56 = vsel %vm2048_vm8, %v7453_v8, %v7487_v31 }
 0x250   :  { %v7483_v22 = vunpack.i.h.bf16 %v7481_v14  ;;  %v7482_v23 = vunpack.i.l.bf16 %v7481_v14  ;;  %v2049_v52 = vsel %vm2048_vm8, %v7488_v30, %v2047_v17 }
 0x251   :  { %6758 = vmatmul.mubr.msk.bf16.vlgmr.msra.gmra.mrb[8].mxu0 %vm2408_vm13, %v8302_v27  ;;  %2519 = vmatprep.subr.bf16.mxu0 %v7196_v19 }
 0x252   :  { %v1945_v47 = vsel %vm1943_vm4, %v7482_v23, %v7483_v22  ;;  %6760 = vmatmul.mubr.msk.bf16.vlgmr.msra.gmra.mrb[8].mxu1 %vm2408_vm13, %v8302_v27  ;;  %2520 = vmatpush1.bf16.msra.mxu0 %v7195_v49  ;;  %v1946_v35 = vsel %vm1943_vm4, %v7448_v45, %v7482_v23  ;;  %v1944_v38 = vsel %vm1943_vm4, %v7483_v22, %v8217_v57 }
 0x253   :  { %2560 = vmatprep.subr.bf16.mxu1 %v7198_v32  ;;  %v7491_v39 = vpop.permute.xlu1 %7490  ;;  %v7496_v42 = vpop.permute.xlu0 %7495  ;;  %v7204_v43 = vpack.c.bf16 %v8084_v12, %v1946_v35  ;;  %v7206_v50 = vpack.c.bf16 %v8088_v62, %v1944_v38  ;;  %v7205_v45 = vpack.c.bf16 %v8082_v60, %v1945_v47  ;;  %2551 = vmatprep.mubr.bf16.mxu0 %v7953_v21  ;;  %v8351_v60 = vsel %vm1748_vm14, 1.0, %v7954_v44 }
 0x254   :  { %2561 = vmatpush1.bf16.msra.mxu1 %v7197_v29  ;;  %v7493_v57 = vunpack.i.h.bf16 %v7491_v39  ;;  %v7492_v54 = vunpack.i.l.bf16 %v7491_v39  ;;  %v7498_v34 = vunpack.i.h.bf16 %v7496_v42  ;;  %v7497_v55 = vunpack.i.l.bf16 %v7496_v42  ;;  %2592 = vmatprep.mubr.bf16.mxu1 %v7953_v21 }
 0x255   :  { %v2056_v12 = vsel %vm2048_vm8, %v2047_v17, %v8179_v41  ;;  %2521 = vmatprep.subr.bf16.mxu0 %v7204_v43  ;;  %2562 = vmatprep.subr.bf16.mxu1 %v7206_v50  ;;  %v2050_v62 = vsel %vm2048_vm8, %v7487_v31, %v7488_v30 }
 0x256   :  { %v2120_v48 = vsel %vm2117_vm9, %v7458_v16, %v7492_v54  ;;  %2522 = vmatpush1.bf16.msra.mxu0 %v7203_v36  ;;  %v2119_v8 = vsel %vm2117_vm9, %v7492_v54, %v7493_v57  ;;  %v2188_v41 = vsel %vm2186_vm10, %v7497_v55, %v7498_v34  ;;  %v2189_v58 = vsel %vm2186_vm10, %v7468_v18, %v7497_v55 }
 0x257   :  { %v2116_v61 = vpop.permute.xlu1 %2115  ;;  %v7212_v0 = vpack.c.bf16 %v2119_v8, %v2050_v62  ;;  %v7211_v2 = vpack.c.bf16 %v2120_v48, %v2051_v56  ;;  %v2064_v11 = vmul.f32 %v8334_v59, %v2056_v12  ;;  %v7220_v4 = vpack.c.bf16 %v2188_v41, %v2188_v41 }
 0x258   :  { %2563 = vmatpush1.bf16.msra.mxu1 %v7205_v45  ;;  %v2125_v16 = vsel %vm2117_vm9, %v2116_v61, %v8177_v40  ;;  %v2118_v3 = vsel %vm2117_vm9, %v7493_v57, %v2116_v61  ;;  %v7219_v18 = vpack.c.bf16 %v2189_v58, %v2189_v58 }
 0x259   :  { %v2133_v13 = vmul.f32 %v8351_v60, %v2125_v16  ;;  %2523 = vmatprep.subr.bf16.mxu0 %v7212_v0  ;;  %v7213_v40 = vpack.c.bf16 %v2118_v3, %v2049_v52  ;;  %v8436_v3 = vld [vmem:[%s9794_s3] sm:$0xff] }
 0x25a   :  { %2524 = vmatpush1.bf16.msra.mxu0 %v7211_v2  ;;  %v2426_v26 = vsel %vm2412_vm11, %v7219_v18, 0 }
 0x25b   :  { %v2185_v7 = vpop.permute.xlu1 %2184  ;;  %6761 = vmatprep.subr.msk.bf16.mxu0 %vm2412_vm11, %v7220_v4  ;;  %v7214_v9 = vpack.c.bf16 %v2133_v13, %v2064_v11  ;;  %v2712_v4 = vld [vmem:[%s9795_s4] sm:$0xff] }
 0x25c   :  { %v2187_v51 = vsel %vm2186_vm10, %v7498_v34, %v2185_v7  ;;  %v2194_v5 = vsel %vm2186_vm10, %v2185_v7, %v8219_v1 }
 0x25d   :  { %v2202_v10 = vmul.f32 %v8376_v53, %v2194_v5  ;;  %v7221_v25 = vpack.c.bf16 %v2187_v51, %v2187_v51  ;;  %2564 = vmatprep.subr.bf16.mxu1 %v7214_v9  ;;  %v7956_v9 = vmov 1  }
 0x25e   :  { %2526 = vmatpush1.bf16.msra.mxu0 %v2426_v26  ;;  %2565 = vmatpush1.bf16.msra.mxu1 %v7213_v40 }
 0x25f   :  { %v7222_v28 = vpack.c.bf16 %v2202_v10, %v2202_v10  ;;  %7359 = vmatprep.subr.mxu0 %v7954_v44  ;;  %v2432_v33 = vsel %vm2412_vm11, %v7221_v25, 0  ;;  %7499 = vset.pattern.permute.xlu1 %v7956_v9 }
 0x261   :  { %6762 = vmatmul.mubr.msk.bf16.vlgmr.msra.gmra.mrb[12].mxu0 %vm2408_vm13, %v8302_v27  ;;  %6763 = vmatprep.subr.msk.bf16.mxu1 %vm2412_vm11, %v7222_v28 }
 0x262   :  { %2567 = vmatpush1.bf16.msra.mxu1 %v2432_v33  ;;  %7361 = vmatprep.mubr.msk.f32.mxu0 %vm7955_vm0, %v7954_v44  ;;  %v2718_v33 = vld [vmem:[%s9796_s5] sm:$0xff] }
 0x265   :  { %6764 = vmatmul.mubr.msk.bf16.vlgmr.msra.gmra.mrb[12].mxu1 %vm2408_vm13, %v8302_v27 }
 0x266   :  { %3431 = vmatprep.mubr.bf16.mxu1 %v7953_v21 }
 0x324   :  { %v8396_v1 = vpop.f32.mrb[8].mxu0 }
 0x325   :  { %v2610_v37 = vmul.f32 %v8396_v1, %v8396_v1  ;;  %v8400_v14 = vpop.f32.mrb[9].mxu0  ;;  %v8402_v17 = vpop.f32.mrb[8].mxu1 }
 0x326   :  { %v2601_v19 = vadd.f32 %v8400_v14, %v8396_v1  ;;  %v2611_v20 = vmul.f32 %v8400_v14, %v8400_v14  ;;  %v2475_v49 = vpop.f32.mrb[10].mxu0  ;;  %v2612_v27 = vmul.f32 %v8402_v17, %v8402_v17  ;;  %v8410_v22 = vpop.f32.mrb[9].mxu1 }
 0x327   :  { %v2476_v23 = vpop.f32.mrb[11].mxu0  ;;  %v2516_v24 = vpop.f32.mrb[10].mxu1  ;;  %v2613_v31 = vmul.f32 %v8410_v22, %v8410_v22 }
 0x328   :  { %v2618_v29 = vadd.f32 %v2611_v20, %v2610_v37  ;;  %v2602_v30 = vadd.f32 %v2601_v19, %v8402_v17  ;;  %v2517_v32 = vpop.f32.mrb[11].mxu1 }
 0x32a   :  { %v2619_v36 = vadd.f32 %v2618_v29, %v2612_v27  ;;  %v2603_v47 = vadd.f32 %v2602_v30, %v8410_v22 }
 0x32c   :  { %v2620_v35 = vadd.f32 %v2619_v36, %v2613_v31 }
 0x334   :  { %v8416_v38 = vpop.f32.mrb[12].mxu0 }
 0x335   :  { %v2604_v39 = vadd.f32 %v2603_v47, %v8416_v38  ;;  %v2614_v42 = vmul.f32 %v8416_v38, %v8416_v38  ;;  %v8421_v43 = vpop.f32.mrb[13].mxu0 }
 0x336   :  { %v2615_v50 = vmul.f32 %v8421_v43, %v8421_v43  ;;  %v2557_v45 = vpop.f32.mrb[14].mxu0 }
 0x337   :  { %v2621_v57 = vadd.f32 %v2620_v35, %v2614_v42  ;;  %v2605_v54 = vadd.f32 %v2604_v39, %v8421_v43  ;;  %v2558_v34 = vpop.f32.mrb[15].mxu0 }
 0x338   :  { %v8426_v55 = vpop.f32.mrb[12].mxu1 }
 0x339   :  { %v2616_v56 = vmul.f32 %v8426_v55, %v8426_v55  ;;  %v2596_v12 = vpop.f32.mrb[13].mxu1  ;;  %v2606_v62 = vadd.f32 %v2605_v54, %v8426_v55  ;;  %v2622_v48 = vadd.f32 %v2621_v57, %v2615_v50 }
 0x33a   :  { %v2598_v8 = vpop.f32.mrb[14].mxu1  ;;  %v2617_v41 = vmul.f32 %v2596_v12, %v2596_v12 }
 0x33b   :  { %v2599_v58 = vpop.f32.mrb[15].mxu1  ;;  %v2607_v61 = vadd.f32 %v2606_v62, %v2596_v12  ;;  %v2623_v0 = vadd.f32 %v2622_v48, %v2616_v56 }
 0x33d   :  { %2608 = vadd.xlane.f32.xlu0 %v2607_v61  ;;  %v2624_v2 = vadd.f32 %v2623_v0, %v2617_v41 }
 0x33f   :  { %2625 = vadd.xlane.f32.xlu1 %v2624_v2 }
 0x350   :  { %2714 = vrot.lane.b32.xlu1 %v2712_v4, %s7949_s15 }
 0x3ca   :  { %v2609_v11 = vpop.xlane.xlu0 %2608 }
 0x3cc   :  { %v2626_v16 = vpop.xlane.xlu1 %2625 }
 0x3cd   :  { %v2628_v13 = vsel %vm2627_vm1, %v2609_v11, %v2626_v16 }
 0x3ce   :  { %7360 = vmatpush3.msra.mxu0 %v2628_v13 }
 0x3cf   :  { %7362 = vmatmul.mubr.msk.f32.vlgmr.msra.gmra.mrb[16].mxu0 %vm2629_vm5, %v8436_v3 }
 0x3d0   :  { %3472 = vmatprep.mubr.bf16.mxu0 %v7953_v21  ;;  %v2715_v25 = vpop.permute.xlu1 %2714 }
 0x4a2   :  { %v2699_v18 = vpop.f32.mrb[16].mxu0 }
 0x4a3   :  { %v2703_v52 = vmul.f32 %v2699_v18, %v2699_v18  ;;  %v7363_v7 = vpop.f32.mrb[17].mxu0 }
 0x4a5   :  { %2705 = vrot.lane.b32.xlu0 %v2703_v52, %s7949_s15 }
 0x517   :  { %v2706_v40 = vpop.permute.xlu0 %2705 }
 0x518   :  { %v2708_v51 = vsub.f32 %v2699_v18, %v2706_v40 }
 0x51a   :  { %v2709_v5 = vmax.f32 %v2708_v51, 0.0 }
 0x51c   :  { %v2710_v10 = vadd.f32 1e-05, %v2709_v5 }
 0x51e   :  { %7871 = vrsqrt.f32 %v2710_v10 }
 0x528   :  { %v7872_v26 = vpop.eup %7871 }
 0x529   :  { %v2717_v28 = vmul.f32 %v7872_v26, %v2715_v25 }
 0x52b   :  { %2726 = vperm.xlu1 %7499, %v2717_v28   ;;  %2720 = vrot.lane.b32.xlu0 %v2717_v28, %s7951_s17 }
 0x59d   :  { %v2721_v37 = vpop.permute.xlu0 %2720 }
 0x59e   :  { %v2723_v19 = vmul.f32 %v2721_v37, %v2699_v18 }
 0x5a0   :  { %v2724_v20 = vsub.f32 %v2718_v33, %v2723_v19 }
 0x5a2   :  { %2739 = vperm.xlu0 %7500, %v2724_v20  }
 0x5aa   :  { %v2727_v49 = vpop.permute.xlu1 %2726 }
 0x5ab   :  { %v2730_v27 = vmul.f32 %v2727_v49, %v8400_v14  ;;  %v2731_v23 = vmul.f32 %v2727_v49, %v8402_v17  ;;  %v2729_v24 = vmul.f32 %v2727_v49, %v8396_v1  ;;  %v2736_v32 = vmul.f32 %v2727_v49, %v2596_v12 }
 0x5ac   :  { %v2732_v14 = vmul.f32 %v2727_v49, %v8410_v22  ;;  %v2733_v17 = vmul.f32 %v2727_v49, %v8416_v38  ;;  %v2734_v34 = vmul.f32 %v2727_v49, %v8421_v43  ;;  %v2735_v56 = vmul.f32 %v2727_v49, %v8426_v55 }
 0x621   :  { %v2740_v29 = vpop.permute.xlu0 %2739 }
 0x622   :  { %v8455_v30 = vadd.f32 %v2740_v29, %v2730_v27  ;;  %v8457_v31 = vadd.f32 %v2740_v29, %v2731_v23  ;;  %v2742_v36 = vadd.f32 %v2740_v29, %v2729_v24  ;;  %v2749_v42 = vadd.f32 %v2740_v29, %v2736_v32 }
 0x623   :  { %v8469_v1 = vadd.f32 %v2740_v29, %v2732_v14  ;;  %v8471_v50 = vadd.f32 %v2740_v29, %v2733_v17  ;;  %v8504_v12 = vadd.f32 %v2740_v29, %v2734_v34  ;;  %v8506_v62 = vadd.f32 %v2740_v29, %v2735_v56 }
 0x624   :  { %v2751_v47 = vmax.f32 %v8455_v30, 0.0  ;;  %v2752_v35 = vmax.f32 %v8457_v31, 0.0  ;;  %v8461_v39 = vmax.f32 %v2742_v36, 0.0  ;;  %v8477_v57 = vmax.f32 %v2749_v42, 0.0 }
 0x625   :  { %v2753_v22 = vmax.f32 %v8469_v1, 0.0  ;;  %v2754_v38 = vmax.f32 %v8471_v50, 0.0  ;;  %v2755_v48 = vmax.f32 %v8504_v12, 0.0  ;;  %v2756_v8 = vmax.f32 %v8506_v62, 0.0 }
 0x626   :  { %2826 = vrot.lane.b32.xlu0 %v8461_v39, %s7947_s0  ;;  %2758 = vrot.lane.b32.xlu1 %v8461_v39, %s7948_s14  ;;  %v7501_v45 = vpack.i.bf16 %v2752_v35, %v2751_v47 }
 0x627   :  { %v7511_v54 = vpack.i.bf16 %v2754_v38, %v2753_v22  ;;  %v7556_v43 = vpack.i.bf16 %v2756_v8, %v2755_v48 }
 0x62a   :  { %7502 = vrot.lane.b32.xlu0 %v7501_v45, %s7948_s14  ;;  %2772 = vrot.lane.b32.xlu1 %v8477_v57, %s7948_s14 }
 0x62e   :  { %2894 = vrot.lane.b32.xlu0 %v8461_v39, %s7949_s15  ;;  %2840 = vrot.lane.b32.xlu1 %v8477_v57, %s7947_s0 }
 0x632   :  { %7512 = vrot.lane.b32.xlu0 %v7511_v54, %s7948_s14  ;;  %7507 = vrot.lane.b32.xlu1 %v7501_v45, %s7947_s0 }
 0x636   :  { %7522 = vrot.lane.b32.xlu0 %v7501_v45, %s7949_s15  ;;  %2908 = vrot.lane.b32.xlu1 %v8477_v57, %s7949_s15 }
 0x63a   :  { %7532 = vrot.lane.b32.xlu0 %v7501_v45, %s7951_s17  ;;  %7517 = vrot.lane.b32.xlu1 %v7511_v54, %s7947_s0 }
 0x63e   :  { %2998 = vrot.lane.b32.xlu0 %v8461_v39, %s7951_s17  ;;  %7527 = vrot.lane.b32.xlu1 %v7511_v54, %s7949_s15 }
 0x642   :  { %7542 = vrot.lane.b32.xlu0 %v7511_v54, %s7951_s17  ;;  %7537 = vrot.lane.b32.xlu1 %v7501_v45, %s7950_s16 }
 0x646   :  { %3134 = vrot.lane.b32.xlu0 %v8461_v39, %s7952_s18  ;;  %3066 = vrot.lane.b32.xlu1 %v8461_v39, %s7950_s16 }
 0x64a   :  { %7557 = vrot.lane.b32.xlu0 %v7556_v43, %s7948_s14  ;;  %7547 = vrot.lane.b32.xlu1 %v7511_v54, %s7950_s16 }
 0x64e   :  { %7567 = vrot.lane.b32.xlu0 %v7511_v54, %s7952_s18  ;;  %7552 = vrot.lane.b32.xlu1 %v7501_v45, %s7952_s18 }
 0x652   :  { %7577 = vrot.lane.b32.xlu0 %v7556_v43, %s7951_s17  ;;  %7562 = vrot.lane.b32.xlu1 %v7556_v43, %s7947_s0 }
 0x656   :  { %3012 = vrot.lane.b32.xlu0 %v8477_v57, %s7951_s17  ;;  %7572 = vrot.lane.b32.xlu1 %v7556_v43, %s7949_s15 }
 0x65a   :  { %7587 = vrot.lane.b32.xlu0 %v7556_v43, %s7952_s18  ;;  %7582 = vrot.lane.b32.xlu1 %v7556_v43, %s7950_s16 }
 0x65e   :  { %3080 = vrot.lane.b32.xlu1 %v8477_v57, %s7950_s16 }
 0x662   :  { %3148 = vrot.lane.b32.xlu1 %v8477_v57, %s7952_s18 }
 0x698   :  { %v2827_v55 = vpop.permute.xlu0 %2826  ;;  %v2759_v41 = vpop.permute.xlu1 %2758 }
 0x69c   :  { %v7503_v58 = vpop.permute.xlu0 %7502  ;;  %v8535_v61 = vpop.permute.xlu1 %2772 }
 0x69d   :  { %v7504_v16 = vunpack.i.l.bf16 %v7503_v58  ;;  %v2781_v13 = vsel %vm1805_vm3, %v8535_v61, %v2759_v41  ;;  %v7505_v23 = vunpack.i.h.bf16 %v7503_v58 }
 0x69e   :  { %v2782_v40 = vmul.f32 %v8185_v15, %v2781_v13 }
 0x69f   :  { %v2780_v51 = vsel %vm1805_vm3, %v2759_v41, %v7504_v16  ;;  %v2779_v30 = vsel %vm1805_vm3, %v7504_v16, %v7505_v23 }
 0x6a0   :  { %v2895_v0 = vpop.permute.xlu0 %2894  ;;  %v8537_v2 = vpop.permute.xlu1 %2840 }
 0x6a1   :  { %v2849_v11 = vsel %vm1874_vm2, %v8537_v2, %v2827_v55 }
 0x6a2   :  { %v2850_v52 = vmul.f32 %v8192_v46, %v2849_v11 }
 0x6a4   :  { %v8545_v4 = vpop.permute.xlu0 %7512  ;;  %v7508_v18 = vpop.permute.xlu1 %7507  ;;  %v7223_v28 = vpack.c.bf16 %v2850_v52, %v2782_v40 }
 0x6a5   :  { %v7509_v7 = vunpack.i.l.bf16 %v7508_v18  ;;  %v7510_v19 = vunpack.i.h.bf16 %v7508_v18  ;;  %v7514_v49 = vunpack.i.l.bf16 %v8545_v4 }
 0x6a7   :  { %v2848_v5 = vsel %vm1874_vm2, %v2827_v55, %v7509_v7  ;;  %v2847_v14 = vsel %vm1874_vm2, %v7509_v7, %v7510_v19  ;;  %v2778_v45 = vsel %vm1805_vm3, %v7505_v23, %v7514_v49 }
 0x6a8   :  { %v7523_v10 = vpop.permute.xlu0 %7522  ;;  %v8553_v25 = vpop.permute.xlu1 %2908  ;;  %v7224_v26 = vpack.c.bf16 %v2848_v5, %v2780_v51  ;;  %v7225_v43 = vpack.c.bf16 %v2847_v14, %v2779_v30 }
 0x6a9   :  { %v7524_v33 = vunpack.i.l.bf16 %v7523_v10  ;;  %v2917_v37 = vsel %vm1943_vm4, %v8553_v25, %v2895_v0  ;;  %v7525_v17 = vunpack.i.h.bf16 %v7523_v10 }
 0x6aa   :  { %v2918_v20 = vmul.f32 %v8214_v63, %v2917_v37  ;;  %3399 = vmatprep.subr.bf16.mxu1 %v7224_v26 }
 0x6ab   :  { %3400 = vmatpush1.bf16.msra.mxu1 %v7223_v28  ;;  %v2916_v27 = vsel %vm1943_vm4, %v2895_v0, %v7524_v33  ;;  %v2915_v55 = vsel %vm1943_vm4, %v7524_v33, %v7525_v17 }
 0x6ac   :  { %v7231_v24 = vpack.c.bf16 %v8461_v39, %v2918_v20  ;;  %v7533_v29 = vpop.permute.xlu0 %7532  ;;  %v8563_v32 = vpop.permute.xlu1 %7517  ;;  %v7232_v36 = vpack.c.bf16 %v2751_v47, %v2916_v27  ;;  %v7233_v7 = vpack.c.bf16 %v2752_v35, %v2915_v55 }
 0x6ad   :  { %v7519_v42 = vunpack.i.l.bf16 %v8563_v32  ;;  %v7535_v41 = vunpack.i.h.bf16 %v7533_v29  ;;  %v7534_v58 = vunpack.i.l.bf16 %v7533_v29 }
 0x6ae   :  { %3401 = vmatprep.subr.bf16.mxu1 %v7232_v36  ;;  %v7520_v36 = vunpack.i.h.bf16 %v8563_v32 }
 0x6af   :  { %3402 = vmatpush1.bf16.msra.mxu1 %v7231_v24  ;;  %v2846_v39 = vsel %vm1874_vm2, %v7510_v19, %v7519_v42  ;;  %v3019_v40 = vsel %vm2048_vm8, %v7534_v58, %v7535_v41 }
 0x6b0   :  { %v8580_v47 = vpop.permute.xlu0 %2998  ;;  %v8582_v54 = vpop.permute.xlu1 %7527  ;;  %v7226_v34 = vpack.c.bf16 %v2846_v39, %v2778_v45 }
 0x6b1   :  { %v7529_v56 = vunpack.i.l.bf16 %v8582_v54  ;;  %v3020_v1 = vsel %vm2048_vm8, %v8580_v47, %v7534_v58  ;;  %v7530_v58 = vunpack.i.h.bf16 %v8582_v54 }
 0x6b2   :  { %3440 = vmatprep.subr.bf16.mxu0 %v7226_v34 }
 0x6b3   :  { %3441 = vmatpush1.bf16.msra.mxu0 %v7225_v43  ;;  %v2914_v0 = vsel %vm1943_vm4, %v7525_v17, %v7529_v56 }
 0x6b4   :  { %v8591_v11 = vpop.permute.xlu0 %7542  ;;  %v7538_v16 = vpop.permute.xlu1 %7537  ;;  %v7234_v13 = vpack.c.bf16 %v2753_v22, %v2914_v0 }
 0x6b5   :  { %v7540_v18 = vunpack.i.h.bf16 %v7538_v16  ;;  %v7539_v52 = vunpack.i.l.bf16 %v7538_v16  ;;  %v7545_v22 = vunpack.i.h.bf16 %v8591_v11  ;;  %v7544_v28 = vunpack.i.l.bf16 %v8591_v11 }
 0x6b6   :  { %3442 = vmatprep.subr.bf16.mxu0 %v7234_v13 }
 0x6b7   :  { %3443 = vmatpush1.bf16.msra.mxu0 %v7233_v7  ;;  %v3087_v51 = vsel %vm2117_vm9, %v7539_v52, %v7540_v18  ;;  %v3018_v27 = vsel %vm2048_vm8, %v7535_v41, %v7544_v28  ;;  %v3017_v24 = vsel %vm2048_vm8, %v7544_v28, %v7545_v22  ;;  %v7515_v41 = vunpack.i.h.bf16 %v8545_v4  ;;  %v8670_v4 = vld [vmem:[%s9793_s2 + $0x4] sm:$0xf] }
 0x6b8   :  { %v8601_v5 = vpop.permute.xlu0 %3134  ;;  %v8603_v10 = vpop.permute.xlu1 %3066  ;;  %v7240_v26 = vpack.c.bf16 %v3087_v51, %v3019_v40  ;;  %v2845_v28 = vsel %vm1874_vm2, %v7519_v42, %v7520_v36 }
 0x6b9   :  { %v3088_v31 = vsel %vm2117_vm9, %v8603_v10, %v7539_v52 }
 0x6ba   :  { %v7239_v35 = vpack.c.bf16 %v3088_v31, %v3020_v1  ;;  %3403 = vmatprep.subr.bf16.mxu1 %v7240_v26 }
 0x6bc   :  { %v7558_v33 = vpop.permute.xlu0 %7557  ;;  %v8613_v37 = vpop.permute.xlu1 %7547  ;;  %3404 = vmatpush1.bf16.msra.mxu1 %v7239_v35 }
 0x6bd   :  { %v7550_v19 = vunpack.i.h.bf16 %v8613_v37  ;;  %v7549_v20 = vunpack.i.l.bf16 %v8613_v37  ;;  %v7560_v0 = vunpack.i.h.bf16 %v7558_v33  ;;  %v7559_v16 = vunpack.i.l.bf16 %v7558_v33 }
 0x6bf   :  { %v3086_v23 = vsel %vm2117_vm9, %v7540_v18, %v7549_v20  ;;  %v3085_v29 = vsel %vm2117_vm9, %v7549_v20, %v7550_v19 }
 0x6c0   :  { %v8630_v14 = vpop.permute.xlu0 %7567  ;;  %v7553_v17 = vpop.permute.xlu1 %7552  ;;  %v7242_v45 = vpack.c.bf16 %v3085_v29, %v3017_v24  ;;  %v7241_v39 = vpack.c.bf16 %v3086_v23, %v3018_v27  ;;  %v2777_v27 = vsel %vm1805_vm3, %v7514_v49, %v7515_v41  ;;  %v2913_v23 = vsel %vm1943_vm4, %v7529_v56, %v7530_v58 }
 0x6c1   :  { %v7570_v30 = vunpack.i.h.bf16 %v8630_v14  ;;  %v7569_v34 = vunpack.i.l.bf16 %v8630_v14  ;;  %v7555_v43 = vunpack.i.h.bf16 %v7553_v17  ;;  %v7554_v55 = vunpack.i.l.bf16 %v7553_v17 }
 0x6c2   :  { %3444 = vmatprep.subr.bf16.mxu0 %v7242_v45  ;;  %v2776_v49 = vsel %vm1805_vm3, %v7515_v41, %v7559_v16  ;;  %v2775_v56 = vsel %vm1805_vm3, %v7559_v16, %v7560_v0  ;;  %v2774_v41 = vsel %vm1805_vm3, %v7560_v0, %v8535_v61 }
 0x6c3   :  { %3445 = vmatpush1.bf16.msra.mxu0 %v7241_v39  ;;  %v3155_v13 = vsel %vm2186_vm10, %v7554_v55, %v7555_v43  ;;  %v3153_v18 = vsel %vm2186_vm10, %v7569_v34, %v7570_v30  ;;  %v3156_v52 = vsel %vm2186_vm10, %v8601_v5, %v7554_v55  ;;  %v3154_v7 = vsel %vm2186_vm10, %v7555_v43, %v7569_v34 }
 0x6c4   :  { %v8647_v40 = vpop.permute.xlu0 %7577  ;;  %v7563_v51 = vpop.permute.xlu1 %7562  ;;  %v7248_v26 = vpack.c.bf16 %v3155_v13, %v3155_v13  ;;  %v7250_v1 = vpack.c.bf16 %v3153_v18, %v3153_v18  ;;  %v7247_v31 = vpack.c.bf16 %v3156_v52, %v3156_v52  ;;  %v7249_v35 = vpack.c.bf16 %v3154_v7, %v3154_v7 }
 0x6c5   :  { %v7565_v33 = vunpack.i.h.bf16 %v7563_v51  ;;  %v7564_v20 = vunpack.i.l.bf16 %v7563_v51  ;;  %v7227_v34 = vpack.c.bf16 %v2845_v28, %v2777_v27  ;;  %v7579_v18 = vunpack.i.l.bf16 %v8647_v40 }
 0x6c6   :  { %6827 = vmatprep.subr.msk.bf16.mxu1 %vm2412_vm11, %v7248_v26  ;;  %6829 = vmatprep.subr.msk.bf16.mxu0 %vm2412_vm11, %v7250_v1  ;;  %v3376_v32 = vsel %vm2412_vm11, %v7247_v31, 0  ;;  %v3382_v42 = vsel %vm2412_vm11, %v7249_v35, 0 }
 0x6c7   :  { %v2843_v24 = vsel %vm1874_vm2, %v7564_v20, %v7565_v33  ;;  %3406 = vmatpush1.bf16.msra.mxu1 %v3376_v32  ;;  %3447 = vmatpush1.bf16.msra.mxu0 %v3382_v42  ;;  %v2844_v54 = vsel %vm1874_vm2, %v7520_v36, %v7564_v20  ;;  %v2842_v39 = vsel %vm1874_vm2, %v7565_v33, %v8537_v2  ;;  %v7580_v36 = vunpack.i.h.bf16 %v8647_v40 }
 0x6c8   :  { %v3013_v29 = vpop.permute.xlu0 %3012  ;;  %v7573_v17 = vpop.permute.xlu1 %7572  ;;  %v7228_v45 = vpack.c.bf16 %v2844_v54, %v2776_v49  ;;  %v7229_v13 = vpack.c.bf16 %v2843_v24, %v2775_v56  ;;  %v7230_v16 = vpack.c.bf16 %v2842_v39, %v2774_v41  ;;  %v7235_v2 = vpack.c.bf16 %v2754_v38, %v2913_v23 }
 0x6c9   :  { %v7575_v43 = vunpack.i.h.bf16 %v7573_v17  ;;  %v7574_v55 = vunpack.i.l.bf16 %v7573_v17  ;;  %v3016_v12 = vsel %vm2048_vm8, %v7545_v22, %v7579_v18  ;;  %v3015_v62 = vsel %vm2048_vm8, %v7579_v18, %v7580_v36 }
 0x6ca   :  { %6828 = vmatmul.mubr.msk.bf16.vlgmr.msra.gmra.mrb[16].mxu1 %vm2408_vm13, %v8670_v4  ;;  %3481 = vmatprep.subr.bf16.mxu1 %v7228_v45 }
 0x6cb   :  { %v2911_v52 = vsel %vm1943_vm4, %v7574_v55, %v7575_v43  ;;  %6830 = vmatmul.mubr.msk.bf16.vlgmr.msra.gmra.mrb[20].mxu0 %vm2408_vm13, %v8670_v4  ;;  %3482 = vmatpush1.bf16.msra.mxu1 %v7227_v34  ;;  %v2912_v61 = vsel %vm1943_vm4, %v7530_v58, %v7574_v55  ;;  %v2910_v0 = vsel %vm1943_vm4, %v7575_v43, %v8553_v25 }
 0x6cc   :  { %3522 = vmatprep.subr.bf16.mxu0 %v7230_v16  ;;  %v7588_v7 = vpop.permute.xlu0 %7587  ;;  %v7583_v40 = vpop.permute.xlu1 %7582  ;;  %v7236_v50 = vpack.c.bf16 %v2755_v48, %v2912_v61  ;;  %v7238_v38 = vpack.c.bf16 %v8477_v57, %v2910_v0  ;;  %v7237_v51 = vpack.c.bf16 %v2756_v8, %v2911_v52  ;;  %3513 = vmatprep.mubr.bf16.mxu1 %v7953_v21 }
 0x6cd   :  { %3523 = vmatpush1.bf16.msra.mxu0 %v7229_v13  ;;  %v7590_v26 = vunpack.i.h.bf16 %v7588_v7  ;;  %v7589_v58 = vunpack.i.l.bf16 %v7588_v7  ;;  %v7585_v1 = vunpack.i.h.bf16 %v7583_v40  ;;  %v7584_v31 = vunpack.i.l.bf16 %v7583_v40  ;;  %3554 = vmatprep.mubr.bf16.mxu0 %v7953_v21 }
 0x6ce   :  { %v3021_v57 = vsel %vm2048_vm8, %v3013_v29, %v8580_v47  ;;  %3483 = vmatprep.subr.bf16.mxu1 %v7236_v50  ;;  %3524 = vmatprep.subr.bf16.mxu0 %v7238_v38 }
 0x6cf   :  { %v3084_v48 = vsel %vm2117_vm9, %v7550_v19, %v7584_v31  ;;  %3484 = vmatpush1.bf16.msra.mxu1 %v7235_v2  ;;  %v3083_v8 = vsel %vm2117_vm9, %v7584_v31, %v7585_v1  ;;  %v3151_v25 = vsel %vm2186_vm10, %v7589_v58, %v7590_v26  ;;  %v3152_v47 = vsel %vm2186_vm10, %v7570_v30, %v7589_v58 }
 0x6d0   :  { %v3081_v11 = vpop.permute.xlu1 %3080  ;;  %v7244_v22 = vpack.c.bf16 %v3083_v8, %v3015_v62  ;;  %v7243_v35 = vpack.c.bf16 %v3084_v48, %v3016_v12  ;;  %v3029_v37 = vmul.f32 %v8334_v59, %v3021_v57  ;;  %v7252_v14 = vpack.c.bf16 %v3151_v25, %v3151_v25 }
 0x6d1   :  { %3525 = vmatpush1.bf16.msra.mxu0 %v7237_v51  ;;  %v3089_v19 = vsel %vm2117_vm9, %v3081_v11, %v8603_v10  ;;  %v3082_v28 = vsel %vm2117_vm9, %v7585_v1, %v3081_v11  ;;  %v7251_v20 = vpack.c.bf16 %v3152_v47, %v3152_v47  ;;  %v3014_v30 = vsel %vm2048_vm8, %v7580_v36, %v3013_v29 }
 0x6d2   :  { %v3097_v33 = vmul.f32 %v8351_v60, %v3089_v19  ;;  %3485 = vmatprep.subr.bf16.mxu1 %v7244_v22  ;;  %v7245_v32 = vpack.c.bf16 %v3082_v28, %v3014_v30 }
 0x6d3   :  { %3486 = vmatpush1.bf16.msra.mxu1 %v7243_v35  ;;  %v3388_v54 = vsel %vm2412_vm11, %v7251_v20, 0  ;;  %v6836_v20 = vld [vmem:[%s9795_s4 + $0x8] sm:$0xff] }
 0x6d4   :  { %v3149_v27 = vpop.permute.xlu1 %3148  ;;  %6831 = vmatprep.subr.msk.bf16.mxu1 %vm2412_vm11, %v7252_v14  ;;  %v7246_v23 = vpack.c.bf16 %v3097_v33, %v3029_v37 }
 0x6d5   :  { %v3150_v10 = vsel %vm2186_vm10, %v7590_v26, %v3149_v27  ;;  %v3157_v42 = vsel %vm2186_vm10, %v3149_v27, %v8601_v5 }
 0x6d6   :  { %v3165_v24 = vmul.f32 %v8376_v53, %v3157_v42  ;;  %v7253_v49 = vpack.c.bf16 %v3150_v10, %v3150_v10  ;;  %3526 = vmatprep.subr.bf16.mxu0 %v7246_v23 }
 0x6d7   :  { %3488 = vmatpush1.bf16.msra.mxu1 %v3388_v54  ;;  %3527 = vmatpush1.bf16.msra.mxu0 %v7245_v32 }
 0x6d8   :  { %v7254_v56 = vpack.c.bf16 %v3165_v24, %v3165_v24  ;;  %7364 = vmatprep.subr.mxu1 %v7954_v44  ;;  %v3394_v29 = vsel %vm2412_vm11, %v7253_v49, 0 }
 0x6da   :  { %6832 = vmatmul.mubr.msk.bf16.vlgmr.msra.gmra.mrb[20].mxu1 %vm2408_vm13, %v8670_v4  ;;  %6833 = vmatprep.subr.msk.bf16.mxu0 %vm2412_vm11, %v7254_v56  ;;  %v6837_v56 = vld [vmem:[%s9796_s5 + $0x8] sm:$0xff] }
 0x6db   :  { %3529 = vmatpush1.bf16.msra.mxu0 %v3394_v29  ;;  %7366 = vmatprep.mubr.msk.f32.mxu1 %vm7955_vm0, %v7954_v44 }
 0x6de   :  { %6834 = vmatmul.mubr.msk.bf16.vlgmr.msra.gmra.mrb[24].mxu0 %vm2408_vm13, %v8670_v4 }
 0x6df   :  { %4390 = vmatprep.mubr.bf16.mxu0 %v7953_v21 }
 0x79d   :  { %v8754_v5 = vpop.f32.mrb[16].mxu1 }
 0x79e   :  { %v3572_v17 = vmul.f32 %v8754_v5, %v8754_v5  ;;  %v8758_v45 = vpop.f32.mrb[17].mxu1  ;;  %v8760_v39 = vpop.f32.mrb[20].mxu0 }
 0x79f   :  { %v3563_v34 = vadd.f32 %v8758_v45, %v8754_v5  ;;  %v3573_v43 = vmul.f32 %v8758_v45, %v8758_v45  ;;  %v3437_v55 = vpop.f32.mrb[18].mxu1  ;;  %v3574_v4 = vmul.f32 %v8760_v39, %v8760_v39  ;;  %v8768_v41 = vpop.f32.mrb[21].mxu0 }
 0x7a0   :  { %v3438_v13 = vpop.f32.mrb[19].mxu1  ;;  %v3478_v36 = vpop.f32.mrb[22].mxu0  ;;  %v3575_v2 = vmul.f32 %v8768_v41, %v8768_v41 }
 0x7a1   :  { %v3580_v18 = vadd.f32 %v3573_v43, %v3572_v17  ;;  %v3564_v16 = vadd.f32 %v3563_v34, %v8760_v39  ;;  %v3479_v52 = vpop.f32.mrb[23].mxu0 }
 0x7a3   :  { %v3581_v61 = vadd.f32 %v3580_v18, %v3574_v4  ;;  %v3565_v0 = vadd.f32 %v3564_v16, %v8768_v41 }
 0x7a5   :  { %v3582_v7 = vadd.f32 %v3581_v61, %v3575_v2 }
 0x7ad   :  { %v8774_v40 = vpop.f32.mrb[20].mxu1 }
 0x7ae   :  { %v3566_v50 = vadd.f32 %v3565_v0, %v8774_v40  ;;  %v3576_v38 = vmul.f32 %v8774_v40, %v8774_v40  ;;  %v8779_v51 = vpop.f32.mrb[21].mxu1 }
 0x7af   :  { %v3577_v26 = vmul.f32 %v8779_v51, %v8779_v51  ;;  %v3519_v58 = vpop.f32.mrb[22].mxu1 }
 0x7b0   :  { %v3583_v1 = vadd.f32 %v3582_v7, %v3576_v38  ;;  %v3567_v31 = vadd.f32 %v3566_v50, %v8779_v51  ;;  %v3520_v12 = vpop.f32.mrb[23].mxu1 }
 0x7b1   :  { %v8784_v57 = vpop.f32.mrb[24].mxu0 }
 0x7b2   :  { %v3578_v62 = vmul.f32 %v8784_v57, %v8784_v57  ;;  %v3558_v48 = vpop.f32.mrb[25].mxu0  ;;  %v3568_v8 = vadd.f32 %v3567_v31, %v8784_v57  ;;  %v3584_v25 = vadd.f32 %v3583_v1, %v3577_v26 }
 0x7b3   :  { %v3560_v47 = vpop.f32.mrb[26].mxu0  ;;  %v3579_v11 = vmul.f32 %v3558_v48, %v3558_v48 }
 0x7b4   :  { %v3561_v22 = vpop.f32.mrb[27].mxu0  ;;  %v3569_v35 = vadd.f32 %v3568_v8, %v3558_v48  ;;  %v3585_v37 = vadd.f32 %v3584_v25, %v3578_v62 }
 0x7b6   :  { %3570 = vadd.xlane.f32.xlu0 %v3569_v35  ;;  %v3586_v19 = vadd.f32 %v3585_v37, %v3579_v11 }
 0x7b8   :  { %3587 = vadd.xlane.f32.xlu1 %v3586_v19 }
 0x7c9   :  { %3672 = vrot.lane.b32.xlu1 %v6836_v20, %s7949_s15 }
 0x843   :  { %v3571_v28 = vpop.xlane.xlu0 %3570 }
 0x845   :  { %v3588_v33 = vpop.xlane.xlu1 %3587 }
 0x846   :  { %v3589_v14 = vsel %vm2627_vm1, %v3571_v28, %v3588_v33 }
 0x847   :  { %7365 = vmatpush3.msra.mxu1 %v3589_v14 }
 0x848   :  { %7367 = vmatmul.mubr.msk.f32.vlgmr.msra.gmra.mrb[24].mxu1 %vm2629_vm5, %v8436_v3 }
 0x849   :  { %4431 = vmatprep.mubr.bf16.mxu1 %v7953_v21  ;;  %v3673_v49 = vpop.permute.xlu1 %3672 }
 0x91b   :  { %v3656_v30 = vpop.f32.mrb[24].mxu1 }
 0x91c   :  { %v3660_v27 = vmul.f32 %v3656_v30, %v3656_v30  ;;  %v7368_v23 = vpop.f32.mrb[25].mxu1 }
 0x91e   :  { %3662 = vrot.lane.b32.xlu0 %v3660_v27, %s7949_s15 }
 0x990   :  { %v3663_v32 = vpop.permute.xlu0 %3662 }
 0x991   :  { %v3665_v10 = vsub.f32 %v3656_v30, %v3663_v32 }
 0x993   :  { %v3666_v42 = vmax.f32 %v3665_v10, 0.0 }
 0x995   :  { %v3667_v24 = vadd.f32 1e-05, %v3666_v42 }
 0x997   :  { %7873 = vrsqrt.f32 %v3667_v24 }
 0x9a1   :  { %v7874_v3 = vpop.eup %7873 }
 0x9a2   :  { %v3675_v54 = vmul.f32 %v7874_v3, %v3673_v49 }
 0x9a4   :  { %3685 = vperm.xlu1 %7499, %v3675_v54   ;;  %3679 = vrot.lane.b32.xlu0 %v3675_v54, %s7951_s17 }
 0x9a8   :  { %7682 = vset.pattern.permute.xlu1 %v7953_v21 }
 0xa16   :  { %v3680_v29 = vpop.permute.xlu0 %3679 }
 0xa17   :  { %v3682_v17 = vmul.f32 %v3680_v29, %v3656_v30 }
 0xa19   :  { %v3683_v34 = vsub.f32 %v6837_v56, %v3682_v17 }
 0xa1b   :  { %3698 = vperm.xlu0 %7500, %v3683_v34  }
 0xa1f   :  { %7681 = vset.pattern.permute.xlu0 %v7956_v9 }
 0xa23   :  { %v3686_v43 = vpop.permute.xlu1 %3685 }
 0xa24   :  { %v3688_v55 = vmul.f32 %v3686_v43, %v8754_v5  ;;  %v3695_v4 = vmul.f32 %v3686_v43, %v3558_v48  ;;  %v3689_v36 = vmul.f32 %v3686_v43, %v8758_v45  ;;  %v3690_v18 = vmul.f32 %v3686_v43, %v8760_v39 }
 0xa25   :  { %v3691_v45 = vmul.f32 %v3686_v43, %v8768_v41  ;;  %v3692_v39 = vmul.f32 %v3686_v43, %v8774_v40  ;;  %v3693_v1 = vmul.f32 %v3686_v43, %v8779_v51  ;;  %v3694_v31 = vmul.f32 %v3686_v43, %v8784_v57 }
 0xa9a   :  { %v3699_v13 = vpop.permute.xlu0 %3698 }
 0xa9b   :  { %v3708_v16 = vadd.f32 %v3699_v13, %v3695_v4  ;;  %v3701_v2 = vadd.f32 %v3699_v13, %v3688_v55  ;;  %v8807_v52 = vadd.f32 %v3699_v13, %v3689_v36  ;;  %v8809_v61 = vadd.f32 %v3699_v13, %v3690_v18 }
 0xa9c   :  { %v8827_v50 = vadd.f32 %v3699_v13, %v3691_v45  ;;  %v8829_v38 = vadd.f32 %v3699_v13, %v3692_v39  ;;  %v8859_v12 = vadd.f32 %v3699_v13, %v3693_v1  ;;  %v8861_v62 = vadd.f32 %v3699_v13, %v3694_v31 }
 0xa9d   :  { %v8811_v0 = vmax.f32 %v3708_v16, 0.0  ;;  %v8813_v7 = vmax.f32 %v3701_v2, 0.0  ;;  %v3710_v9 = vmax.f32 %v8807_v52, 0.0  ;;  %v3711_v5 = vmax.f32 %v8809_v61, 0.0 }
 0xa9e   :  { %v3712_v41 = vmax.f32 %v8827_v50, 0.0  ;;  %v3713_v40 = vmax.f32 %v8829_v38, 0.0  ;;  %v3714_v48 = vmax.f32 %v8859_v12, 0.0  ;;  %v3715_v51 = vmax.f32 %v8861_v62, 0.0 }
 0xa9f   :  { %3731 = vrot.lane.b32.xlu0 %v8811_v0, %s7948_s14  ;;  %3717 = vrot.lane.b32.xlu1 %v8813_v7, %s7948_s14  ;;  %v7596_v26 = vpack.i.bf16 %v3711_v5, %v3710_v9 }
 0xaa0   :  { %v7606_v58 = vpack.i.bf16 %v3713_v40, %v3712_v41  ;;  %v7651_v57 = vpack.i.bf16 %v3715_v51, %v3714_v48 }
 0xaa3   :  { %3799 = vrot.lane.b32.xlu0 %v8811_v0, %s7947_s0  ;;  %3785 = vrot.lane.b32.xlu1 %v8813_v7, %s7947_s0 }
 0xaa7   :  { %7597 = vrot.lane.b32.xlu0 %v7596_v26, %s7947_s0  ;;  %7592 = vrot.lane.b32.xlu1 %v7596_v26, %s7948_s14 }
 0xaab   :  { %3867 = vrot.lane.b32.xlu0 %v8811_v0, %s7949_s15  ;;  %3853 = vrot.lane.b32.xlu1 %v8813_v7, %s7949_s15 }
 0xaaf   :  { %7607 = vrot.lane.b32.xlu0 %v7606_v58, %s7947_s0  ;;  %7602 = vrot.lane.b32.xlu1 %v7606_v58, %s7948_s14 }
 0xab3   :  { %7617 = vrot.lane.b32.xlu0 %v7606_v58, %s7949_s15  ;;  %7612 = vrot.lane.b32.xlu1 %v7596_v26, %s7949_s15 }
 0xab7   :  { %7627 = vrot.lane.b32.xlu0 %v7596_v26, %s7950_s16  ;;  %7622 = vrot.lane.b32.xlu1 %v7596_v26, %s7951_s17 }
 0xabb   :  { %4025 = vrot.lane.b32.xlu0 %v8813_v7, %s7950_s16  ;;  %3957 = vrot.lane.b32.xlu1 %v8813_v7, %s7951_s17 }
 0xabf   :  { %7637 = vrot.lane.b32.xlu0 %v7606_v58, %s7950_s16  ;;  %7632 = vrot.lane.b32.xlu1 %v7606_v58, %s7951_s17 }
 0xac3   :  { %7642 = vrot.lane.b32.xlu0 %v7596_v26, %s7952_s18  ;;  %4093 = vrot.lane.b32.xlu1 %v8813_v7, %s7952_s18 }
 0xac7   :  { %7652 = vrot.lane.b32.xlu0 %v7651_v57, %s7947_s0  ;;  %7647 = vrot.lane.b32.xlu1 %v7651_v57, %s7948_s14 }
 0xacb   :  { %7662 = vrot.lane.b32.xlu0 %v7651_v57, %s7949_s15  ;;  %7657 = vrot.lane.b32.xlu1 %v7606_v58, %s7952_s18 }
 0xacf   :  { %7672 = vrot.lane.b32.xlu0 %v7651_v57, %s7950_s16  ;;  %7667 = vrot.lane.b32.xlu1 %v7651_v57, %s7951_s17 }
 0xad3   :  { %4039 = vrot.lane.b32.xlu0 %v8811_v0, %s7950_s16  ;;  %3971 = vrot.lane.b32.xlu1 %v8811_v0, %s7951_s17 }
 0xad7   :  { %4107 = vrot.lane.b32.xlu0 %v8811_v0, %s7952_s18  ;;  %7677 = vrot.lane.b32.xlu1 %v7651_v57, %s7952_s18 }
 0xb11   :  { %v8887_v8 = vpop.permute.xlu0 %3731  ;;  %v3718_v25 = vpop.permute.xlu1 %3717 }
 0xb12   :  { %v3740_v35 = vsel %vm1805_vm3, %v8887_v8, %v3718_v25 }
 0xb13   :  { %v3741_v20 = vmul.f32 %v8185_v15, %v3740_v35 }
 0xb15   :  { %v8889_v47 = vpop.permute.xlu0 %3799  ;;  %v3786_v11 = vpop.permute.xlu1 %3785 }
 0xb16   :  { %v3808_v22 = vsel %vm1874_vm2, %v8889_v47, %v3786_v11 }
 0xb17   :  { %v3809_v28 = vmul.f32 %v8192_v46, %v3808_v22 }
 0xb19   :  { %v7598_v37 = vpop.permute.xlu0 %7597  ;;  %v7593_v19 = vpop.permute.xlu1 %7592  ;;  %v7255_v42 = vpack.c.bf16 %v3809_v28, %v3741_v20 }
 0xb1a   :  { %v7599_v33 = vunpack.i.l.bf16 %v7598_v37  ;;  %v7594_v14 = vunpack.i.l.bf16 %v7593_v19  ;;  %v7600_v24 = vunpack.i.h.bf16 %v7598_v37  ;;  %v7595_v49 = vunpack.i.h.bf16 %v7593_v19 }
 0xb1c   :  { %v3739_v30 = vsel %vm1805_vm3, %v3718_v25, %v7594_v14  ;;  %v3807_v27 = vsel %vm1874_vm2, %v3786_v11, %v7599_v33  ;;  %v3806_v34 = vsel %vm1874_vm2, %v7599_v33, %v7600_v24  ;;  %v3738_v43 = vsel %vm1805_vm3, %v7594_v14, %v7595_v49 }
 0xb1d   :  { %v8903_v23 = vpop.permute.xlu0 %3867  ;;  %v3854_v32 = vpop.permute.xlu1 %3853  ;;  %v7256_v10 = vpack.c.bf16 %v3807_v27, %v3739_v30  ;;  %v7257_v26 = vpack.c.bf16 %v3806_v34, %v3738_v43 }
 0xb1e   :  { %v3876_v56 = vsel %vm1943_vm4, %v8903_v23, %v3854_v32 }
 0xb1f   :  { %4358 = vmatprep.subr.bf16.mxu0 %v7256_v10  ;;  %v3877_v13 = vmul.f32 %v8214_v63, %v3876_v56 }
 0xb20   :  { %4359 = vmatpush1.bf16.msra.mxu0 %v7255_v42 }
 0xb21   :  { %v8905_v3 = vpop.permute.xlu0 %7607  ;;  %v8907_v54 = vpop.permute.xlu1 %7602  ;;  %v7263_v57 = vpack.c.bf16 %v8813_v7, %v3877_v13 }
 0xb22   :  { %v7609_v29 = vunpack.i.l.bf16 %v8905_v3  ;;  %v7604_v17 = vunpack.i.l.bf16 %v8907_v54 }
 0xb24   :  { %v3737_v55 = vsel %vm1805_vm3, %v7595_v49, %v7604_v17  ;;  %v3805_v4 = vsel %vm1874_vm2, %v7600_v24, %v7609_v29 }
 0xb25   :  { %v8927_v36 = vpop.permute.xlu0 %7617  ;;  %v7613_v18 = vpop.permute.xlu1 %7612  ;;  %v7258_v16 = vpack.c.bf16 %v3805_v4, %v3737_v55 }
 0xb26   :  { %v7619_v2 = vunpack.i.l.bf16 %v8927_v36  ;;  %v7615_v45 = vunpack.i.h.bf16 %v7613_v18  ;;  %v7614_v39 = vunpack.i.l.bf16 %v7613_v18 }
 0xb27   :  { %4399 = vmatprep.subr.bf16.mxu1 %v7258_v16  ;;  %v7610_v16 = vunpack.i.h.bf16 %v8905_v3 }
 0xb28   :  { %v3874_v58 = vsel %vm1943_vm4, %v7614_v39, %v7615_v45  ;;  %4400 = vmatpush1.bf16.msra.mxu1 %v7257_v26  ;;  %v3875_v1 = vsel %vm1943_vm4, %v3854_v32, %v7614_v39  ;;  %v3873_v31 = vsel %vm1943_vm4, %v7615_v45, %v7619_v2  ;;  %v7605_v26 = vunpack.i.h.bf16 %v8907_v54 }
 0xb29   :  { %v7265_v25 = vpack.c.bf16 %v3711_v5, %v3874_v58  ;;  %v7628_v11 = vpop.permute.xlu0 %7627  ;;  %v7623_v22 = vpop.permute.xlu1 %7622  ;;  %v7264_v35 = vpack.c.bf16 %v3710_v9, %v3875_v1  ;;  %v7266_v37 = vpack.c.bf16 %v3712_v41, %v3873_v31  ;;  %v7620_v58 = vunpack.i.h.bf16 %v8927_v36 }
 0xb2a   :  { %v7630_v19 = vunpack.i.h.bf16 %v7628_v11  ;;  %v7629_v28 = vunpack.i.l.bf16 %v7628_v11  ;;  %v7625_v33 = vunpack.i.h.bf16 %v7623_v22  ;;  %v7624_v14 = vunpack.i.l.bf16 %v7623_v22 }
 0xb2b   :  { %4360 = vmatprep.subr.bf16.mxu0 %v7264_v35  ;;  %4401 = vmatprep.subr.bf16.mxu1 %v7266_v37  ;;  %v3804_v35 = vsel %vm1874_vm2, %v7609_v29, %v7610_v16  ;;  %v3872_v3 = vsel %vm1943_vm4, %v7619_v2, %v7620_v58 }
 0xb2c   :  { %4361 = vmatpush1.bf16.msra.mxu0 %v7263_v57  ;;  %4402 = vmatpush1.bf16.msra.mxu1 %v7265_v25  ;;  %v3978_v61 = vsel %vm2048_vm8, %v7624_v14, %v7625_v33  ;;  %v4046_v7 = vsel %vm2117_vm9, %v7629_v28, %v7630_v19 }
 0xb2d   :  { %v8949_v5 = vpop.permute.xlu0 %4025  ;;  %v8951_v52 = vpop.permute.xlu1 %3957  ;;  %v7272_v9 = vpack.c.bf16 %v4046_v7, %v3978_v61 }
 0xb2e   :  { %v4047_v50 = vsel %vm2117_vm9, %v8949_v5, %v7629_v28  ;;  %v3979_v41 = vsel %vm2048_vm8, %v8951_v52, %v7624_v14  ;;  %v3736_v28 = vsel %vm1805_vm3, %v7604_v17, %v7605_v26  ;;  %v9010_v17 = vld [vmem:[%s9793_s2 + $0x8] sm:$0xf] }
 0xb2f   :  { %v7271_v20 = vpack.c.bf16 %v4047_v50, %v3979_v41  ;;  %4362 = vmatprep.subr.bf16.mxu0 %v7272_v9  ;;  %v7259_v36 = vpack.c.bf16 %v3804_v35, %v3736_v28 }
 0xb31   :  { %v8959_v30 = vpop.permute.xlu0 %7637  ;;  %v8961_v27 = vpop.permute.xlu1 %7632  ;;  %4363 = vmatpush1.bf16.msra.mxu0 %v7271_v20 }
 0xb32   :  { %v7640_v32 = vunpack.i.h.bf16 %v8959_v30  ;;  %v7639_v10 = vunpack.i.l.bf16 %v8959_v30  ;;  %v7635_v42 = vunpack.i.h.bf16 %v8961_v27  ;;  %v7634_v24 = vunpack.i.l.bf16 %v8961_v27 }
 0xb34   :  { %v4045_v49 = vsel %vm2117_vm9, %v7630_v19, %v7639_v10  ;;  %v3977_v56 = vsel %vm2048_vm8, %v7625_v33, %v7634_v24  ;;  %v3976_v34 = vsel %vm2048_vm8, %v7634_v24, %v7635_v42  ;;  %v4044_v43 = vsel %vm2117_vm9, %v7639_v10, %v7640_v32 }
 0xb35   :  { %v7273_v55 = vpack.c.bf16 %v4045_v49, %v3977_v56  ;;  %v7643_v4 = vpop.permute.xlu0 %7642  ;;  %v8979_v13 = vpop.permute.xlu1 %4093  ;;  %v7274_v18 = vpack.c.bf16 %v4044_v43, %v3976_v34  ;;  %v7267_v10 = vpack.c.bf16 %v3713_v40, %v3872_v3 }
 0xb36   :  { %v7645_v45 = vunpack.i.h.bf16 %v7643_v4  ;;  %v7644_v39 = vunpack.i.l.bf16 %v7643_v4 }
 0xb37   :  { %4403 = vmatprep.subr.bf16.mxu1 %v7274_v18 }
 0xb38   :  { %v4114_v1 = vsel %vm2186_vm10, %v7644_v39, %v7645_v45  ;;  %v4115_v31 = vsel %vm2186_vm10, %v8979_v13, %v7644_v39  ;;  %4404 = vmatpush1.bf16.msra.mxu1 %v7273_v55 }
 0xb39   :  { %v7280_v57 = vpack.c.bf16 %v4114_v1, %v4114_v1  ;;  %v7279_v25 = vpack.c.bf16 %v4115_v31, %v4115_v31  ;;  %v7653_v11 = vpop.permute.xlu0 %7652  ;;  %v7648_v22 = vpop.permute.xlu1 %7647 }
 0xb3a   :  { %v7654_v37 = vunpack.i.l.bf16 %v7653_v11  ;;  %v7649_v19 = vunpack.i.l.bf16 %v7648_v22  ;;  %v7655_v33 = vunpack.i.h.bf16 %v7653_v11  ;;  %v7650_v14 = vunpack.i.h.bf16 %v7648_v22 }
 0xb3b   :  { %6899 = vmatprep.subr.msk.bf16.mxu0 %vm2412_vm11, %v7280_v57  ;;  %v4335_v61 = vsel %vm2412_vm11, %v7279_v25, 0 }
 0xb3c   :  { %4365 = vmatpush1.bf16.msra.mxu0 %v4335_v61  ;;  %v3735_v29 = vsel %vm1805_vm3, %v7605_v26, %v7649_v19  ;;  %v3803_v54 = vsel %vm1874_vm2, %v7610_v16, %v7654_v37  ;;  %v3802_v24 = vsel %vm1874_vm2, %v7654_v37, %v7655_v33  ;;  %v3733_v56 = vsel %vm1805_vm3, %v7650_v14, %v8887_v8 }
 0xb3d   :  { %v7663_v7 = vpop.permute.xlu0 %7662  ;;  %v9012_v9 = vpop.permute.xlu1 %7657  ;;  %v7260_v50 = vpack.c.bf16 %v3803_v54, %v3735_v29  ;;  %v3801_v43 = vsel %vm1874_vm2, %v7655_v33, %v8889_v47  ;;  %v3734_v55 = vsel %vm1805_vm3, %v7649_v19, %v7650_v14 }
 0xb3e   :  { %v7664_v41 = vunpack.i.l.bf16 %v7663_v7  ;;  %v7660_v2 = vunpack.i.h.bf16 %v9012_v9  ;;  %v7659_v20 = vunpack.i.l.bf16 %v9012_v9  ;;  %v7665_v49 = vunpack.i.h.bf16 %v7663_v7 }
 0xb3f   :  { %4440 = vmatprep.subr.bf16.mxu0 %v7260_v50  ;;  %6900 = vmatmul.mubr.msk.bf16.vlgmr.msra.gmra.mrb[28].mxu0 %vm2408_vm13, %v9010_v17  ;;  %v7262_v31 = vpack.c.bf16 %v3801_v43, %v3733_v56  ;;  %v7261_v11 = vpack.c.bf16 %v3802_v24, %v3734_v55 }
 0xb40   :  { %v4112_v34 = vsel %vm2186_vm10, %v7659_v20, %v7660_v2  ;;  %4441 = vmatpush1.bf16.msra.mxu0 %v7259_v36  ;;  %v3871_v38 = vsel %vm1943_vm4, %v7620_v58, %v7664_v41  ;;  %v4113_v40 = vsel %vm2186_vm10, %v7645_v45, %v7659_v20  ;;  %4472 = vmatprep.mubr.bf16.mxu0 %v7953_v21 }
 0xb41   :  { %v7282_v8 = vpack.c.bf16 %v4112_v34, %v4112_v34  ;;  %v7673_v4 = vpop.permute.xlu0 %7672  ;;  %v7668_v18 = vpop.permute.xlu1 %7667  ;;  %v7268_v16 = vpack.c.bf16 %v3714_v48, %v3871_v38  ;;  %v7281_v39 = vpack.c.bf16 %v4113_v40, %v4113_v40  ;;  %v3869_v57 = vsel %vm1943_vm4, %v7665_v49, %v8903_v23 }
 0xb42   :  { %v7675_v26 = vunpack.i.h.bf16 %v7673_v4  ;;  %v7674_v58 = vunpack.i.l.bf16 %v7673_v4  ;;  %v7670_v1 = vunpack.i.h.bf16 %v7668_v18  ;;  %v7669_v45 = vunpack.i.l.bf16 %v7668_v18 }
 0xb43   :  { %6901 = vmatprep.subr.msk.bf16.mxu1 %vm2412_vm11, %v7282_v8  ;;  %4442 = vmatprep.subr.bf16.mxu0 %v7268_v16  ;;  %v4341_v47 = vsel %vm2412_vm11, %v7281_v39, 0  ;;  %v3870_v30 = vsel %vm1943_vm4, %v7664_v41, %v7665_v49  ;;  %v7270_v33 = vpack.c.bf16 %v8811_v0, %v3869_v57 }
 0xb44   :  { %v4043_v12 = vsel %vm2117_vm9, %v7640_v32, %v7674_v58  ;;  %v3975_v48 = vsel %vm2048_vm8, %v7635_v42, %v7669_v45  ;;  %4406 = vmatpush1.bf16.msra.mxu1 %v4341_v47  ;;  %4443 = vmatpush1.bf16.msra.mxu0 %v7267_v10  ;;  %v3974_v25 = vsel %vm2048_vm8, %v7669_v45, %v7670_v1 }
 0xb45   :  { %v4040_v22 = vpop.permute.xlu0 %4039  ;;  %v3972_v35 = vpop.permute.xlu1 %3971  ;;  %4481 = vmatprep.subr.bf16.mxu1 %v7262_v31  ;;  %v4042_v23 = vsel %vm2117_vm9, %v7674_v58, %v7675_v26  ;;  %v7275_v32 = vpack.c.bf16 %v4043_v12, %v3975_v48 }
 0xb46   :  { %v4048_v27 = vsel %vm2117_vm9, %v4040_v22, %v8949_v5  ;;  %v3980_v42 = vsel %vm2048_vm8, %v3972_v35, %v8951_v52  ;;  %v7276_v28 = vpack.c.bf16 %v4042_v23, %v3974_v25  ;;  %v7269_v52 = vpack.c.bf16 %v3715_v51, %v3870_v30 }
 0xb47   :  { %v4056_v37 = vmul.f32 %v8351_v60, %v4048_v27  ;;  %v3988_v19 = vmul.f32 %v8334_v59, %v3980_v42  ;;  %6902 = vmatmul.mubr.msk.bf16.vlgmr.msra.gmra.mrb[28].mxu1 %vm2408_vm13, %v9010_v17  ;;  %v4041_v0 = vsel %vm2117_vm9, %v7675_v26, %v4040_v22  ;;  %v3973_v54 = vsel %vm2048_vm8, %v7670_v1, %v3972_v35 }
 0xb48   :  { %4482 = vmatpush1.bf16.msra.mxu1 %v7261_v11  ;;  %4513 = vmatprep.mubr.bf16.mxu1 %v7953_v21  ;;  %v7277_v20 = vpack.c.bf16 %v4041_v0, %v3973_v54  ;;  %v9141_v0 = vld [vmem:[%s9794_s3] sm:$0xff]  ;;  %v6908_v54 = vld [vmem:[%s9795_s4 + $0x10] sm:$0xff] }
 0xb49   :  { %4444 = vmatprep.subr.bf16.mxu0 %v7276_v28  ;;  %v4108_v14 = vpop.permute.xlu0 %4107  ;;  %v7678_v5 = vpop.permute.xlu1 %7677  ;;  %4483 = vmatprep.subr.bf16.mxu1 %v7270_v33  ;;  %v7278_v50 = vpack.c.bf16 %v4056_v37, %v3988_v19 }
 0xb4a   :  { %4445 = vmatpush1.bf16.msra.mxu0 %v7275_v32  ;;  %v4116_v61 = vsel %vm2186_vm10, %v4108_v14, %v8979_v13  ;;  %v7680_v3 = vunpack.i.h.bf16 %v7678_v5  ;;  %v7679_v29 = vunpack.i.l.bf16 %v7678_v5 }
 0xb4b   :  { %v4124_v7 = vmul.f32 %v8376_v53, %v4116_v61 }
 0xb4c   :  { %v4110_v62 = vsel %vm2186_vm10, %v7679_v29, %v7680_v3  ;;  %4484 = vmatpush1.bf16.msra.mxu1 %v7269_v52  ;;  %v4111_v51 = vsel %vm2186_vm10, %v7660_v2, %v7679_v29  ;;  %v4109_v13 = vsel %vm2186_vm10, %v7680_v3, %v4108_v14 }
 0xb4d   :  { %v7284_v36 = vpack.c.bf16 %v4110_v62, %v4110_v62  ;;  %4485 = vmatprep.subr.bf16.mxu1 %v7278_v50  ;;  %v7283_v41 = vpack.c.bf16 %v4111_v51, %v4111_v51  ;;  %v7286_v10 = vpack.c.bf16 %v4124_v7, %v4124_v7  ;;  %v7285_v49 = vpack.c.bf16 %v4109_v13, %v4109_v13 }
 0xb4f   :  { %6903 = vmatprep.subr.msk.bf16.mxu0 %vm2412_vm11, %v7284_v36  ;;  %v4347_v24 = vsel %vm2412_vm11, %v7283_v41, 0  ;;  %v4353_v9 = vsel %vm2412_vm11, %v7285_v49, 0  ;;  %v6909_v49 = vld [vmem:[%s9796_s5 + $0x10] sm:$0xff] }
 0xb50   :  { %4447 = vmatpush1.bf16.msra.mxu0 %v4347_v24  ;;  %4486 = vmatpush1.bf16.msra.mxu1 %v7277_v20 }
 0xb51   :  { %6905 = vmatprep.subr.msk.bf16.mxu1 %vm2412_vm11, %v7286_v10  ;;  %7369 = vmatprep.subr.mxu0 %v7954_v44 }
 0xb53   :  { %6904 = vmatmul.mubr.msk.bf16.vlgmr.msra.gmra.mrb[32].mxu0 %vm2408_vm13, %v9010_v17 }
 0xb54   :  { %4488 = vmatpush1.bf16.msra.mxu1 %v4353_v9  ;;  %7371 = vmatprep.mubr.msk.f32.mxu0 %vm7955_vm0, %v7954_v44 }
 0xb57   :  { %6906 = vmatmul.mubr.msk.bf16.vlgmr.msra.gmra.mrb[32].mxu1 %vm2408_vm13, %v9010_v17 }
 0xb58   :  { %5349 = vmatprep.mubr.bf16.mxu1 %v7953_v21 }
 0xc12   :  { %v9102_v2 = vpop.f32.mrb[28].mxu0 }
 0xc13   :  { %v4531_v56 = vmul.f32 %v9102_v2, %v9102_v2  ;;  %v9106_v34 = vpop.f32.mrb[29].mxu0 }
 0xc14   :  { %v4522_v38 = vadd.f32 %v9106_v34, %v9102_v2  ;;  %v4532_v40 = vmul.f32 %v9106_v34, %v9106_v34  ;;  %v4396_v43 = vpop.f32.mrb[30].mxu0 }
 0xc15   :  { %v4397_v55 = vpop.f32.mrb[31].mxu0 }
 0xc16   :  { %v4539_v8 = vadd.f32 %v4532_v40, %v4531_v56 }
 0xc1a   :  { %v9112_v4 = vpop.f32.mrb[28].mxu1 }
 0xc1b   :  { %v4523_v17 = vadd.f32 %v4522_v38, %v9112_v4  ;;  %v4533_v18 = vmul.f32 %v9112_v4, %v9112_v4  ;;  %v9117_v16 = vpop.f32.mrb[29].mxu1 }
 0xc1c   :  { %v4534_v39 = vmul.f32 %v9117_v16, %v9117_v16  ;;  %v4437_v26 = vpop.f32.mrb[30].mxu1 }
 0xc1d   :  { %v4540_v58 = vadd.f32 %v4539_v8, %v4533_v18  ;;  %v4524_v1 = vadd.f32 %v4523_v17, %v9117_v16  ;;  %v4438_v45 = vpop.f32.mrb[31].mxu1 }
 0xc1f   :  { %v4541_v47 = vadd.f32 %v4540_v58, %v4534_v39 }
 0xc26   :  { %v9122_v31 = vpop.f32.mrb[32].mxu0 }
 0xc27   :  { %v4525_v57 = vadd.f32 %v4524_v1, %v9122_v31  ;;  %v4535_v12 = vmul.f32 %v9122_v31, %v9122_v31  ;;  %v9127_v48 = vpop.f32.mrb[33].mxu0 }
 0xc28   :  { %v4536_v25 = vmul.f32 %v9127_v48, %v9127_v48  ;;  %v4478_v11 = vpop.f32.mrb[34].mxu0 }
 0xc29   :  { %v4542_v22 = vadd.f32 %v4541_v47, %v4535_v12  ;;  %v4526_v35 = vadd.f32 %v4525_v57, %v9127_v48  ;;  %v4479_v23 = vpop.f32.mrb[35].mxu0 }
 0xc2a   :  { %v9132_v30 = vpop.f32.mrb[32].mxu1 }
 0xc2b   :  { %v4543_v32 = vadd.f32 %v4542_v22, %v4536_v25  ;;  %v4527_v27 = vadd.f32 %v4526_v35, %v9132_v30  ;;  %v4537_v42 = vmul.f32 %v9132_v30, %v9132_v30  ;;  %v4517_v37 = vpop.f32.mrb[33].mxu1 }
 0xc2c   :  { %v4538_v19 = vmul.f32 %v4517_v37, %v4517_v37  ;;  %v4519_v28 = vpop.f32.mrb[34].mxu1 }
 0xc2d   :  { %v4544_v33 = vadd.f32 %v4543_v32, %v4537_v42  ;;  %v4528_v14 = vadd.f32 %v4527_v27, %v4517_v37  ;;  %v4520_v5 = vpop.f32.mrb[35].mxu1 }
 0xc2f   :  { %4529 = vadd.xlane.f32.xlu1 %v4528_v14  ;;  %v4545_v52 = vadd.f32 %v4544_v33, %v4538_v19 }
 0xc31   :  { %4546 = vadd.xlane.f32.xlu0 %v4545_v52 }
 0xc40   :  { %4631 = vrot.lane.b32.xlu1 %v6908_v54, %s7949_s15 }
 0xcbc   :  { %v4530_v61 = vpop.xlane.xlu1 %4529 }
 0xcbe   :  { %v4547_v3 = vpop.xlane.xlu0 %4546 }
 0xcbf   :  { %v4548_v29 = vsel %vm2627_vm1, %v4530_v61, %v4547_v3 }
 0xcc0   :  { %7370 = vmatpush3.msra.mxu0 %v4548_v29  ;;  %v4632_v20 = vpop.permute.xlu1 %4631 }
 0xcc1   :  { %7372 = vmatmul.mubr.msk.f32.vlgmr.msra.gmra.mrb[18].mxu0 %vm2629_vm5, %v9141_v0 }
 0xcc2   :  { %5390 = vmatprep.mubr.bf16.mxu0 %v7953_v21 }
 0xd94   :  { %v4615_v7 = vpop.f32.mrb[18].mxu0 }
 0xd95   :  { %v4619_v50 = vmul.f32 %v4615_v7, %v4615_v7  ;;  %v7373_v62 = vpop.f32.mrb[19].mxu0 }
 0xd97   :  { %4621 = vrot.lane.b32.xlu0 %v4619_v50, %s7949_s15 }
 0xe09   :  { %v4622_v51 = vpop.permute.xlu0 %4621 }
 0xe0a   :  { %v4624_v13 = vsub.f32 %v4615_v7, %v4622_v51 }
 0xe0c   :  { %v4625_v36 = vmax.f32 %v4624_v13, 0.0 }
 0xe0e   :  { %v4626_v41 = vadd.f32 1e-05, %v4625_v36 }
 0xe10   :  { %7875 = vrsqrt.f32 %v4626_v41 }
 0xe1a   :  { %v7876_v10 = vpop.eup %7875 }
 0xe1b   :  { %v4634_v24 = vmul.f32 %v7876_v10, %v4632_v20 }
 0xe1d   :  { %4644 = vperm.xlu0 %7681, %v4634_v24   ;;  %4638 = vrot.lane.b32.xlu1 %v4634_v24, %s7951_s17 }
 0xe8f   :  { %v4639_v9 = vpop.permute.xlu1 %4638 }
 0xe90   :  { %v4641_v56 = vmul.f32 %v4639_v9, %v4615_v7 }
 0xe92   :  { %v4642_v38 = vsub.f32 %v6909_v49, %v4641_v56 }
 0xe94   :  { %4657 = vperm.xlu1 %7682, %v4642_v38  }
 0xe9c   :  { %v4645_v40 = vpop.permute.xlu0 %4644 }
 0xe9d   :  { %v4647_v43 = vmul.f32 %v4645_v40, %v9102_v2  ;;  %v4654_v55 = vmul.f32 %v4645_v40, %v4517_v37  ;;  %v4648_v17 = vmul.f32 %v4645_v40, %v9106_v34  ;;  %v4649_v18 = vmul.f32 %v4645_v40, %v9112_v4 }
 0xe9e   :  { %v4650_v4 = vmul.f32 %v4645_v40, %v9117_v16  ;;  %v4651_v57 = vmul.f32 %v4645_v40, %v9122_v31  ;;  %v4652_v35 = vmul.f32 %v4645_v40, %v9127_v48  ;;  %v4653_v23 = vmul.f32 %v4645_v40, %v9132_v30 }
 0xf13   :  { %v4658_v8 = vpop.permute.xlu1 %4657 }
 0xf14   :  { %v4660_v39 = vadd.f32 %v4658_v8, %v4647_v43  ;;  %v4667_v26 = vadd.f32 %v4658_v8, %v4654_v55  ;;  %v9158_v58 = vadd.f32 %v4658_v8, %v4648_v17  ;;  %v9160_v1 = vadd.f32 %v4658_v8, %v4649_v18 }
 0xf15   :  { %v9178_v12 = vadd.f32 %v4658_v8, %v4650_v4  ;;  %v9180_v25 = vadd.f32 %v4658_v8, %v4651_v57  ;;  %v9210_v32 = vadd.f32 %v4658_v8, %v4652_v35  ;;  %v9212_v27 = vadd.f32 %v4658_v8, %v4653_v23 }
 0xf16   :  { %v9162_v45 = vmax.f32 %v4660_v39, 0.0  ;;  %v9164_v47 = vmax.f32 %v4667_v26, 0.0  ;;  %v4669_v2 = vmax.f32 %v9158_v58, 0.0  ;;  %v4670_v34 = vmax.f32 %v9160_v1, 0.0 }
 0xf17   :  { %v4671_v16 = vmax.f32 %v9178_v12, 0.0  ;;  %v4672_v31 = vmax.f32 %v9180_v25, 0.0  ;;  %v4673_v42 = vmax.f32 %v9210_v32, 0.0  ;;  %v4674_v48 = vmax.f32 %v9212_v27, 0.0 }
 0xf18   :  { %4676 = vrot.lane.b32.xlu1 %v9162_v45, %s7948_s14  ;;  %4690 = vrot.lane.b32.xlu0 %v9164_v47, %s7948_s14  ;;  %v7683_v11 = vpack.i.bf16 %v4670_v34, %v4669_v2 }
 0xf19   :  { %v7693_v22 = vpack.i.bf16 %v4672_v31, %v4671_v16  ;;  %v7738_v30 = vpack.i.bf16 %v4674_v48, %v4673_v42 }
 0xf1c   :  { %4744 = vrot.lane.b32.xlu1 %v9162_v45, %s7947_s0  ;;  %4758 = vrot.lane.b32.xlu0 %v9164_v47, %s7947_s0 }
 0xf20   :  { %7684 = vrot.lane.b32.xlu1 %v7683_v11, %s7948_s14  ;;  %7689 = vrot.lane.b32.xlu0 %v7683_v11, %s7947_s0 }
 0xf24   :  { %4812 = vrot.lane.b32.xlu1 %v9162_v45, %s7949_s15  ;;  %4826 = vrot.lane.b32.xlu0 %v9164_v47, %s7949_s15 }
 0xf28   :  { %7694 = vrot.lane.b32.xlu1 %v7693_v22, %s7948_s14  ;;  %7699 = vrot.lane.b32.xlu0 %v7693_v22, %s7947_s0 }
 0xf2c   :  { %7704 = vrot.lane.b32.xlu1 %v7683_v11, %s7949_s15  ;;  %7709 = vrot.lane.b32.xlu0 %v7693_v22, %s7949_s15 }
 0xf30   :  { %7714 = vrot.lane.b32.xlu1 %v7683_v11, %s7951_s17  ;;  %7719 = vrot.lane.b32.xlu0 %v7683_v11, %s7950_s16 }
 0xf34   :  { %4916 = vrot.lane.b32.xlu1 %v9162_v45, %s7951_s17  ;;  %4984 = vrot.lane.b32.xlu0 %v9162_v45, %s7950_s16 }
 0xf38   :  { %7724 = vrot.lane.b32.xlu1 %v7693_v22, %s7951_s17  ;;  %7729 = vrot.lane.b32.xlu0 %v7693_v22, %s7950_s16 }
 0xf3c   :  { %5052 = vrot.lane.b32.xlu1 %v9162_v45, %s7952_s18  ;;  %7734 = vrot.lane.b32.xlu0 %v7683_v11, %s7952_s18 }
 0xf40   :  { %7739 = vrot.lane.b32.xlu1 %v7738_v30, %s7948_s14  ;;  %7744 = vrot.lane.b32.xlu0 %v7738_v30, %s7947_s0 }
 0xf44   :  { %7749 = vrot.lane.b32.xlu1 %v7693_v22, %s7952_s18  ;;  %7754 = vrot.lane.b32.xlu0 %v7738_v30, %s7949_s15 }
 0xf48   :  { %7759 = vrot.lane.b32.xlu1 %v7738_v30, %s7951_s17  ;;  %7764 = vrot.lane.b32.xlu0 %v7738_v30, %s7950_s16 }
 0xf4c   :  { %4930 = vrot.lane.b32.xlu1 %v9164_v47, %s7951_s17  ;;  %4998 = vrot.lane.b32.xlu0 %v9164_v47, %s7950_s16 }
 0xf50   :  { %7769 = vrot.lane.b32.xlu1 %v7738_v30, %s7952_s18  ;;  %5066 = vrot.lane.b32.xlu0 %v9164_v47, %s7952_s18 }
 0xf8a   :  { %v4677_v37 = vpop.permute.xlu1 %4676  ;;  %v9238_v19 = vpop.permute.xlu0 %4690 }
 0xf8b   :  { %v4699_v52 = vsel %vm1805_vm3, %v9238_v19, %v4677_v37 }
 0xf8c   :  { %v4700_v50 = vmul.f32 %v8185_v15, %v4699_v52 }
 0xf8e   :  { %v4745_v28 = vpop.permute.xlu1 %4744  ;;  %v9240_v33 = vpop.permute.xlu0 %4758 }
 0xf8f   :  { %v4767_v14 = vsel %vm1874_vm2, %v9240_v33, %v4745_v28 }
 0xf90   :  { %v4768_v29 = vmul.f32 %v8192_v46, %v4767_v14 }
 0xf92   :  { %v7685_v5 = vpop.permute.xlu1 %7684  ;;  %v7690_v61 = vpop.permute.xlu0 %7689  ;;  %v7287_v41 = vpack.c.bf16 %v4768_v29, %v4700_v50 }
 0xf93   :  { %v7686_v3 = vunpack.i.l.bf16 %v7685_v5  ;;  %v7691_v54 = vunpack.i.l.bf16 %v7690_v61  ;;  %v7692_v20 = vunpack.i.h.bf16 %v7690_v61  ;;  %v7687_v10 = vunpack.i.h.bf16 %v7685_v5 }
 0xf95   :  { %v4698_v7 = vsel %vm1805_vm3, %v4677_v37, %v7686_v3  ;;  %v4766_v51 = vsel %vm1874_vm2, %v4745_v28, %v7691_v54  ;;  %v4765_v40 = vsel %vm1874_vm2, %v7691_v54, %v7692_v20  ;;  %v4697_v43 = vsel %vm1805_vm3, %v7686_v3, %v7687_v10 }
 0xf96   :  { %v4813_v62 = vpop.permute.xlu1 %4812  ;;  %v9254_v13 = vpop.permute.xlu0 %4826  ;;  %v7288_v36 = vpack.c.bf16 %v4766_v51, %v4698_v7  ;;  %v7289_v11 = vpack.c.bf16 %v4765_v40, %v4697_v43 }
 0xf97   :  { %v4835_v56 = vsel %vm1943_vm4, %v9254_v13, %v4813_v62 }
 0xf98   :  { %5317 = vmatprep.subr.bf16.mxu1 %v7288_v36  ;;  %v4836_v18 = vmul.f32 %v8214_v63, %v4835_v56 }
 0xf99   :  { %5318 = vmatpush1.bf16.msra.mxu1 %v7287_v41 }
 0xf9a   :  { %v9256_v24 = vpop.permute.xlu1 %7694  ;;  %v9258_v49 = vpop.permute.xlu0 %7699  ;;  %v7295_v5 = vpack.c.bf16 %v9162_v45, %v4836_v18 }
 0xf9b   :  { %v7696_v9 = vunpack.i.l.bf16 %v9256_v24  ;;  %v7701_v38 = vunpack.i.l.bf16 %v9258_v49 }
 0xf9d   :  { %v4696_v55 = vsel %vm1805_vm3, %v7687_v10, %v7696_v9  ;;  %v4764_v17 = vsel %vm1874_vm2, %v7692_v20, %v7701_v38 }
 0xf9e   :  { %v7705_v8 = vpop.permute.xlu1 %7704  ;;  %v9278_v39 = vpop.permute.xlu0 %7709  ;;  %v7290_v57 = vpack.c.bf16 %v4764_v17, %v4696_v55 }
 0xf9f   :  { %v7707_v26 = vunpack.i.h.bf16 %v7705_v8  ;;  %v7706_v4 = vunpack.i.l.bf16 %v7705_v8  ;;  %v7711_v22 = vunpack.i.l.bf16 %v9278_v39 }
 0xfa0   :  { %5358 = vmatprep.subr.bf16.mxu0 %v7290_v57  ;;  %v7697_v57 = vunpack.i.h.bf16 %v9256_v24 }
 0xfa1   :  { %v4833_v35 = vsel %vm1943_vm4, %v7706_v4, %v7707_v26  ;;  %v4834_v23 = vsel %vm1943_vm4, %v4813_v62, %v7706_v4  ;;  %5359 = vmatpush1.bf16.msra.mxu0 %v7289_v11  ;;  %v4832_v14 = vsel %vm1943_vm4, %v7707_v26, %v7711_v22  ;;  %v7702_v4 = vunpack.i.h.bf16 %v9258_v49 }
 0xfa2   :  { %v7297_v30 = vpack.c.bf16 %v4670_v34, %v4833_v35  ;;  %v7715_v37 = vpop.permute.xlu1 %7714  ;;  %v7296_v28 = vpack.c.bf16 %v4669_v2, %v4834_v23  ;;  %v7720_v52 = vpop.permute.xlu0 %7719  ;;  %v7298_v29 = vpack.c.bf16 %v4671_v16, %v4832_v14  ;;  %v7712_v23 = vunpack.i.h.bf16 %v9278_v39  ;;  %v9363_v39 = vld [vmem:[%s9793_s2 + $0xc] sm:$0xf] }
 0xfa3   :  { %v7717_v61 = vunpack.i.h.bf16 %v7715_v37  ;;  %v7716_v3 = vunpack.i.l.bf16 %v7715_v37  ;;  %v7722_v1 = vunpack.i.h.bf16 %v7720_v52  ;;  %v7721_v34 = vunpack.i.l.bf16 %v7720_v52 }
 0xfa4   :  { %5319 = vmatprep.subr.bf16.mxu1 %v7296_v28  ;;  %5360 = vmatprep.subr.bf16.mxu0 %v7298_v29  ;;  %v4695_v29 = vsel %vm1805_vm3, %v7696_v9, %v7697_v57 }
 0xfa5   :  { %5320 = vmatpush1.bf16.msra.mxu1 %v7295_v5  ;;  %v4937_v58 = vsel %vm2048_vm8, %v7716_v3, %v7717_v61  ;;  %5361 = vmatpush1.bf16.msra.mxu0 %v7297_v30  ;;  %v5005_v45 = vsel %vm2117_vm9, %v7721_v34, %v7722_v1 }
 0xfa6   :  { %v9298_v2 = vpop.permute.xlu1 %4916  ;;  %v9302_v54 = vpop.permute.xlu0 %4984  ;;  %v7304_v16 = vpack.c.bf16 %v5005_v45, %v4937_v58  ;;  %v4831_v58 = vsel %vm1943_vm4, %v7711_v22, %v7712_v23 }
 0xfa7   :  { %v4938_v12 = vsel %vm2048_vm8, %v9298_v2, %v7716_v3  ;;  %v5006_v7 = vsel %vm2117_vm9, %v9302_v54, %v7721_v34  ;;  %v4763_v3 = vsel %vm1874_vm2, %v7701_v38, %v7702_v4 }
 0xfa8   :  { %v7303_v50 = vpack.c.bf16 %v5006_v7, %v4938_v12  ;;  %5321 = vmatprep.subr.bf16.mxu1 %v7304_v16 }
 0xfaa   :  { %v9310_v62 = vpop.permute.xlu1 %7724  ;;  %v9312_v51 = vpop.permute.xlu0 %7729  ;;  %5322 = vmatpush1.bf16.msra.mxu1 %v7303_v50  ;;  %v7291_v50 = vpack.c.bf16 %v4763_v3, %v4695_v29 }
 0xfab   :  { %v7727_v36 = vunpack.i.h.bf16 %v9310_v62  ;;  %v7726_v41 = vunpack.i.l.bf16 %v9310_v62  ;;  %v7732_v20 = vunpack.i.h.bf16 %v9312_v51  ;;  %v7731_v10 = vunpack.i.l.bf16 %v9312_v51 }
 0xfad   :  { %v4936_v56 = vsel %vm2048_vm8, %v7717_v61, %v7726_v41  ;;  %v4935_v40 = vsel %vm2048_vm8, %v7726_v41, %v7727_v36  ;;  %v5004_v43 = vsel %vm2117_vm9, %v7722_v1, %v7731_v10  ;;  %v5003_v8 = vsel %vm2117_vm9, %v7731_v10, %v7732_v20 }
 0xfae   :  { %v9326_v55 = vpop.permute.xlu1 %5052  ;;  %v7305_v17 = vpack.c.bf16 %v5004_v43, %v4936_v56  ;;  %v7735_v18 = vpop.permute.xlu0 %7734  ;;  %v7306_v26 = vpack.c.bf16 %v5003_v8, %v4935_v40  ;;  %v7299_v41 = vpack.c.bf16 %v4672_v31, %v4831_v58 }
 0xfaf   :  { %v7737_v11 = vunpack.i.h.bf16 %v7735_v18  ;;  %v7736_v35 = vunpack.i.l.bf16 %v7735_v18 }
 0xfb0   :  { %5362 = vmatprep.subr.bf16.mxu0 %v7306_v26 }
 0xfb1   :  { %v5073_v30 = vsel %vm2186_vm10, %v7736_v35, %v7737_v11  ;;  %v5074_v37 = vsel %vm2186_vm10, %v9326_v55, %v7736_v35  ;;  %5363 = vmatpush1.bf16.msra.mxu0 %v7305_v17 }
 0xfb2   :  { %v7740_v28 = vpop.permute.xlu1 %7739  ;;  %v7312_v14 = vpack.c.bf16 %v5073_v30, %v5073_v30  ;;  %v7311_v5 = vpack.c.bf16 %v5074_v37, %v5074_v37  ;;  %v7745_v52 = vpop.permute.xlu0 %7744 }
 0xfb3   :  { %v7741_v61 = vunpack.i.l.bf16 %v7740_v28  ;;  %v7746_v1 = vunpack.i.l.bf16 %v7745_v52  ;;  %v7742_v34 = vunpack.i.h.bf16 %v7740_v28  ;;  %v7747_v45 = vunpack.i.h.bf16 %v7745_v52 }
 0xfb4   :  { %6971 = vmatprep.subr.msk.bf16.mxu1 %vm2412_vm11, %v7312_v14  ;;  %v5294_v49 = vsel %vm2412_vm11, %v7311_v5, 0 }
 0xfb5   :  { %v4694_v38 = vsel %vm1805_vm3, %v7697_v57, %v7741_v61  ;;  %5324 = vmatpush1.bf16.msra.mxu1 %v5294_v49  ;;  %v4762_v9 = vsel %vm1874_vm2, %v7702_v4, %v7746_v1  ;;  %v4692_v56 = vsel %vm1805_vm3, %v7742_v34, %v9238_v19  ;;  %v4760_v25 = vsel %vm1874_vm2, %v7747_v45, %v9240_v33 }
 0xfb6   :  { %v9356_v24 = vpop.permute.xlu1 %7749  ;;  %v7755_v22 = vpop.permute.xlu0 %7754  ;;  %v7292_v7 = vpack.c.bf16 %v4762_v9, %v4694_v38  ;;  %v4693_v31 = vsel %vm1805_vm3, %v7741_v61, %v7742_v34  ;;  %v4761_v4 = vsel %vm1874_vm2, %v7746_v1, %v7747_v45  ;;  %v7294_v14 = vpack.c.bf16 %v4760_v25, %v4692_v56 }
 0xfb7   :  { %v7752_v12 = vunpack.i.h.bf16 %v9356_v24  ;;  %v7751_v16 = vunpack.i.l.bf16 %v9356_v24  ;;  %v7756_v10 = vunpack.i.l.bf16 %v7755_v22  ;;  %v7757_v40 = vunpack.i.h.bf16 %v7755_v22 }
 0xfb8   :  { %5399 = vmatprep.subr.bf16.mxu1 %v7292_v7  ;;  %6972 = vmatmul.mubr.msk.bf16.vlgmr.msra.gmra.mrb[36].mxu1 %vm2408_vm13, %v9363_v39 }
 0xfb9   :  { %v5071_v43 = vsel %vm2186_vm10, %v7751_v16, %v7752_v12  ;;  %v5072_v8 = vsel %vm2186_vm10, %v7737_v11, %v7751_v16  ;;  %5400 = vmatpush1.bf16.msra.mxu1 %v7291_v50  ;;  %v4830_v18 = vsel %vm1943_vm4, %v7712_v23, %v7756_v10  ;;  %5431 = vmatprep.mubr.bf16.mxu1 %v7953_v21 }
 0xfba   :  { %v7314_v19 = vpack.c.bf16 %v5071_v43, %v5071_v43  ;;  %v7760_v17 = vpop.permute.xlu1 %7759  ;;  %v7313_v26 = vpack.c.bf16 %v5072_v8, %v5072_v8  ;;  %v7765_v57 = vpop.permute.xlu0 %7764  ;;  %v7300_v30 = vpack.c.bf16 %v4673_v42, %v4830_v18  ;;  %v4828_v42 = vsel %vm1943_vm4, %v7757_v40, %v9254_v13 }
 0xfbb   :  { %v7762_v35 = vunpack.i.h.bf16 %v7760_v17  ;;  %v7761_v11 = vunpack.i.l.bf16 %v7760_v17  ;;  %v7767_v33 = vunpack.i.h.bf16 %v7765_v57  ;;  %v7766_v37 = vunpack.i.l.bf16 %v7765_v57 }
 0xfbc   :  { %6973 = vmatprep.subr.msk.bf16.mxu0 %vm2412_vm11, %v7314_v19  ;;  %v5300_v28 = vsel %vm2412_vm11, %v7313_v26, 0  ;;  %5401 = vmatprep.subr.bf16.mxu1 %v7300_v30  ;;  %v4829_v13 = vsel %vm1943_vm4, %v7756_v10, %v7757_v40  ;;  %v7302_v34 = vpack.c.bf16 %v9164_v47, %v4828_v42 }
 0xfbd   :  { %v4934_v23 = vsel %vm2048_vm8, %v7727_v36, %v7761_v11  ;;  %5365 = vmatpush1.bf16.msra.mxu0 %v5300_v28  ;;  %v4933_v32 = vsel %vm2048_vm8, %v7761_v11, %v7762_v35  ;;  %v5002_v5 = vsel %vm2117_vm9, %v7732_v20, %v7766_v37  ;;  %5402 = vmatpush1.bf16.msra.mxu1 %v7299_v41 }
 0xfbe   :  { %v4931_v52 = vpop.permute.xlu1 %4930  ;;  %5440 = vmatprep.subr.bf16.mxu0 %v7294_v14  ;;  %v5001_v62 = vsel %vm2117_vm9, %v7766_v37, %v7767_v33  ;;  %v7293_v36 = vpack.c.bf16 %v4761_v4, %v4693_v31  ;;  %v7307_v61 = vpack.c.bf16 %v5002_v5, %v4934_v23  ;;  %v4999_v3 = vpop.permute.xlu0 %4998  ;;  %v7301_v45 = vpack.c.bf16 %v4674_v48, %v4829_v13 }
 0xfbf   :  { %v4939_v29 = vsel %vm2048_vm8, %v4931_v52, %v9298_v2  ;;  %v7308_v1 = vpack.c.bf16 %v5001_v62, %v4933_v32  ;;  %v5007_v51 = vsel %vm2117_vm9, %v4999_v3, %v9302_v54  ;;  %v5000_v9 = vsel %vm2117_vm9, %v7767_v33, %v4999_v3 }
 0xfc0   :  { %v4947_v20 = vmul.f32 %v8334_v59, %v4939_v29  ;;  %6974 = vmatmul.mubr.msk.bf16.vlgmr.msra.gmra.mrb[36].mxu0 %vm2408_vm13, %v9363_v39  ;;  %v5015_v58 = vmul.f32 %v8351_v60, %v5007_v51  ;;  %v4932_v47 = vsel %vm2048_vm8, %v7762_v35, %v4931_v52 }
 0xfc1   :  { %5403 = vmatprep.subr.bf16.mxu1 %v7308_v1  ;;  %5441 = vmatpush1.bf16.msra.mxu0 %v7293_v36  ;;  %v7309_v56 = vpack.c.bf16 %v5000_v9, %v4932_v47  ;;  %v6980_v47 = vld [vmem:[%s9795_s4 + $0x18] sm:$0xff] }
 0xfc2   :  { %5404 = vmatpush1.bf16.msra.mxu1 %v7307_v61  ;;  %v7770_v2 = vpop.permute.xlu1 %7769  ;;  %5442 = vmatprep.subr.bf16.mxu0 %v7302_v34  ;;  %v5067_v49 = vpop.permute.xlu0 %5066  ;;  %v7310_v16 = vpack.c.bf16 %v5015_v58, %v4947_v20 }
 0xfc3   :  { %v7772_v38 = vunpack.i.h.bf16 %v7770_v2  ;;  %v7771_v54 = vunpack.i.l.bf16 %v7770_v2  ;;  %5472 = vmatprep.mubr.bf16.mxu0 %v7953_v21  ;;  %v5075_v22 = vsel %vm2186_vm10, %v5067_v49, %v9326_v55 }
 0xfc4   :  { %v5083_v7 = vmul.f32 %v8376_v53, %v5075_v22 }
 0xfc5   :  { %v5069_v27 = vsel %vm2186_vm10, %v7771_v54, %v7772_v38  ;;  %5443 = vmatpush1.bf16.msra.mxu0 %v7301_v45  ;;  %v5070_v48 = vsel %vm2186_vm10, %v7752_v12, %v7771_v54  ;;  %v5068_v50 = vsel %vm2186_vm10, %v7772_v38, %v5067_v49 }
 0xfc6   :  { %v7316_v41 = vpack.c.bf16 %v5069_v27, %v5069_v27  ;;  %5444 = vmatprep.subr.bf16.mxu0 %v7310_v16  ;;  %v7315_v10 = vpack.c.bf16 %v5070_v48, %v5070_v48  ;;  %v7318_v55 = vpack.c.bf16 %v5083_v7, %v5083_v7  ;;  %v7317_v43 = vpack.c.bf16 %v5068_v50, %v5068_v50 }
 0xfc8   :  { %6975 = vmatprep.subr.msk.bf16.mxu1 %vm2412_vm11, %v7316_v41  ;;  %v5306_v40 = vsel %vm2412_vm11, %v7315_v10, 0  ;;  %v5312_v24 = vsel %vm2412_vm11, %v7317_v43, 0 }
 0xfc9   :  { %5406 = vmatpush1.bf16.msra.mxu1 %v5306_v40  ;;  %5445 = vmatpush1.bf16.msra.mxu0 %v7309_v56 }
 0xfca   :  { %6977 = vmatprep.subr.msk.bf16.mxu0 %vm2412_vm11, %v7318_v55  ;;  %7374 = vmatprep.subr.mxu1 %v7954_v44  ;;  %v6981_v55 = vld [vmem:[%s9796_s5 + $0x18] sm:$0xff] }
 0xfcc   :  { %6976 = vmatmul.mubr.msk.bf16.vlgmr.msra.gmra.mrb[40].mxu1 %vm2408_vm13, %v9363_v39 }
 0xfcd   :  { %5447 = vmatpush1.bf16.msra.mxu0 %v5312_v24  ;;  %7376 = vmatprep.mubr.msk.f32.mxu1 %vm7955_vm0, %v7954_v44 }
 0xfd0   :  { %6978 = vmatmul.mubr.msk.bf16.vlgmr.msra.gmra.mrb[40].mxu0 %vm2408_vm13, %v9363_v39 }
 0xfd1   :  { %6308 = vmatprep.mubr.bf16.mxu0 %v7953_v21 }
0x108b   :  { %v9453_v12 = vpop.f32.mrb[36].mxu1 }
0x108c   :  { %v5490_v8 = vmul.f32 %v9453_v12, %v9453_v12  ;;  %v9457_v25 = vpop.f32.mrb[37].mxu1 }
0x108d   :  { %v5481_v31 = vadd.f32 %v9457_v25, %v9453_v12  ;;  %v5491_v19 = vmul.f32 %v9457_v25, %v9457_v25  ;;  %v5355_v17 = vpop.f32.mrb[38].mxu1 }
0x108e   :  { %v5356_v44 = vpop.f32.mrb[39].mxu1 }
0x108f   :  { %v5498_v18 = vadd.f32 %v5491_v19, %v5490_v8 }
0x1093   :  { %v9463_v26 = vpop.f32.mrb[36].mxu0 }
0x1094   :  { %v5482_v39 = vadd.f32 %v5481_v31, %v9463_v26  ;;  %v5492_v4 = vmul.f32 %v9463_v26, %v9463_v26  ;;  %v9468_v57 = vpop.f32.mrb[37].mxu0 }
0x1095   :  { %v5493_v35 = vmul.f32 %v9468_v57, %v9468_v57  ;;  %v5396_v11 = vpop.f32.mrb[38].mxu0 }
0x1096   :  { %v5499_v30 = vadd.f32 %v5498_v18, %v5492_v4  ;;  %v5483_v33 = vadd.f32 %v5482_v39, %v9468_v57  ;;  %v5397_v37 = vpop.f32.mrb[39].mxu0 }
0x1098   :  { %v5500_v28 = vadd.f32 %v5499_v30, %v5493_v35 }
0x109f   :  { %v5433_v14 = vpop.f32.mrb[40].mxu1 }
0x10a0   :  { %v5484_v23 = vadd.f32 %v5483_v33, %v5433_v14  ;;  %v5494_v32 = vmul.f32 %v5433_v14, %v5433_v14  ;;  %v9473_v42 = vpop.f32.mrb[41].mxu1 }
0x10a1   :  { %v5495_v5 = vmul.f32 %v9473_v42, %v9473_v42  ;;  %v5437_v52 = vpop.f32.mrb[42].mxu1 }
0x10a2   :  { %v5501_v62 = vadd.f32 %v5500_v28, %v5494_v32  ;;  %v5485_v36 = vadd.f32 %v5484_v23, %v9473_v42  ;;  %v5438_v61 = vpop.f32.mrb[43].mxu1 }
0x10a3   :  { %v9478_v3 = vpop.f32.mrb[40].mxu0 }
0x10a4   :  { %v5502_v29 = vadd.f32 %v5501_v62, %v5495_v5  ;;  %v5486_v1 = vadd.f32 %v5485_v36, %v9478_v3  ;;  %v5496_v13 = vmul.f32 %v9478_v3, %v9478_v3  ;;  %v5476_v51 = vpop.f32.mrb[41].mxu0 }
0x10a5   :  { %v5497_v20 = vmul.f32 %v5476_v51, %v5476_v51  ;;  %v5478_v34 = vpop.f32.mrb[42].mxu0 }
0x10a6   :  { %v5503_v58 = vadd.f32 %v5502_v29, %v5496_v13  ;;  %v5487_v2 = vadd.f32 %v5486_v1, %v5476_v51  ;;  %v5479_v45 = vpop.f32.mrb[43].mxu0 }
0x10a8   :  { %5488 = vadd.xlane.f32.xlu1 %v5487_v2  ;;  %v5504_v49 = vadd.f32 %v5503_v58, %v5497_v20 }
0x10aa   :  { %5505 = vadd.xlane.f32.xlu0 %v5504_v49 }
0x10b9   :  { %5590 = vrot.lane.b32.xlu1 %v6980_v47, %s7949_s15 }
0x1135   :  { %v5489_v38 = vpop.xlane.xlu1 %5488 }
0x1137   :  { %v5506_v54 = vpop.xlane.xlu0 %5505 }
0x1138   :  { %v5507_v9 = vsel %vm2627_vm1, %v5489_v38, %v5506_v54 }
0x1139   :  { %7375 = vmatpush3.msra.mxu1 %v5507_v9  ;;  %v5591_v10 = vpop.permute.xlu1 %5590 }
0x113a   :  { %7377 = vmatmul.mubr.msk.f32.vlgmr.msra.gmra.mrb[26].mxu1 %vm2629_vm5, %v9141_v0 }
0x113b   :  { %6349 = vmatprep.mubr.bf16.mxu1 %v7953_v21 }
0x120d   :  { %v5574_v22 = vpop.f32.mrb[26].mxu1 }
0x120e   :  { %v5578_v16 = vmul.f32 %v5574_v22, %v5574_v22  ;;  %v7378_v7 = vpop.f32.mrb[27].mxu1 }
0x1210   :  { %5580 = vrot.lane.b32.xlu0 %v5578_v16, %s7949_s15 }
0x1282   :  { %v5581_v27 = vpop.permute.xlu0 %5580 }
0x1283   :  { %v5583_v48 = vsub.f32 %v5574_v22, %v5581_v27 }
0x1285   :  { %v5584_v50 = vmax.f32 %v5583_v48, 0.0 }
0x1287   :  { %v5585_v41 = vadd.f32 1e-05, %v5584_v50 }
0x1289   :  { %7877 = vrsqrt.f32 %v5585_v41 }
0x1293   :  { %v7878_v0 = vpop.eup %7877 }
0x1294   :  { %v5593_v56 = vmul.f32 %v7878_v0, %v5591_v10 }
0x1296   :  { %5603 = vperm.xlu0 %7681, %v5593_v56   ;;  %5597 = vrot.lane.b32.xlu1 %v5593_v56, %s7951_s17 }
0x129a   :  { %7858 = vset.pattern.permute.xlu0 %v7953_v21 }
0x1308   :  { %v5598_v40 = vpop.permute.xlu1 %5597 }
0x1309   :  { %v5600_v43 = vmul.f32 %v5598_v40, %v5574_v22 }
0x130b   :  { %v5601_v24 = vsub.f32 %v6981_v55, %v5600_v43 }
0x130d   :  { %5616 = vperm.xlu1 %7682, %v5601_v24  }
0x1315   :  { %v5604_v8 = vpop.permute.xlu0 %5603 }
0x1316   :  { %v5606_v31 = vmul.f32 %v5604_v8, %v9453_v12  ;;  %v5613_v19 = vmul.f32 %v5604_v8, %v5476_v51  ;;  %v5607_v44 = vmul.f32 %v5604_v8, %v9457_v25  ;;  %v5608_v18 = vmul.f32 %v5604_v8, %v9463_v26 }
0x1317   :  { %v5609_v4 = vmul.f32 %v5604_v8, %v9468_v57  ;;  %v5610_v35 = vmul.f32 %v5604_v8, %v5433_v14  ;;  %v5611_v52 = vmul.f32 %v5604_v8, %v9473_v42  ;;  %v5612_v62 = vmul.f32 %v5604_v8, %v9478_v3 }
0x138c   :  { %v5617_v17 = vpop.permute.xlu1 %5616 }
0x138d   :  { %v5619_v39 = vadd.f32 %v5617_v17, %v5606_v31  ;;  %v5626_v11 = vadd.f32 %v5617_v17, %v5613_v19  ;;  %v9501_v30 = vadd.f32 %v5617_v17, %v5607_v44  ;;  %v9503_v33 = vadd.f32 %v5617_v17, %v5608_v18 }
0x138e   :  { %v5622_v28 = vadd.f32 %v5617_v17, %v5609_v4  ;;  %v5623_v23 = vadd.f32 %v5617_v17, %v5610_v35  ;;  %v5624_v36 = vadd.f32 %v5617_v17, %v5611_v52  ;;  %v5625_v61 = vadd.f32 %v5617_v17, %v5612_v62 }
0x138f   :  { %v9505_v37 = vmax.f32 %v5619_v39, 0.0  ;;  %v9507_v12 = vmax.f32 %v5626_v11, 0.0  ;;  %v5628_v25 = vmax.f32 %v9501_v30, 0.0  ;;  %v5629_v26 = vmax.f32 %v9503_v33, 0.0 }
0x1390   :  { %v9515_v57 = vmax.f32 %v5622_v28, 0.0  ;;  %v9517_v14 = vmax.f32 %v5623_v23, 0.0  ;;  %v9550_v29 = vmax.f32 %v5624_v36, 0.0  ;;  %v9552_v1 = vmax.f32 %v5625_v61, 0.0 }
0x1391   :  { %5635 = vrot.lane.b32.xlu0 %v9505_v37, %s7948_s14  ;;  %5649 = vrot.lane.b32.xlu1 %v9507_v12, %s7948_s14  ;;  %v7773_v32 = vpack.i.bf16 %v5629_v26, %v5628_v25 }
0x1392   :  { %v7778_v5 = vpack.i.bf16 %v9517_v14, %v9515_v57  ;;  %v7828_v42 = vpack.i.bf16 %v9552_v1, %v9550_v29  ;;  %v7838_v3 = vpack.i.bf16 %v9550_v29, %v9517_v14 }
0x1395   :  { %5703 = vrot.lane.b32.xlu0 %v9505_v37, %s7947_s0  ;;  %5717 = vrot.lane.b32.xlu1 %v9507_v12, %s7947_s0 }
0x1399   :  { %7774 = vrot.lane.b32.xlu0 %v7773_v32, %s7948_s14  ;;  %7779 = vrot.lane.b32.xlu1 %v7778_v5, %s7948_s14 }
0x139d   :  { %7784 = vrot.lane.b32.xlu0 %v7773_v32, %s7947_s0  ;;  %7789 = vrot.lane.b32.xlu1 %v7778_v5, %s7947_s0 }
0x13a1   :  { %5771 = vrot.lane.b32.xlu0 %v9505_v37, %s7949_s15  ;;  %5785 = vrot.lane.b32.xlu1 %v9507_v12, %s7949_s15 }
0x13a5   :  { %7794 = vrot.lane.b32.xlu0 %v7773_v32, %s7949_s15  ;;  %5777 = vrot.lane.b32.xlu1 %v9515_v57, %s7949_s15 }
0x13a9   :  { %7799 = vrot.lane.b32.xlu0 %v7773_v32, %s7951_s17  ;;  %7804 = vrot.lane.b32.xlu1 %v7778_v5, %s7951_s17 }
0x13ad   :  { %7809 = vrot.lane.b32.xlu0 %v7773_v32, %s7950_s16  ;;  %7814 = vrot.lane.b32.xlu1 %v7778_v5, %s7950_s16 }
0x13b1   :  { %5875 = vrot.lane.b32.xlu0 %v9505_v37, %s7951_s17  ;;  %5943 = vrot.lane.b32.xlu1 %v9505_v37, %s7950_s16 }
0x13b5   :  { %6011 = vrot.lane.b32.xlu0 %v9505_v37, %s7952_s18  ;;  %7819 = vrot.lane.b32.xlu1 %v7773_v32, %s7952_s18 }
0x13b9   :  { %7824 = vrot.lane.b32.xlu0 %v7778_v5, %s7952_s18  ;;  %7829 = vrot.lane.b32.xlu1 %v7828_v42, %s7948_s14 }
0x13bd   :  { %7834 = vrot.lane.b32.xlu0 %v7828_v42, %s7947_s0  ;;  %7839 = vrot.lane.b32.xlu1 %v7838_v3, %s7949_s15 }
0x13c1   :  { %5783 = vrot.lane.b32.xlu0 %v9552_v1, %s7949_s15  ;;  %5889 = vrot.lane.b32.xlu1 %v9507_v12, %s7951_s17 }
0x13c5   :  { %5957 = vrot.lane.b32.xlu0 %v9507_v12, %s7950_s16  ;;  %7844 = vrot.lane.b32.xlu1 %v7828_v42, %s7951_s17 }
0x13c9   :  { %7849 = vrot.lane.b32.xlu0 %v7828_v42, %s7950_s16  ;;  %6025 = vrot.lane.b32.xlu1 %v9507_v12, %s7952_s18 }
0x13cd   :  { %7854 = vrot.lane.b32.xlu0 %v7828_v42, %s7952_s18 }
0x1403   :  { %v5636_v13 = vpop.permute.xlu0 %5635  ;;  %v9576_v51 = vpop.permute.xlu1 %5649 }
0x1404   :  { %v5658_v49 = vsel %vm1805_vm3, %v9576_v51, %v5636_v13 }
0x1405   :  { %v5659_v48 = vmul.f32 %v8185_v15, %v5658_v49 }
0x1407   :  { %v5704_v20 = vpop.permute.xlu0 %5703  ;;  %v9578_v34 = vpop.permute.xlu1 %5717 }
0x1408   :  { %v5726_v45 = vsel %vm1874_vm2, %v9578_v34, %v5704_v20 }
0x1409   :  { %v5727_v22 = vmul.f32 %v8192_v46, %v5726_v45 }
0x140b   :  { %v7775_v58 = vpop.permute.xlu0 %7774  ;;  %v9580_v2 = vpop.permute.xlu1 %7779  ;;  %v7319_v24 = vpack.c.bf16 %v5727_v22, %v5659_v48 }
0x140c   :  { %v7777_v38 = vunpack.i.h.bf16 %v7775_v58  ;;  %v7776_v54 = vunpack.i.l.bf16 %v7775_v58  ;;  %v7781_v9 = vunpack.i.l.bf16 %v9580_v2 }
0x140e   :  { %v5656_v41 = vsel %vm1805_vm3, %v7776_v54, %v7777_v38  ;;  %v5657_v0 = vsel %vm1805_vm3, %v5636_v13, %v7776_v54  ;;  %v5655_v15 = vsel %vm1805_vm3, %v7777_v38, %v7781_v9 }
0x140f   :  { %v7785_v47 = vpop.permute.xlu0 %7784  ;;  %v9590_v16 = vpop.permute.xlu1 %7789 }
0x1410   :  { %v7787_v7 = vunpack.i.h.bf16 %v7785_v47  ;;  %v7786_v27 = vunpack.i.l.bf16 %v7785_v47  ;;  %v7791_v50 = vunpack.i.l.bf16 %v9590_v16 }
0x1412   :  { %v5724_v10 = vsel %vm1874_vm2, %v7786_v27, %v7787_v7  ;;  %v5725_v46 = vsel %vm1874_vm2, %v5704_v20, %v7786_v27  ;;  %v5723_v43 = vsel %vm1874_vm2, %v7787_v7, %v7791_v50 }
0x1413   :  { %v7321_v56 = vpack.c.bf16 %v5724_v10, %v5656_v41  ;;  %v5772_v55 = vpop.permute.xlu0 %5771  ;;  %v7320_v40 = vpack.c.bf16 %v5725_v46, %v5657_v0  ;;  %v9610_v8 = vpop.permute.xlu1 %5785  ;;  %v7322_v31 = vpack.c.bf16 %v5723_v43, %v5655_v15 }
0x1414   :  { %v5794_v19 = vsel %vm1943_vm4, %v9610_v8, %v5772_v55 }
0x1415   :  { %6276 = vmatprep.subr.bf16.mxu0 %v7320_v40  ;;  %6317 = vmatprep.subr.bf16.mxu1 %v7322_v31  ;;  %v5795_v44 = vmul.f32 %v8214_v63, %v5794_v19  ;;  %v7792_v40 = vunpack.i.h.bf16 %v9590_v16 }
0x1416   :  { %6277 = vmatpush1.bf16.msra.mxu0 %v7319_v24  ;;  %6318 = vmatpush1.bf16.msra.mxu1 %v7321_v56 }
0x1417   :  { %v7795_v17 = vpop.permute.xlu0 %7794  ;;  %v9616_v18 = vpop.permute.xlu1 %5777  ;;  %v7327_v52 = vpack.c.bf16 %v9505_v37, %v5795_v44 }
0x1418   :  { %v7797_v39 = vunpack.i.h.bf16 %v7795_v17  ;;  %v7796_v4 = vunpack.i.l.bf16 %v7795_v17 }
0x141a   :  { %v5792_v35 = vsel %vm1943_vm4, %v7796_v4, %v7797_v39  ;;  %v5793_v11 = vsel %vm1943_vm4, %v5772_v55, %v7796_v4  ;;  %v5791_v28 = vsel %vm1943_vm4, %v7797_v39, %v9616_v18 }
0x141b   :  { %v7329_v23 = vpack.c.bf16 %v5629_v26, %v5792_v35  ;;  %v7800_v32 = vpop.permute.xlu0 %7799  ;;  %v7328_v63 = vpack.c.bf16 %v5628_v25, %v5793_v11  ;;  %v7330_v5 = vpack.c.bf16 %v9515_v57, %v5791_v28  ;;  %v9631_v62 = vpop.permute.xlu1 %7804  ;;  %v7782_v11 = vunpack.i.h.bf16 %v9580_v2 }
0x141c   :  { %v7806_v36 = vunpack.i.l.bf16 %v9631_v62  ;;  %v7802_v61 = vunpack.i.h.bf16 %v7800_v32  ;;  %v7801_v42 = vunpack.i.l.bf16 %v7800_v32  ;;  %v7807_v33 = vunpack.i.h.bf16 %v9631_v62 }
0x141d   :  { %6278 = vmatprep.subr.bf16.mxu0 %v7328_v63  ;;  %6319 = vmatprep.subr.bf16.mxu1 %v7330_v5  ;;  %v5722_v63 = vsel %vm1874_vm2, %v7791_v50, %v7792_v40 }
0x141e   :  { %6279 = vmatpush1.bf16.msra.mxu0 %v7327_v52  ;;  %6320 = vmatpush1.bf16.msra.mxu1 %v7329_v23  ;;  %v5895_v13 = vsel %vm2048_vm8, %v7802_v61, %v7806_v36  ;;  %v5896_v20 = vsel %vm2048_vm8, %v7801_v42, %v7802_v61  ;;  %v5894_v54 = vsel %vm2048_vm8, %v7806_v36, %v7807_v33  ;;  %v9693_v61 = vld [vmem:[%s9793_s2 + $0x10] sm:$0xf]  ;;  %s7957_s2 = smov [#allocation6]  }
0x141f   :  { %v7810_v26 = vpop.permute.xlu0 %7809  ;;  %v9635_v3 = vpop.permute.xlu1 %7814  ;;  %s6462_s14 = sshll.u32 %s7957_s2, 4  ;;  %s6463_s14 = int_to_ptr.vmem [resolvable:$true] %s6462_s14 }
0x1420   :  { %v7812_v30 = vunpack.i.h.bf16 %v7810_v26  ;;  %v7811_v25 = vunpack.i.l.bf16 %v7810_v26  ;;  %v7817_v57 = vunpack.i.h.bf16 %v9635_v3  ;;  %v7816_v37 = vunpack.i.l.bf16 %v9635_v3  ;;  %s7918_s15 = scalar_lea.vmem %s6463_s14, 1024  ;;  %p7923_p9 = scmp.lt.s32.totalorder %s6463_s14, %s6463_s14 }
0x1421   :  { %p7919_p8 = scmp.ne.s32.totalorder %s6463_s14, %s7918_s15  ;;  %p7924_p10 = scmp.lt.s32.totalorder %s7918_s15, %s7918_s15 }
0x1422   :  { %v5964_v58 = vsel %vm2117_vm9, %v7811_v25, %v7812_v30  ;;  %v5963_v45 = vsel %vm2117_vm9, %v7812_v30, %v7816_v37  ;;  %v5962_v47 = vsel %vm2117_vm9, %v7816_v37, %v7817_v57 }
0x1423   :  { %v9647_v49 = vpop.permute.xlu0 %5875  ;;  %v7336_v38 = vpack.c.bf16 %v5964_v58, %v5896_v20  ;;  %v7337_v22 = vpack.c.bf16 %v5963_v45, %v5895_v13  ;;  %v9657_v7 = vpop.permute.xlu1 %5943  ;;  %v7338_v48 = vpack.c.bf16 %v5962_v47, %v5894_v54  ;;  %v5654_v54 = vsel %vm1805_vm3, %v7781_v9, %v7782_v11  ;;  %p7925_p11 = por %p7924_p10, %p7923_p9 }
0x1424   :  { %v5897_v27 = vsel %vm2048_vm8, %v9647_v49, %v7801_v42  ;;  %v5965_v41 = vsel %vm2117_vm9, %v9657_v7, %v7811_v25 }
0x1425   :  { %6280 = vmatprep.subr.bf16.mxu0 %v7336_v38  ;;  %v7335_v10 = vpack.c.bf16 %v5965_v41, %v5897_v27  ;;  %6321 = vmatprep.subr.bf16.mxu1 %v7338_v48  ;;  %v7323_v48 = vpack.c.bf16 %v5722_v63, %v5654_v54  ;;  %p7926_p12 = pnand %p7925_p11, %p7919_p8 }
0x1426   :  { %6322 = vmatpush1.bf16.msra.mxu1 %v7337_v22 }
0x1427   :  { %v9665_v0 = vpop.permute.xlu0 %6011  ;;  %v7820_v46 = vpop.permute.xlu1 %7819  ;;  %6281 = vmatpush1.bf16.msra.mxu0 %v7335_v10 }
0x1428   :  { %v7822_v56 = vunpack.i.h.bf16 %v7820_v46  ;;  %v7821_v55 = vunpack.i.l.bf16 %v7820_v46 }
0x142a   :  { %v6032_v15 = vsel %vm2186_vm10, %v7821_v55, %v7822_v56  ;;  %v6033_v43 = vsel %vm2186_vm10, %v9665_v0, %v7821_v55 }
0x142b   :  { %v9673_v24 = vpop.permute.xlu0 %7824  ;;  %v7344_v31 = vpack.c.bf16 %v6032_v15, %v6032_v15  ;;  %v7343_v19 = vpack.c.bf16 %v6033_v43, %v6033_v43  ;;  %v7830_v17 = vpop.permute.xlu1 %7829 }
0x142c   :  { %v7827_v44 = vunpack.i.h.bf16 %v9673_v24  ;;  %v7826_v39 = vunpack.i.l.bf16 %v9673_v24  ;;  %v7832_v4 = vunpack.i.h.bf16 %v7830_v17  ;;  %v7831_v35 = vunpack.i.l.bf16 %v7830_v17 }
0x142d   :  { %7043 = vmatprep.subr.msk.bf16.mxu0 %vm2412_vm11, %v7344_v31  ;;  %v6253_v23 = vsel %vm2412_vm11, %v7343_v19, 0 }
0x142e   :  { %v6030_v28 = vsel %vm2186_vm10, %v7826_v39, %v7827_v44  ;;  %v6031_v32 = vsel %vm2186_vm10, %v7822_v56, %v7826_v39  ;;  %6283 = vmatpush1.bf16.msra.mxu0 %v6253_v23  ;;  %v5652_v42 = vsel %vm1805_vm3, %v7831_v35, %v7832_v4  ;;  %v5653_v16 = vsel %vm1805_vm3, %v7782_v11, %v7831_v35 }
0x142f   :  { %v7346_v5 = vpack.c.bf16 %v6030_v28, %v6030_v28  ;;  %v7835_v52 = vpop.permute.xlu0 %7834  ;;  %v7345_v36 = vpack.c.bf16 %v6031_v32, %v6031_v32  ;;  %v7840_v26 = vpop.permute.xlu1 %7839  ;;  %v5651_v20 = vsel %vm1805_vm3, %v7832_v4, %v9576_v51 }
0x1430   :  { %v7837_v30 = vunpack.i.h.bf16 %v7835_v52  ;;  %v7836_v25 = vunpack.i.l.bf16 %v7835_v52  ;;  %v7842_v37 = vunpack.i.h.bf16 %v7840_v26  ;;  %v7841_v50 = vunpack.i.l.bf16 %v7840_v26 }
0x1431   :  { %7045 = vmatprep.subr.msk.bf16.mxu1 %vm2412_vm11, %v7346_v5  ;;  %v6259_v13 = vsel %vm2412_vm11, %v7345_v36, 0  ;;  %7044 = vmatmul.mubr.msk.bf16.vlgmr.msra.gmra.mrb[44].mxu0 %vm2408_vm13, %v9693_v61 }
0x1432   :  { %v5720_v58 = vsel %vm1874_vm2, %v7836_v25, %v7837_v30  ;;  %6324 = vmatpush1.bf16.msra.mxu1 %v6259_v13  ;;  %v5721_v45 = vsel %vm1874_vm2, %v7792_v40, %v7836_v25  ;;  %v5719_v38 = vsel %vm1874_vm2, %v7837_v30, %v9578_v34  ;;  %6390 = vmatprep.mubr.bf16.mxu0 %v7953_v21 }
0x1433   :  { %v7325_v51 = vpack.c.bf16 %v5720_v58, %v5652_v42  ;;  %v5784_v47 = vpop.permute.xlu0 %5783  ;;  %v7324_v22 = vpack.c.bf16 %v5721_v45, %v5653_v16  ;;  %v7326_v27 = vpack.c.bf16 %v5719_v38, %v5651_v20  ;;  %v5890_v41 = vpop.permute.xlu1 %5889  ;;  %v5789_v10 = vsel %vm1943_vm4, %v7841_v50, %v7842_v37 }
0x1434   :  { %v5787_v34 = vsel %vm1943_vm4, %v5784_v47, %v9610_v8  ;;  %v5790_v2 = vsel %vm1943_vm4, %v9616_v18, %v7841_v50  ;;  %v5788_v9 = vsel %vm1943_vm4, %v7842_v37, %v5784_v47  ;;  %v5898_v56 = vsel %vm2048_vm8, %v5890_v41, %v9647_v49 }
0x1435   :  { %v7334_v46 = vpack.c.bf16 %v9507_v12, %v5787_v34  ;;  %6358 = vmatprep.subr.bf16.mxu0 %v7324_v22  ;;  %6399 = vmatprep.subr.bf16.mxu1 %v7326_v27  ;;  %v7332_v8 = vpack.c.bf16 %v9550_v29, %v5789_v10  ;;  %v7331_v18 = vpack.c.bf16 %v9517_v14, %v5790_v2 }
0x1436   :  { %7046 = vmatmul.mubr.msk.bf16.vlgmr.msra.gmra.mrb[44].mxu1 %vm2408_vm13, %v9693_v61  ;;  %6359 = vmatpush1.bf16.msra.mxu0 %v7323_v48  ;;  %v7333_v12 = vpack.c.bf16 %v9552_v1, %v5788_v9  ;;  %v5906_v49 = vmul.f32 %v8334_v59, %v5898_v56 }
0x1437   :  { %6400 = vmatpush1.bf16.msra.mxu1 %v7325_v51  ;;  %v5958_v55 = vpop.permute.xlu0 %5957  ;;  %6431 = vmatprep.mubr.bf16.mxu1 %v7953_v21  ;;  %v7845_v40 = vpop.permute.xlu1 %7844 }
0x1438   :  { %v5966_v15 = vsel %vm2117_vm9, %v5958_v55, %v9657_v7  ;;  %6360 = vmatprep.subr.bf16.mxu0 %v7332_v8  ;;  %6401 = vmatprep.subr.bf16.mxu1 %v7334_v46  ;;  %v7847_v43 = vunpack.i.h.bf16 %v7845_v40  ;;  %v7846_v31 = vunpack.i.l.bf16 %v7845_v40 }
0x1439   :  { %v5974_v29 = vmul.f32 %v8351_v60, %v5966_v15 }
0x143a   :  { %6361 = vmatpush1.bf16.msra.mxu0 %v7331_v18  ;;  %v5891_v39 = vsel %vm2048_vm8, %v7847_v43, %v5890_v41  ;;  %v5893_v7 = vsel %vm2048_vm8, %v7807_v33, %v7846_v31  ;;  %v5892_v60 = vsel %vm2048_vm8, %v7846_v31, %v7847_v43 }
0x143b   :  { %6402 = vmatpush1.bf16.msra.mxu1 %v7333_v12  ;;  %v7850_v21 = vpop.permute.xlu0 %7849  ;;  %v7342_v19 = vpack.c.bf16 %v5974_v29, %v5906_v49  ;;  %v6026_v14 = vpop.permute.xlu1 %6025 }
0x143c   :  { %v7852_v17 = vunpack.i.h.bf16 %v7850_v21  ;;  %v7851_v1 = vunpack.i.l.bf16 %v7850_v21  ;;  %v6034_v59 = vsel %vm2186_vm10, %v6026_v14, %v9665_v0 }
0x143d   :  { %6403 = vmatprep.subr.bf16.mxu1 %v7342_v19  ;;  %v6042_v4 = vmul.f32 %v8376_v53, %v6034_v59 }
0x143e   :  { %v5959_v35 = vsel %vm2117_vm9, %v7852_v17, %v5958_v55  ;;  %v5961_v62 = vsel %vm2117_vm9, %v7817_v57, %v7851_v1  ;;  %v5960_v33 = vsel %vm2117_vm9, %v7851_v1, %v7852_v17 }
0x143f   :  { %v7341_v11 = vpack.c.bf16 %v5959_v35, %v5891_v39  ;;  %v7339_v28 = vpack.c.bf16 %v5961_v62, %v5893_v7  ;;  %v7855_v0 = vpop.permute.xlu0 %7854  ;;  %v7340_v23 = vpack.c.bf16 %v5960_v33, %v5892_v60  ;;  %v7350_v32 = vpack.c.bf16 %v6042_v4, %v6042_v4 }
0x1440   :  { %v7857_v63 = vunpack.i.h.bf16 %v7855_v0  ;;  %v7856_v5 = vunpack.i.l.bf16 %v7855_v0 }
0x1441   :  { %6362 = vmatprep.subr.bf16.mxu0 %v7340_v23  ;;  %6404 = vmatpush1.bf16.msra.mxu1 %v7341_v11 }
0x1442   :  { %v6027_v53 = vsel %vm2186_vm10, %v7857_v63, %v6026_v14  ;;  %v6028_v3 = vsel %vm2186_vm10, %v7856_v5, %v7857_v63  ;;  %v6029_v57 = vsel %vm2186_vm10, %v7827_v44, %v7856_v5  ;;  %6363 = vmatpush1.bf16.msra.mxu0 %v7339_v28  ;;  %7049 = vmatprep.subr.msk.bf16.mxu1 %vm2412_vm11, %v7350_v32 }
0x1443   :  { %v7349_v52 = vpack.c.bf16 %v6027_v53, %v6027_v53  ;;  %v7347_v36 = vpack.c.bf16 %v6029_v57, %v6029_v57  ;;  %v7348_v42 = vpack.c.bf16 %v6028_v3, %v6028_v3 }
0x1445   :  { %7047 = vmatprep.subr.msk.bf16.mxu0 %vm2412_vm11, %v7348_v42  ;;  %v6265_v26 = vsel %vm2412_vm11, %v7347_v36, 0  ;;  %v6271_v30 = vsel %vm2412_vm11, %v7349_v52, 0 }
0x1446   :  { %6365 = vmatpush1.bf16.msra.mxu0 %v6265_v26  ;;  %6406 = vmatpush1.bf16.msra.mxu1 %v6271_v30 }
0x1449   :  { %7048 = vmatmul.mubr.msk.bf16.vlgmr.msra.gmra.mrb[48].mxu0 %vm2408_vm13, %v9693_v61  ;;  %7050 = vmatmul.mubr.msk.bf16.vlgmr.msra.gmra.mrb[48].mxu1 %vm2408_vm13, %v9693_v61 }
0x1504   :  { %v6310_v6 = vpop.f32.mrb[44].mxu0 }
0x1505   :  { %7879 = vtanh.f32 %v6310_v6  ;;  %v6312_v24 = vpop.f32.mrb[45].mxu0 }
0x1506   :  { %7881 = vtanh.f32 %v6312_v24  ;;  %v6314_v44 = vpop.f32.mrb[46].mxu0 }
0x1507   :  { %v6315_v25 = vpop.f32.mrb[47].mxu0 }
0x1509   :  { %v6351_v16 = vpop.f32.mrb[44].mxu1 }
0x150a   :  { %7883 = vtanh.f32 %v6351_v16  ;;  %v6353_v37 = vpop.f32.mrb[45].mxu1 }
0x150b   :  { %7885 = vtanh.f32 %v6353_v37  ;;  %v6355_v50 = vpop.f32.mrb[46].mxu1 }
0x150c   :  { %v6356_v13 = vpop.f32.mrb[47].mxu1 }
0x150f   :  { %v7880_v20 = vpop.eup %7879 }
0x1510   :  { %v7882_v58 = vpop.eup %7881  ;;  %6448 = vst [vmem:[#allocation6] sm:$0xff] %v7880_v20 }
0x1511   :  { %6449 = vst [vmem:[#allocation6 + $0x8] sm:$0xff] %v7882_v58 }
0x1514   :  { %v7884_v45 = vpop.eup %7883 }
0x1515   :  { %v7886_v38 = vpop.eup %7885  ;;  %6450 = vst [vmem:[#allocation6 + $0x10] sm:$0xff] %v7884_v45 }
0x1516   :  { %6451 = vst [vmem:[#allocation6 + $0x18] sm:$0xff] %v7886_v38 }
0x151c   :  { %v6392_v61 = vpop.f32.mrb[48].mxu0  ;;  %v6433_v54 = vpop.f32.mrb[48].mxu1 }
0x151d   :  { %7887 = vtanh.f32 %v6392_v61  ;;  %v6394_v51 = vpop.f32.mrb[49].mxu0  ;;  %v6435_v47 = vpop.f32.mrb[49].mxu1 }
0x151e   :  { %7889 = vtanh.f32 %v6433_v54  ;;  %v6396_v22 = vpop.f32.mrb[50].mxu0  ;;  %v6437_v27 = vpop.f32.mrb[50].mxu1 }
0x151f   :  { %7891 = vtanh.f32 %v6394_v51  ;;  %v6397_v48 = vpop.f32.mrb[51].mxu0  ;;  %v6438_v41 = vpop.f32.mrb[51].mxu1 }
0x1520   :  { %7893 = vtanh.f32 %v6435_v47 }
0x1527   :  { %v7888_v34 = vpop.eup %7887 }
0x1528   :  { %v7890_v10 = vpop.eup %7889  ;;  %6452 = vst [vmem:[#allocation6 + $0x20] sm:$0xff] %v7888_v34 }
0x1529   :  { %v7892_v2 = vpop.eup %7891  ;;  %6454 = vst [vmem:[#allocation6 + $0x30] sm:$0xff] %v7890_v10 }
0x152a   :  { %v7894_v9 = vpop.eup %7893  ;;  %6453 = vst [vmem:[#allocation6 + $0x28] sm:$0xff] %v7892_v2 }
0x152b   :  { %6455 = vst [vmem:[#allocation6 + $0x38] sm:$0xff] %v7894_v9 }
0x152c   :  { %7929 = shalt.err (!%p7926_p12)
}
0x152d   :  { %s7930_s18 = scalar_lea.hbm %s9797_s6, 1024 }
0x152e   :  { %p7931_p13 = scmp.ne.s32.totalorder %s9797_s6, %s7930_s18  ;;  %p7934_p0 = scmp.lt.u32.totalorder %s7930_s18, %s9797_s6 }
0x1530   :  { %p7936_p1 = pnand %p7934_p0, %p7931_p13 }
0x1532   :  { %7939 = shalt.err (!%p7936_p1)
}
0x1533   :  { %6465 = dma.vmem_to_hbm [thread:$0]  %s6463_s14, 1024, %s9797_s6, [#allocation5]  }
0x1534   :  { %7942 = dma.done.wait [#allocation5], 1024  }
0x1535   :  { %7943 = vsyncadd [#allocation5], 4294966272 }
0x1536   :  { %6469 = vsyncpa [#allocation4], 1 }
0x1537   :  { %6470 = vsyncpa [#allocation5], 1 }

</bundles_post_ra>
